<compile_context>
chip_gen: v5e
topology: v5e:2x2
jax: 0.10.0
libtpu: 0.0.40
codegen_flags: <defaults>
</compile_context>

<pallas_src>
import functools

import jax
import jax.numpy as jnp
from jax.experimental import pallas as pl
from jax.experimental.pallas import tpu as pltpu

# ----------------------------- toy dims (real-model stand-ins) ---------------
B = 2          # batch
T = 8          # question length
FEAT = 128     # image feature dim   (real: 4096)
WORD_EMB = 32  # word embedding dim  (real: 300)
HID = 32       # LSTM hidden         (real: 512)
EMB = 2 * HID  # joint embedding dim (real: 1024 = 2*hidden)
MLP_HID = 64   # mlp hidden          (real: 1000)
OUT = 32       # output classes      (real: 1000)
VOCAB = 50     # vocab size          (real: 10000)

BATCH_BLOCK = 8   # sublane-dense batch tile
LANE = 128


def _round_up(n, m):
    return ((n + m - 1) // m) * m


# --------------------------- fused forward kernel ----------------------------
def vqa_fused_kernel(seed_ref, ids_ref,                       # scalar prefetch (SMEM)
                     img_ref, img_w_hbm, img_b_ref,           # image path
                     word_emb_hbm, wih_ref, whh_ref, lstm_b_ref,  # question path
                     w1_ref, b1_ref, w2_ref, b2_ref,          # mlp
                     o_ref,                                   # output block
                     img_w_vmem, emb_vmem, dma_sem,           # scratch
                     *, training: bool):
    f32, bf16 = jnp.float32, jnp.bfloat16
    BB = img_ref.shape[0]                 # batch rows per block (8)
    Tn = emb_vmem.shape[0] // BB          # sequence length
    H = whh_ref.shape[0]                  # LSTM hidden
    V = word_emb_hbm.shape[0]             # vocab size
    nb = pl.program_id(0)

    # (1) img_w stays in HBM; start its DMA now and hide it behind the LSTM.
    img_w_cp = pltpu.make_async_copy(img_w_hbm, img_w_vmem, dma_sem.at[0])
    img_w_cp.start()

    # (2) nn.Embedding as a real gather: DMA only the T*BB needed rows
    #     (ids read as scalars from SMEM; rows are 128-lane f32 => 512B copies).
    row_copies = []
    for t in range(Tn):
        for j in range(BB):
            tok = jnp.clip(ids_ref[t, nb * BB + j], 0, V - 1)
            cp = pltpu.make_async_copy(word_emb_hbm.at[pl.ds(tok, 1)],
                                       emb_vmem.at[pl.ds(t * BB + j, 1)],
                                       dma_sem.at[1])
            cp.start()
            row_copies.append(cp)
    for cp in row_copies:
        cp.wait()

    # (3) LSTM input projection hoisted out of the recurrence (one bf16 matmul,
    #     f32 accumulation). Padded word-emb columns are zero, so the padded
    #     rows of w_ih contribute nothing.
    embeds = emb_vmem[...].astype(bf16)                                # (T*BB, Wp)
    x_proj = (jnp.dot(embeds, wih_ref[...], preferred_element_type=f32)
              + lstm_b_ref[...])                                       # (T*BB, 4H)

    # (4) 1-layer LSTM recurrence. h/c and gate math stay f32; only the MXU
    #     operand is cast. W_hh stays VMEM-resident across all timesteps.
    # TODO(synk): at real question lengths switch to lax.fori_loop(unroll=True)
    #             to bound live ranges (T=8 static unroll is fine here).
    whh = whh_ref[...]
    h = jnp.zeros((BB, H), f32)
    c = jnp.zeros((BB, H), f32)
    for t in range(Tn):
        gates = (x_proj[t * BB:(t + 1) * BB, :]
                 + jnp.dot(h.astype(bf16), whh, preferred_element_type=f32))
        if H % 128 == 0:
            # real-scale (H=512) path: slice first -> half the EUP work
            i_g = jax.nn.sigmoid(gates[:, 0 * H:1 * H])
            f_g = jax.nn.sigmoid(gates[:, 1 * H:2 * H])
            g_g = jnp.tanh(gates[:, 2 * H:3 * H])
            o_g = jax.nn.sigmoid(gates[:, 3 * H:4 * H])
        else:
            # toy H=32: sub-128-lane slices -> activate the packed vreg first
            sig = jax.nn.sigmoid(gates)
            tah = jnp.tanh(gates)
            i_g, f_g = sig[:, 0 * H:1 * H], sig[:, 1 * H:2 * H]
            g_g, o_g = tah[:, 2 * H:3 * H], sig[:, 3 * H:4 * H]
        c = f_g * c + i_g * g_g
        h = o_g * jnp.tanh(c)
    # QuesEmbedding output: cat([h_T, c_T], dim=-1) -> (BB, 2H) == (BB, EMB)
    ques_emb = jnp.concatenate([h, c], axis=1)

    # (5) image path: the img_w DMA has been in flight behind the recurrence.
    img_w_cp.wait()
    img_emb = jnp.tanh(
        jnp.dot(img_ref[...].astype(bf16), img_w_vmem[...],
                preferred_element_type=f32) + img_b_ref[...])          # (BB, EMB)

    # (6) combined multiply + mlp: Linear -> Dropout(0.5) -> Tanh -> Linear
    combined = (img_emb * ques_emb).astype(bf16)
    h1 = jnp.dot(combined, w1_ref[...], preferred_element_type=f32) + b1_ref[...]
    if training:
        pltpu.prng_seed(seed_ref[0] + nb)
        bits = pltpu.prng_random_bits(h1.shape)
        keep = (bits >> 31) == 0            # p=0.5 from the top bit, not the LSB
        h1 = jnp.where(keep, h1 * 2.0, 0.0)
    h1 = jnp.tanh(h1).astype(bf16)
    o_ref[...] = jnp.dot(h1, w2_ref[...], preferred_element_type=f32) + b2_ref[...]


# ------------------------------ wrapper --------------------------------------
def vqa_forward(params, images, questions, *, training=False, seed=0):
    f32, bf16 = jnp.float32, jnp.bfloat16
    Tq, Bq = questions.shape
    FEATd, EMBd = params["img_w"].shape
    _Vd, WEd = params["word_emb"].shape
    MLPd = params["mlp_w1"].shape[1]
    OUTd = params["mlp_w2"].shape[1]

    BB = BATCH_BLOCK
    # Pad batch to >=2 sublane-dense blocks so the grid axis can be split
    # across the 2 TensorCores on v7x; at real batch sizes NB = cdiv(B, 8).
    NB = max(2, _round_up(Bq, BB) // BB)
    B_pad = NB * BB
    WE_pad = _round_up(WEd, LANE)     # lane-dense embedding rows (gather DMA)
    MLP_pad = _round_up(MLPd, LANE)   # lane-dense mlp hidden
    OUT_pad = _round_up(OUTd, LANE)   # lane-dense output store

    # ---- operand prep: bf16 weights (f32 accumulation in-kernel), f32 biases,
    #      lane/sublane-dense padding done once outside the kernel ----
    images_p = jnp.pad(images.astype(f32), ((0, B_pad - Bq), (0, 0)))
    ids_p = jnp.pad(questions.astype(jnp.int32), ((0, 0), (0, B_pad - Bq)))
    seed_arr = jnp.asarray([seed], jnp.int32)

    img_w = params["img_w"].astype(bf16)
    img_b = params["img_b"].reshape(1, -1).astype(f32)
    # word_emb stays f32: row-gather traffic is negligible and 512B-aligned
    # rows keep the per-row DMA trivially legal. Columns padded to 128 lanes.
    word_emb = jnp.pad(params["word_emb"].astype(f32), ((0, 0), (0, WE_pad - WEd)))
    w_ih = jnp.pad(params["w_ih"], ((0, WE_pad - WEd), (0, 0))).astype(bf16)
    w_hh = params["w_hh"].astype(bf16)
    lstm_b = (params["b_ih"] + params["b_hh"]).reshape(1, -1).astype(f32)
    w1 = jnp.pad(params["mlp_w1"], ((0, 0), (0, MLP_pad - MLPd))).astype(bf16)
    b1 = jnp.pad(params["mlp_b1"], (0, MLP_pad - MLPd)).reshape(1, -1).astype(f32)
    w2 = jnp.pad(params["mlp_w2"],
                 ((0, MLP_pad - MLPd), (0, OUT_pad - OUTd))).astype(bf16)
    b2 = jnp.pad(params["mlp_b2"], (0, OUT_pad - OUTd)).reshape(1, -1).astype(f32)

    vmem = pl.BlockSpec(memory_space=pltpu.MemorySpace.VMEM)
    hbm = pl.BlockSpec(memory_space=pl.ANY)

    grid_spec = pltpu.PrefetchScalarGridSpec(
        num_scalar_prefetch=2,                    # seed, question ids -> SMEM
        grid=(NB,),                               # batch blocks of 8 rows
        in_specs=[
            pl.BlockSpec((BB, FEATd), lambda nb, seed, ids: (nb, 0)),  # images
            hbm,                                  # img_w (manual DMA, overlapped)
            vmem,                                 # img_b
            hbm,                                  # word_emb (row-gather DMA)
            vmem, vmem, vmem,                     # w_ih, w_hh, lstm bias
            vmem, vmem, vmem, vmem,               # w1, b1, w2, b2
        ],
        out_specs=pl.BlockSpec((BB, OUT_pad), lambda nb, seed, ids: (nb, 0)),
        scratch_shapes=[
            pltpu.VMEM((FEATd, EMBd), bf16),      # img_w staging buffer
            pltpu.VMEM((Tq * BB, WE_pad), f32),   # gathered word embeddings
            pltpu.SemaphoreType.DMA((2,)),        # [0]=img_w, [1]=gather rows
        ],
    )

    out = pl.pallas_call(
        functools.partial(vqa_fused_kernel, training=training),
        out_shape=jax.ShapeDtypeStruct((B_pad, OUT_pad), jnp.float32),
        grid_spec=grid_spec,
        compiler_params=pltpu.CompilerParams(
            dimension_semantics=("parallel",),    # 2 TCs on v7x; harmless on v5e/v6e
            vmem_limit_bytes=32 * 1024 * 1024),
    )(seed_arr, ids_p, images_p, img_w, img_b, word_emb,
      w_ih, w_hh, lstm_b, w1, b1, w2, b2)
    return out[:Bq, :OUTd]


# ------------------------------ params ---------------------------------------
def init_params(key):
    ks = jax.random.split(key, 10)
    s = 0.05
    return {
        "img_w": jax.random.normal(ks[0], (FEAT, EMB), jnp.float32) * s,
        "img_b": jax.random.normal(ks[1], (EMB,), jnp.float32) * s,
        "word_emb": jax.random.normal(ks[2], (VOCAB, WORD_EMB), jnp.float32) * s,
        "w_ih": jax.random.normal(ks[3], (WORD_EMB, 4 * HID), jnp.float32) * s,
        "w_hh": jax.random.normal(ks[4], (HID, 4 * HID), jnp.float32) * s,
        "b_ih": jax.random.normal(ks[5], (4 * HID,), jnp.float32) * s,
        "b_hh": jax.random.normal(ks[6], (4 * HID,), jnp.float32) * s,
        "mlp_w1": jax.random.normal(ks[7], (EMB, MLP_HID), jnp.float32) * s,
        "mlp_b1": jnp.zeros((MLP_HID,), jnp.float32),
        "mlp_w2": jax.random.normal(ks[8], (MLP_HID, OUT), jnp.float32) * s,
        "mlp_b2": jnp.zeros((OUT,), jnp.float32),
    }


if __name__ == "__main__":
    key = jax.random.PRNGKey(0)
    k_img, k_q, k_p = jax.random.split(key, 3)

    images = jax.random.normal(k_img, (B, FEAT), jnp.float32)          # (2, 128)
    questions = jax.random.randint(k_q, (T, B), 0, VOCAB, jnp.int32)   # (8, 2)
    params = init_params(k_p)

    fwd = jax.jit(vqa_forward, static_argnames=("training",))  # eval path
    out = jax.block_until_ready(fwd(params, images, questions))
    assert out.shape == (B, OUT) and out.dtype == jnp.float32
    assert bool(jnp.all(jnp.isfinite(out)))
    print("KERNEL_OK")
</pallas_src>

<mosaic_0001>
module attributes {stable_mosaic.version = 11 : i64} {
  func.func @vqa_fused_kernel(%arg0: i32, %arg1: memref<1xi32, #tpu.memory_space<smem>>, %arg2: memref<8x16xi32, #tpu.memory_space<smem>>, %arg3: memref<8x128xf32, #tpu.memory_space<vmem>>, %arg4: memref<128x64xbf16, #tpu.memory_space<any>>, %arg5: memref<1x64xf32, #tpu.memory_space<vmem>>, %arg6: memref<50x128xf32, #tpu.memory_space<any>>, %arg7: memref<128x128xbf16, #tpu.memory_space<vmem>>, %arg8: memref<32x128xbf16, #tpu.memory_space<vmem>>, %arg9: memref<1x128xf32, #tpu.memory_space<vmem>>, %arg10: memref<64x128xbf16, #tpu.memory_space<vmem>>, %arg11: memref<1x128xf32, #tpu.memory_space<vmem>>, %arg12: memref<128x128xbf16, #tpu.memory_space<vmem>>, %arg13: memref<1x128xf32, #tpu.memory_space<vmem>>, %arg14: memref<8x128xf32, #tpu.memory_space<vmem>>, %arg15: memref<128x64xbf16, #tpu.memory_space<vmem>>, %arg16: memref<64x128xf32, #tpu.memory_space<vmem>>, %arg17: memref<2x!tpu.dma_semaphore, #tpu.memory_space<semaphore_mem>>) attributes {dimension_semantics = [#tpu.dimension_semantics<parallel>], iteration_bounds = array<i64: 2>, scalar_prefetch = 2 : i64, scratch_operands = 3 : i64, tpu.core_type = #tpu.core_type<tc>, window_params = [{transform_indices = @transform_0, window_bounds = array<i64: 8, 128>}, {}, {pipeline_mode = #tpu.pipeline_mode<synchronous>, transform_indices = @transform_2, window_bounds = array<i64: 1, 64>}, {}, {pipeline_mode = #tpu.pipeline_mode<synchronous>, transform_indices = @transform_4, window_bounds = array<i64: 128, 128>}, {pipeline_mode = #tpu.pipeline_mode<synchronous>, transform_indices = @transform_5, window_bounds = array<i64: 32, 128>}, {pipeline_mode = #tpu.pipeline_mode<synchronous>, transform_indices = @transform_6, window_bounds = array<i64: 1, 128>}, {pipeline_mode = #tpu.pipeline_mode<synchronous>, transform_indices = @transform_7, window_bounds = array<i64: 64, 128>}, {pipeline_mode = #tpu.pipeline_mode<synchronous>, transform_indices = @transform_8, window_bounds = array<i64: 1, 128>}, {pipeline_mode = #tpu.pipeline_mode<synchronous>, transform_indices = @transform_9, window_bounds = array<i64: 128, 128>}, {pipeline_mode = #tpu.pipeline_mode<synchronous>, transform_indices = @transform_10, window_bounds = array<i64: 1, 128>}, {transform_indices = @transform_11, window_bounds = array<i64: 8, 128>}]} {
    %c0_i32 = arith.constant 0 : i32
    %0 = tpu.memref_slice %arg17[%c0_i32] : memref<2x!tpu.dma_semaphore, #tpu.memory_space<semaphore_mem>> -> memref<1x!tpu.dma_semaphore, #tpu.memory_space<semaphore_mem>>
    %1 = tpu.memref_squeeze %0 : memref<1x!tpu.dma_semaphore, #tpu.memory_space<semaphore_mem>> -> memref<!tpu.dma_semaphore, #tpu.memory_space<semaphore_mem>>
    tpu.enqueue_dma source(%arg4 : memref<128x64xbf16, #tpu.memory_space<any>>) target(%arg15 : memref<128x64xbf16, #tpu.memory_space<vmem>>) target_semaphore(%1 : memref<!tpu.dma_semaphore, #tpu.memory_space<semaphore_mem>>)
    %c8_i32 = arith.constant 8 : i32
    %2 = arith.muli %arg0, %c8_i32 : i32
    %c0_i32_0 = arith.constant 0 : i32
    %3 = arith.addi %2, %c0_i32_0 : i32
    %c0 = arith.constant 0 : index
    %4 = arith.index_cast %3 : i32 to index
    %5 = memref.load %arg2[%c0, %4] : memref<8x16xi32, #tpu.memory_space<smem>>
    %c0_i32_1 = arith.constant 0 : i32
    %c49_i32 = arith.constant 49 : i32
    %6 = arith.maxsi %c0_i32_1, %5 : i32
    %7 = arith.minsi %c49_i32, %6 : i32
    %c1_i32 = arith.constant 1 : i32
    %c0_i32_2 = arith.constant 0 : i32
    %8 = tpu.memref_slice %arg6[%7, %c0_i32_2] : memref<50x128xf32, #tpu.memory_space<any>> -> memref<1x128xf32, #tpu.memory_space<any>>
    %c0_i32_3 = arith.constant 0 : i32
    %c0_i32_4 = arith.constant 0 : i32
    %9 = tpu.memref_slice %arg16[%c0_i32_3, %c0_i32_4] : memref<64x128xf32, #tpu.memory_space<vmem>> -> memref<1x128xf32, #tpu.memory_space<vmem>>
    %10 = tpu.memref_slice %arg17[%c1_i32] : memref<2x!tpu.dma_semaphore, #tpu.memory_space<semaphore_mem>> -> memref<1x!tpu.dma_semaphore, #tpu.memory_space<semaphore_mem>>
    %11 = tpu.memref_squeeze %10 : memref<1x!tpu.dma_semaphore, #tpu.memory_space<semaphore_mem>> -> memref<!tpu.dma_semaphore, #tpu.memory_space<semaphore_mem>>
    tpu.enqueue_dma source(%8 : memref<1x128xf32, #tpu.memory_space<any>>) target(%9 : memref<1x128xf32, #tpu.memory_space<vmem>>) target_semaphore(%11 : memref<!tpu.dma_semaphore, #tpu.memory_space<semaphore_mem>>)
    %c8_i32_5 = arith.constant 8 : i32
    %12 = arith.muli %arg0, %c8_i32_5 : i32
    %c1_i32_6 = arith.constant 1 : i32
    %13 = arith.addi %12, %c1_i32_6 : i32
    %c0_7 = arith.constant 0 : index
    %14 = arith.index_cast %13 : i32 to index
    %15 = memref.load %arg2[%c0_7, %14] : memref<8x16xi32, #tpu.memory_space<smem>>
    %c0_i32_8 = arith.constant 0 : i32
    %c49_i32_9 = arith.constant 49 : i32
    %16 = arith.maxsi %c0_i32_8, %15 : i32
    %17 = arith.minsi %c49_i32_9, %16 : i32
    %c1_i32_10 = arith.constant 1 : i32
    %c0_i32_11 = arith.constant 0 : i32
    %18 = tpu.memref_slice %arg6[%17, %c0_i32_11] : memref<50x128xf32, #tpu.memory_space<any>> -> memref<1x128xf32, #tpu.memory_space<any>>
    %c1_i32_12 = arith.constant 1 : i32
    %c0_i32_13 = arith.constant 0 : i32
    %19 = tpu.memref_slice %arg16[%c1_i32_12, %c0_i32_13] : memref<64x128xf32, #tpu.memory_space<vmem>> -> memref<1x128xf32, #tpu.memory_space<vmem>>
    %20 = tpu.memref_slice %arg17[%c1_i32_10] : memref<2x!tpu.dma_semaphore, #tpu.memory_space<semaphore_mem>> -> memref<1x!tpu.dma_semaphore, #tpu.memory_space<semaphore_mem>>
    %21 = tpu.memref_squeeze %20 : memref<1x!tpu.dma_semaphore, #tpu.memory_space<semaphore_mem>> -> memref<!tpu.dma_semaphore, #tpu.memory_space<semaphore_mem>>
    tpu.enqueue_dma source(%18 : memref<1x128xf32, #tpu.memory_space<any>>) target(%19 : memref<1x128xf32, #tpu.memory_space<vmem>>) target_semaphore(%21 : memref<!tpu.dma_semaphore, #tpu.memory_space<semaphore_mem>>)
    %c8_i32_14 = arith.constant 8 : i32
    %22 = arith.muli %arg0, %c8_i32_14 : i32
    %c2_i32 = arith.constant 2 : i32
    %23 = arith.addi %22, %c2_i32 : i32
    %c0_15 = arith.constant 0 : index
    %24 = arith.index_cast %23 : i32 to index
    %25 = memref.load %arg2[%c0_15, %24] : memref<8x16xi32, #tpu.memory_space<smem>>
    %c0_i32_16 = arith.constant 0 : i32
    %c49_i32_17 = arith.constant 49 : i32
    %26 = arith.maxsi %c0_i32_16, %25 : i32
    %27 = arith.minsi %c49_i32_17, %26 : i32
    %c1_i32_18 = arith.constant 1 : i32
    %c0_i32_19 = arith.constant 0 : i32
    %28 = tpu.memref_slice %arg6[%27, %c0_i32_19] : memref<50x128xf32, #tpu.memory_space<any>> -> memref<1x128xf32, #tpu.memory_space<any>>
    %c2_i32_20 = arith.constant 2 : i32
    %c0_i32_21 = arith.constant 0 : i32
    %29 = tpu.memref_slice %arg16[%c2_i32_20, %c0_i32_21] : memref<64x128xf32, #tpu.memory_space<vmem>> -> memref<1x128xf32, #tpu.memory_space<vmem>>
    %30 = tpu.memref_slice %arg17[%c1_i32_18] : memref<2x!tpu.dma_semaphore, #tpu.memory_space<semaphore_mem>> -> memref<1x!tpu.dma_semaphore, #tpu.memory_space<semaphore_mem>>
    %31 = tpu.memref_squeeze %30 : memref<1x!tpu.dma_semaphore, #tpu.memory_space<semaphore_mem>> -> memref<!tpu.dma_semaphore, #tpu.memory_space<semaphore_mem>>
    tpu.enqueue_dma source(%28 : memref<1x128xf32, #tpu.memory_space<any>>) target(%29 : memref<1x128xf32, #tpu.memory_space<vmem>>) target_semaphore(%31 : memref<!tpu.dma_semaphore, #tpu.memory_space<semaphore_mem>>)
    %c8_i32_22 = arith.constant 8 : i32
    %32 = arith.muli %arg0, %c8_i32_22 : i32
    %c3_i32 = arith.constant 3 : i32
    %33 = arith.addi %32, %c3_i32 : i32
    %c0_23 = arith.constant 0 : index
    %34 = arith.index_cast %33 : i32 to index
    %35 = memref.load %arg2[%c0_23, %34] : memref<8x16xi32, #tpu.memory_space<smem>>
    %c0_i32_24 = arith.constant 0 : i32
    %c49_i32_25 = arith.constant 49 : i32
    %36 = arith.maxsi %c0_i32_24, %35 : i32
    %37 = arith.minsi %c49_i32_25, %36 : i32
    %c1_i32_26 = arith.constant 1 : i32
    %c0_i32_27 = arith.constant 0 : i32
    %38 = tpu.memref_slice %arg6[%37, %c0_i32_27] : memref<50x128xf32, #tpu.memory_space<any>> -> memref<1x128xf32, #tpu.memory_space<any>>
    %c3_i32_28 = arith.constant 3 : i32
    %c0_i32_29 = arith.constant 0 : i32
    %39 = tpu.memref_slice %arg16[%c3_i32_28, %c0_i32_29] : memref<64x128xf32, #tpu.memory_space<vmem>> -> memref<1x128xf32, #tpu.memory_space<vmem>>
    %40 = tpu.memref_slice %arg17[%c1_i32_26] : memref<2x!tpu.dma_semaphore, #tpu.memory_space<semaphore_mem>> -> memref<1x!tpu.dma_semaphore, #tpu.memory_space<semaphore_mem>>
    %41 = tpu.memref_squeeze %40 : memref<1x!tpu.dma_semaphore, #tpu.memory_space<semaphore_mem>> -> memref<!tpu.dma_semaphore, #tpu.memory_space<semaphore_mem>>
    tpu.enqueue_dma source(%38 : memref<1x128xf32, #tpu.memory_space<any>>) target(%39 : memref<1x128xf32, #tpu.memory_space<vmem>>) target_semaphore(%41 : memref<!tpu.dma_semaphore, #tpu.memory_space<semaphore_mem>>)
    %c8_i32_30 = arith.constant 8 : i32
    %42 = arith.muli %arg0, %c8_i32_30 : i32
    %c4_i32 = arith.constant 4 : i32
    %43 = arith.addi %42, %c4_i32 : i32
    %c0_31 = arith.constant 0 : index
    %44 = arith.index_cast %43 : i32 to index
    %45 = memref.load %arg2[%c0_31, %44] : memref<8x16xi32, #tpu.memory_space<smem>>
    %c0_i32_32 = arith.constant 0 : i32
    %c49_i32_33 = arith.constant 49 : i32
    %46 = arith.maxsi %c0_i32_32, %45 : i32
    %47 = arith.minsi %c49_i32_33, %46 : i32
    %c1_i32_34 = arith.constant 1 : i32
    %c0_i32_35 = arith.constant 0 : i32
    %48 = tpu.memref_slice %arg6[%47, %c0_i32_35] : memref<50x128xf32, #tpu.memory_space<any>> -> memref<1x128xf32, #tpu.memory_space<any>>
    %c4_i32_36 = arith.constant 4 : i32
    %c0_i32_37 = arith.constant 0 : i32
    %49 = tpu.memref_slice %arg16[%c4_i32_36, %c0_i32_37] : memref<64x128xf32, #tpu.memory_space<vmem>> -> memref<1x128xf32, #tpu.memory_space<vmem>>
    %50 = tpu.memref_slice %arg17[%c1_i32_34] : memref<2x!tpu.dma_semaphore, #tpu.memory_space<semaphore_mem>> -> memref<1x!tpu.dma_semaphore, #tpu.memory_space<semaphore_mem>>
    %51 = tpu.memref_squeeze %50 : memref<1x!tpu.dma_semaphore, #tpu.memory_space<semaphore_mem>> -> memref<!tpu.dma_semaphore, #tpu.memory_space<semaphore_mem>>
    tpu.enqueue_dma source(%48 : memref<1x128xf32, #tpu.memory_space<any>>) target(%49 : memref<1x128xf32, #tpu.memory_space<vmem>>) target_semaphore(%51 : memref<!tpu.dma_semaphore, #tpu.memory_space<semaphore_mem>>)
    %c8_i32_38 = arith.constant 8 : i32
    %52 = arith.muli %arg0, %c8_i32_38 : i32
    %c5_i32 = arith.constant 5 : i32
    %53 = arith.addi %52, %c5_i32 : i32
    %c0_39 = arith.constant 0 : index
    %54 = arith.index_cast %53 : i32 to index
    %55 = memref.load %arg2[%c0_39, %54] : memref<8x16xi32, #tpu.memory_space<smem>>
    %c0_i32_40 = arith.constant 0 : i32
    %c49_i32_41 = arith.constant 49 : i32
    %56 = arith.maxsi %c0_i32_40, %55 : i32
    %57 = arith.minsi %c49_i32_41, %56 : i32
    %c1_i32_42 = arith.constant 1 : i32
    %c0_i32_43 = arith.constant 0 : i32
    %58 = tpu.memref_slice %arg6[%57, %c0_i32_43] : memref<50x128xf32, #tpu.memory_space<any>> -> memref<1x128xf32, #tpu.memory_space<any>>
    %c5_i32_44 = arith.constant 5 : i32
    %c0_i32_45 = arith.constant 0 : i32
    %59 = tpu.memref_slice %arg16[%c5_i32_44, %c0_i32_45] : memref<64x128xf32, #tpu.memory_space<vmem>> -> memref<1x128xf32, #tpu.memory_space<vmem>>
    %60 = tpu.memref_slice %arg17[%c1_i32_42] : memref<2x!tpu.dma_semaphore, #tpu.memory_space<semaphore_mem>> -> memref<1x!tpu.dma_semaphore, #tpu.memory_space<semaphore_mem>>
    %61 = tpu.memref_squeeze %60 : memref<1x!tpu.dma_semaphore, #tpu.memory_space<semaphore_mem>> -> memref<!tpu.dma_semaphore, #tpu.memory_space<semaphore_mem>>
    tpu.enqueue_dma source(%58 : memref<1x128xf32, #tpu.memory_space<any>>) target(%59 : memref<1x128xf32, #tpu.memory_space<vmem>>) target_semaphore(%61 : memref<!tpu.dma_semaphore, #tpu.memory_space<semaphore_mem>>)
    %c8_i32_46 = arith.constant 8 : i32
    %62 = arith.muli %arg0, %c8_i32_46 : i32
    %c6_i32 = arith.constant 6 : i32
    %63 = arith.addi %62, %c6_i32 : i32
    %c0_47 = arith.constant 0 : index
    %64 = arith.index_cast %63 : i32 to index
    %65 = memref.load %arg2[%c0_47, %64] : memref<8x16xi32, #tpu.memory_space<smem>>
    %c0_i32_48 = arith.constant 0 : i32
    %c49_i32_49 = arith.constant 49 : i32
    %66 = arith.maxsi %c0_i32_48, %65 : i32
    %67 = arith.minsi %c49_i32_49, %66 : i32
    %c1_i32_50 = arith.constant 1 : i32
    %c0_i32_51 = arith.constant 0 : i32
    %68 = tpu.memref_slice %arg6[%67, %c0_i32_51] : memref<50x128xf32, #tpu.memory_space<any>> -> memref<1x128xf32, #tpu.memory_space<any>>
    %c6_i32_52 = arith.constant 6 : i32
    %c0_i32_53 = arith.constant 0 : i32
    %69 = tpu.memref_slice %arg16[%c6_i32_52, %c0_i32_53] : memref<64x128xf32, #tpu.memory_space<vmem>> -> memref<1x128xf32, #tpu.memory_space<vmem>>
    %70 = tpu.memref_slice %arg17[%c1_i32_50] : memref<2x!tpu.dma_semaphore, #tpu.memory_space<semaphore_mem>> -> memref<1x!tpu.dma_semaphore, #tpu.memory_space<semaphore_mem>>
    %71 = tpu.memref_squeeze %70 : memref<1x!tpu.dma_semaphore, #tpu.memory_space<semaphore_mem>> -> memref<!tpu.dma_semaphore, #tpu.memory_space<semaphore_mem>>
    tpu.enqueue_dma source(%68 : memref<1x128xf32, #tpu.memory_space<any>>) target(%69 : memref<1x128xf32, #tpu.memory_space<vmem>>) target_semaphore(%71 : memref<!tpu.dma_semaphore, #tpu.memory_space<semaphore_mem>>)
    %c8_i32_54 = arith.constant 8 : i32
    %72 = arith.muli %arg0, %c8_i32_54 : i32
    %c7_i32 = arith.constant 7 : i32
    %73 = arith.addi %72, %c7_i32 : i32
    %c0_55 = arith.constant 0 : index
    %74 = arith.index_cast %73 : i32 to index
    %75 = memref.load %arg2[%c0_55, %74] : memref<8x16xi32, #tpu.memory_space<smem>>
    %c0_i32_56 = arith.constant 0 : i32
    %c49_i32_57 = arith.constant 49 : i32
    %76 = arith.maxsi %c0_i32_56, %75 : i32
    %77 = arith.minsi %c49_i32_57, %76 : i32
    %c1_i32_58 = arith.constant 1 : i32
    %c0_i32_59 = arith.constant 0 : i32
    %78 = tpu.memref_slice %arg6[%77, %c0_i32_59] : memref<50x128xf32, #tpu.memory_space<any>> -> memref<1x128xf32, #tpu.memory_space<any>>
    %c7_i32_60 = arith.constant 7 : i32
    %c0_i32_61 = arith.constant 0 : i32
    %79 = tpu.memref_slice %arg16[%c7_i32_60, %c0_i32_61] : memref<64x128xf32, #tpu.memory_space<vmem>> -> memref<1x128xf32, #tpu.memory_space<vmem>>
    %80 = tpu.memref_slice %arg17[%c1_i32_58] : memref<2x!tpu.dma_semaphore, #tpu.memory_space<semaphore_mem>> -> memref<1x!tpu.dma_semaphore, #tpu.memory_space<semaphore_mem>>
    %81 = tpu.memref_squeeze %80 : memref<1x!tpu.dma_semaphore, #tpu.memory_space<semaphore_mem>> -> memref<!tpu.dma_semaphore, #tpu.memory_space<semaphore_mem>>
    tpu.enqueue_dma source(%78 : memref<1x128xf32, #tpu.memory_space<any>>) target(%79 : memref<1x128xf32, #tpu.memory_space<vmem>>) target_semaphore(%81 : memref<!tpu.dma_semaphore, #tpu.memory_space<semaphore_mem>>)
    %c8_i32_62 = arith.constant 8 : i32
    %82 = arith.muli %arg0, %c8_i32_62 : i32
    %c0_i32_63 = arith.constant 0 : i32
    %83 = arith.addi %82, %c0_i32_63 : i32
    %c1 = arith.constant 1 : index
    %84 = arith.index_cast %83 : i32 to index
    %85 = memref.load %arg2[%c1, %84] : memref<8x16xi32, #tpu.memory_space<smem>>
    %c0_i32_64 = arith.constant 0 : i32
    %c49_i32_65 = arith.constant 49 : i32
    %86 = arith.maxsi %c0_i32_64, %85 : i32
    %87 = arith.minsi %c49_i32_65, %86 : i32
    %c1_i32_66 = arith.constant 1 : i32
    %c0_i32_67 = arith.constant 0 : i32
    %88 = tpu.memref_slice %arg6[%87, %c0_i32_67] : memref<50x128xf32, #tpu.memory_space<any>> -> memref<1x128xf32, #tpu.memory_space<any>>
    %c8_i32_68 = arith.constant 8 : i32
    %c0_i32_69 = arith.constant 0 : i32
    %89 = tpu.memref_slice %arg16[%c8_i32_68, %c0_i32_69] : memref<64x128xf32, #tpu.memory_space<vmem>> -> memref<1x128xf32, #tpu.memory_space<vmem>>
    %90 = tpu.memref_slice %arg17[%c1_i32_66] : memref<2x!tpu.dma_semaphore, #tpu.memory_space<semaphore_mem>> -> memref<1x!tpu.dma_semaphore, #tpu.memory_space<semaphore_mem>>
    %91 = tpu.memref_squeeze %90 : memref<1x!tpu.dma_semaphore, #tpu.memory_space<semaphore_mem>> -> memref<!tpu.dma_semaphore, #tpu.memory_space<semaphore_mem>>
    tpu.enqueue_dma source(%88 : memref<1x128xf32, #tpu.memory_space<any>>) target(%89 : memref<1x128xf32, #tpu.memory_space<vmem>>) target_semaphore(%91 : memref<!tpu.dma_semaphore, #tpu.memory_space<semaphore_mem>>)
    %c8_i32_70 = arith.constant 8 : i32
    %92 = arith.muli %arg0, %c8_i32_70 : i32
    %c1_i32_71 = arith.constant 1 : i32
    %93 = arith.addi %92, %c1_i32_71 : i32
    %c1_72 = arith.constant 1 : index
    %94 = arith.index_cast %93 : i32 to index
    %95 = memref.load %arg2[%c1_72, %94] : memref<8x16xi32, #tpu.memory_space<smem>>
    %c0_i32_73 = arith.constant 0 : i32
    %c49_i32_74 = arith.constant 49 : i32
    %96 = arith.maxsi %c0_i32_73, %95 : i32
    %97 = arith.minsi %c49_i32_74, %96 : i32
    %c1_i32_75 = arith.constant 1 : i32
    %c0_i32_76 = arith.constant 0 : i32
    %98 = tpu.memref_slice %arg6[%97, %c0_i32_76] : memref<50x128xf32, #tpu.memory_space<any>> -> memref<1x128xf32, #tpu.memory_space<any>>
    %c9_i32 = arith.constant 9 : i32
    %c0_i32_77 = arith.constant 0 : i32
    %99 = tpu.memref_slice %arg16[%c9_i32, %c0_i32_77] : memref<64x128xf32, #tpu.memory_space<vmem>> -> memref<1x128xf32, #tpu.memory_space<vmem>>
    %100 = tpu.memref_slice %arg17[%c1_i32_75] : memref<2x!tpu.dma_semaphore, #tpu.memory_space<semaphore_mem>> -> memref<1x!tpu.dma_semaphore, #tpu.memory_space<semaphore_mem>>
    %101 = tpu.memref_squeeze %100 : memref<1x!tpu.dma_semaphore, #tpu.memory_space<semaphore_mem>> -> memref<!tpu.dma_semaphore, #tpu.memory_space<semaphore_mem>>
    tpu.enqueue_dma source(%98 : memref<1x128xf32, #tpu.memory_space<any>>) target(%99 : memref<1x128xf32, #tpu.memory_space<vmem>>) target_semaphore(%101 : memref<!tpu.dma_semaphore, #tpu.memory_space<semaphore_mem>>)
    %c8_i32_78 = arith.constant 8 : i32
    %102 = arith.muli %arg0, %c8_i32_78 : i32
    %c2_i32_79 = arith.constant 2 : i32
    %103 = arith.addi %102, %c2_i32_79 : i32
    %c1_80 = arith.constant 1 : index
    %104 = arith.index_cast %103 : i32 to index
    %105 = memref.load %arg2[%c1_80, %104] : memref<8x16xi32, #tpu.memory_space<smem>>
    %c0_i32_81 = arith.constant 0 : i32
    %c49_i32_82 = arith.constant 49 : i32
    %106 = arith.maxsi %c0_i32_81, %105 : i32
    %107 = arith.minsi %c49_i32_82, %106 : i32
    %c1_i32_83 = arith.constant 1 : i32
    %c0_i32_84 = arith.constant 0 : i32
    %108 = tpu.memref_slice %arg6[%107, %c0_i32_84] : memref<50x128xf32, #tpu.memory_space<any>> -> memref<1x128xf32, #tpu.memory_space<any>>
    %c10_i32 = arith.constant 10 : i32
    %c0_i32_85 = arith.constant 0 : i32
    %109 = tpu.memref_slice %arg16[%c10_i32, %c0_i32_85] : memref<64x128xf32, #tpu.memory_space<vmem>> -> memref<1x128xf32, #tpu.memory_space<vmem>>
    %110 = tpu.memref_slice %arg17[%c1_i32_83] : memref<2x!tpu.dma_semaphore, #tpu.memory_space<semaphore_mem>> -> memref<1x!tpu.dma_semaphore, #tpu.memory_space<semaphore_mem>>
    %111 = tpu.memref_squeeze %110 : memref<1x!tpu.dma_semaphore, #tpu.memory_space<semaphore_mem>> -> memref<!tpu.dma_semaphore, #tpu.memory_space<semaphore_mem>>
    tpu.enqueue_dma source(%108 : memref<1x128xf32, #tpu.memory_space<any>>) target(%109 : memref<1x128xf32, #tpu.memory_space<vmem>>) target_semaphore(%111 : memref<!tpu.dma_semaphore, #tpu.memory_space<semaphore_mem>>)
    %c8_i32_86 = arith.constant 8 : i32
    %112 = arith.muli %arg0, %c8_i32_86 : i32
    %c3_i32_87 = arith.constant 3 : i32
    %113 = arith.addi %112, %c3_i32_87 : i32
    %c1_88 = arith.constant 1 : index
    %114 = arith.index_cast %113 : i32 to index
    %115 = memref.load %arg2[%c1_88, %114] : memref<8x16xi32, #tpu.memory_space<smem>>
    %c0_i32_89 = arith.constant 0 : i32
    %c49_i32_90 = arith.constant 49 : i32
    %116 = arith.maxsi %c0_i32_89, %115 : i32
    %117 = arith.minsi %c49_i32_90, %116 : i32
    %c1_i32_91 = arith.constant 1 : i32
    %c0_i32_92 = arith.constant 0 : i32
    %118 = tpu.memref_slice %arg6[%117, %c0_i32_92] : memref<50x128xf32, #tpu.memory_space<any>> -> memref<1x128xf32, #tpu.memory_space<any>>
    %c11_i32 = arith.constant 11 : i32
    %c0_i32_93 = arith.constant 0 : i32
    %119 = tpu.memref_slice %arg16[%c11_i32, %c0_i32_93] : memref<64x128xf32, #tpu.memory_space<vmem>> -> memref<1x128xf32, #tpu.memory_space<vmem>>
    %120 = tpu.memref_slice %arg17[%c1_i32_91] : memref<2x!tpu.dma_semaphore, #tpu.memory_space<semaphore_mem>> -> memref<1x!tpu.dma_semaphore, #tpu.memory_space<semaphore_mem>>
    %121 = tpu.memref_squeeze %120 : memref<1x!tpu.dma_semaphore, #tpu.memory_space<semaphore_mem>> -> memref<!tpu.dma_semaphore, #tpu.memory_space<semaphore_mem>>
    tpu.enqueue_dma source(%118 : memref<1x128xf32, #tpu.memory_space<any>>) target(%119 : memref<1x128xf32, #tpu.memory_space<vmem>>) target_semaphore(%121 : memref<!tpu.dma_semaphore, #tpu.memory_space<semaphore_mem>>)
    %c8_i32_94 = arith.constant 8 : i32
    %122 = arith.muli %arg0, %c8_i32_94 : i32
    %c4_i32_95 = arith.constant 4 : i32
    %123 = arith.addi %122, %c4_i32_95 : i32
    %c1_96 = arith.constant 1 : index
    %124 = arith.index_cast %123 : i32 to index
    %125 = memref.load %arg2[%c1_96, %124] : memref<8x16xi32, #tpu.memory_space<smem>>
    %c0_i32_97 = arith.constant 0 : i32
    %c49_i32_98 = arith.constant 49 : i32
    %126 = arith.maxsi %c0_i32_97, %125 : i32
    %127 = arith.minsi %c49_i32_98, %126 : i32
    %c1_i32_99 = arith.constant 1 : i32
    %c0_i32_100 = arith.constant 0 : i32
    %128 = tpu.memref_slice %arg6[%127, %c0_i32_100] : memref<50x128xf32, #tpu.memory_space<any>> -> memref<1x128xf32, #tpu.memory_space<any>>
    %c12_i32 = arith.constant 12 : i32
    %c0_i32_101 = arith.constant 0 : i32
    %129 = tpu.memref_slice %arg16[%c12_i32, %c0_i32_101] : memref<64x128xf32, #tpu.memory_space<vmem>> -> memref<1x128xf32, #tpu.memory_space<vmem>>
    %130 = tpu.memref_slice %arg17[%c1_i32_99] : memref<2x!tpu.dma_semaphore, #tpu.memory_space<semaphore_mem>> -> memref<1x!tpu.dma_semaphore, #tpu.memory_space<semaphore_mem>>
    %131 = tpu.memref_squeeze %130 : memref<1x!tpu.dma_semaphore, #tpu.memory_space<semaphore_mem>> -> memref<!tpu.dma_semaphore, #tpu.memory_space<semaphore_mem>>
    tpu.enqueue_dma source(%128 : memref<1x128xf32, #tpu.memory_space<any>>) target(%129 : memref<1x128xf32, #tpu.memory_space<vmem>>) target_semaphore(%131 : memref<!tpu.dma_semaphore, #tpu.memory_space<semaphore_mem>>)
    %c8_i32_102 = arith.constant 8 : i32
    %132 = arith.muli %arg0, %c8_i32_102 : i32
    %c5_i32_103 = arith.constant 5 : i32
    %133 = arith.addi %132, %c5_i32_103 : i32
    %c1_104 = arith.constant 1 : index
    %134 = arith.index_cast %133 : i32 to index
    %135 = memref.load %arg2[%c1_104, %134] : memref<8x16xi32, #tpu.memory_space<smem>>
    %c0_i32_105 = arith.constant 0 : i32
    %c49_i32_106 = arith.constant 49 : i32
    %136 = arith.maxsi %c0_i32_105, %135 : i32
    %137 = arith.minsi %c49_i32_106, %136 : i32
    %c1_i32_107 = arith.constant 1 : i32
    %c0_i32_108 = arith.constant 0 : i32
    %138 = tpu.memref_slice %arg6[%137, %c0_i32_108] : memref<50x128xf32, #tpu.memory_space<any>> -> memref<1x128xf32, #tpu.memory_space<any>>
    %c13_i32 = arith.constant 13 : i32
    %c0_i32_109 = arith.constant 0 : i32
    %139 = tpu.memref_slice %arg16[%c13_i32, %c0_i32_109] : memref<64x128xf32, #tpu.memory_space<vmem>> -> memref<1x128xf32, #tpu.memory_space<vmem>>
    %140 = tpu.memref_slice %arg17[%c1_i32_107] : memref<2x!tpu.dma_semaphore, #tpu.memory_space<semaphore_mem>> -> memref<1x!tpu.dma_semaphore, #tpu.memory_space<semaphore_mem>>
    %141 = tpu.memref_squeeze %140 : memref<1x!tpu.dma_semaphore, #tpu.memory_space<semaphore_mem>> -> memref<!tpu.dma_semaphore, #tpu.memory_space<semaphore_mem>>
    tpu.enqueue_dma source(%138 : memref<1x128xf32, #tpu.memory_space<any>>) target(%139 : memref<1x128xf32, #tpu.memory_space<vmem>>) target_semaphore(%141 : memref<!tpu.dma_semaphore, #tpu.memory_space<semaphore_mem>>)
    %c8_i32_110 = arith.constant 8 : i32
    %142 = arith.muli %arg0, %c8_i32_110 : i32
    %c6_i32_111 = arith.constant 6 : i32
    %143 = arith.addi %142, %c6_i32_111 : i32
    %c1_112 = arith.constant 1 : index
    %144 = arith.index_cast %143 : i32 to index
    %145 = memref.load %arg2[%c1_112, %144] : memref<8x16xi32, #tpu.memory_space<smem>>
    %c0_i32_113 = arith.constant 0 : i32
    %c49_i32_114 = arith.constant 49 : i32
    %146 = arith.maxsi %c0_i32_113, %145 : i32
    %147 = arith.minsi %c49_i32_114, %146 : i32
    %c1_i32_115 = arith.constant 1 : i32
    %c0_i32_116 = arith.constant 0 : i32
    %148 = tpu.memref_slice %arg6[%147, %c0_i32_116] : memref<50x128xf32, #tpu.memory_space<any>> -> memref<1x128xf32, #tpu.memory_space<any>>
    %c14_i32 = arith.constant 14 : i32
    %c0_i32_117 = arith.constant 0 : i32
    %149 = tpu.memref_slice %arg16[%c14_i32, %c0_i32_117] : memref<64x128xf32, #tpu.memory_space<vmem>> -> memref<1x128xf32, #tpu.memory_space<vmem>>
    %150 = tpu.memref_slice %arg17[%c1_i32_115] : memref<2x!tpu.dma_semaphore, #tpu.memory_space<semaphore_mem>> -> memref<1x!tpu.dma_semaphore, #tpu.memory_space<semaphore_mem>>
    %151 = tpu.memref_squeeze %150 : memref<1x!tpu.dma_semaphore, #tpu.memory_space<semaphore_mem>> -> memref<!tpu.dma_semaphore, #tpu.memory_space<semaphore_mem>>
    tpu.enqueue_dma source(%148 : memref<1x128xf32, #tpu.memory_space<any>>) target(%149 : memref<1x128xf32, #tpu.memory_space<vmem>>) target_semaphore(%151 : memref<!tpu.dma_semaphore, #tpu.memory_space<semaphore_mem>>)
    %c8_i32_118 = arith.constant 8 : i32
    %152 = arith.muli %arg0, %c8_i32_118 : i32
    %c7_i32_119 = arith.constant 7 : i32
    %153 = arith.addi %152, %c7_i32_119 : i32
    %c1_120 = arith.constant 1 : index
    %154 = arith.index_cast %153 : i32 to index
    %155 = memref.load %arg2[%c1_120, %154] : memref<8x16xi32, #tpu.memory_space<smem>>
    %c0_i32_121 = arith.constant 0 : i32
    %c49_i32_122 = arith.constant 49 : i32
    %156 = arith.maxsi %c0_i32_121, %155 : i32
    %157 = arith.minsi %c49_i32_122, %156 : i32
    %c1_i32_123 = arith.constant 1 : i32
    %c0_i32_124 = arith.constant 0 : i32
    %158 = tpu.memref_slice %arg6[%157, %c0_i32_124] : memref<50x128xf32, #tpu.memory_space<any>> -> memref<1x128xf32, #tpu.memory_space<any>>
    %c15_i32 = arith.constant 15 : i32
    %c0_i32_125 = arith.constant 0 : i32
    %159 = tpu.memref_slice %arg16[%c15_i32, %c0_i32_125] : memref<64x128xf32, #tpu.memory_space<vmem>> -> memref<1x128xf32, #tpu.memory_space<vmem>>
    %160 = tpu.memref_slice %arg17[%c1_i32_123] : memref<2x!tpu.dma_semaphore, #tpu.memory_space<semaphore_mem>> -> memref<1x!tpu.dma_semaphore, #tpu.memory_space<semaphore_mem>>
    %161 = tpu.memref_squeeze %160 : memref<1x!tpu.dma_semaphore, #tpu.memory_space<semaphore_mem>> -> memref<!tpu.dma_semaphore, #tpu.memory_space<semaphore_mem>>
    tpu.enqueue_dma source(%158 : memref<1x128xf32, #tpu.memory_space<any>>) target(%159 : memref<1x128xf32, #tpu.memory_space<vmem>>) target_semaphore(%161 : memref<!tpu.dma_semaphore, #tpu.memory_space<semaphore_mem>>)
    %c8_i32_126 = arith.constant 8 : i32
    %162 = arith.muli %arg0, %c8_i32_126 : i32
    %c0_i32_127 = arith.constant 0 : i32
    %163 = arith.addi %162, %c0_i32_127 : i32
    %c2 = arith.constant 2 : index
    %164 = arith.index_cast %163 : i32 to index
    %165 = memref.load %arg2[%c2, %164] : memref<8x16xi32, #tpu.memory_space<smem>>
    %c0_i32_128 = arith.constant 0 : i32
    %c49_i32_129 = arith.constant 49 : i32
    %166 = arith.maxsi %c0_i32_128, %165 : i32
    %167 = arith.minsi %c49_i32_129, %166 : i32
    %c1_i32_130 = arith.constant 1 : i32
    %c0_i32_131 = arith.constant 0 : i32
    %168 = tpu.memref_slice %arg6[%167, %c0_i32_131] : memref<50x128xf32, #tpu.memory_space<any>> -> memref<1x128xf32, #tpu.memory_space<any>>
    %c16_i32 = arith.constant 16 : i32
    %c0_i32_132 = arith.constant 0 : i32
    %169 = tpu.memref_slice %arg16[%c16_i32, %c0_i32_132] : memref<64x128xf32, #tpu.memory_space<vmem>> -> memref<1x128xf32, #tpu.memory_space<vmem>>
    %170 = tpu.memref_slice %arg17[%c1_i32_130] : memref<2x!tpu.dma_semaphore, #tpu.memory_space<semaphore_mem>> -> memref<1x!tpu.dma_semaphore, #tpu.memory_space<semaphore_mem>>
    %171 = tpu.memref_squeeze %170 : memref<1x!tpu.dma_semaphore, #tpu.memory_space<semaphore_mem>> -> memref<!tpu.dma_semaphore, #tpu.memory_space<semaphore_mem>>
    tpu.enqueue_dma source(%168 : memref<1x128xf32, #tpu.memory_space<any>>) target(%169 : memref<1x128xf32, #tpu.memory_space<vmem>>) target_semaphore(%171 : memref<!tpu.dma_semaphore, #tpu.memory_space<semaphore_mem>>)
    %c8_i32_133 = arith.constant 8 : i32
    %172 = arith.muli %arg0, %c8_i32_133 : i32
    %c1_i32_134 = arith.constant 1 : i32
    %173 = arith.addi %172, %c1_i32_134 : i32
    %c2_135 = arith.constant 2 : index
    %174 = arith.index_cast %173 : i32 to index
    %175 = memref.load %arg2[%c2_135, %174] : memref<8x16xi32, #tpu.memory_space<smem>>
    %c0_i32_136 = arith.constant 0 : i32
    %c49_i32_137 = arith.constant 49 : i32
    %176 = arith.maxsi %c0_i32_136, %175 : i32
    %177 = arith.minsi %c49_i32_137, %176 : i32
    %c1_i32_138 = arith.constant 1 : i32
    %c0_i32_139 = arith.constant 0 : i32
    %178 = tpu.memref_slice %arg6[%177, %c0_i32_139] : memref<50x128xf32, #tpu.memory_space<any>> -> memref<1x128xf32, #tpu.memory_space<any>>
    %c17_i32 = arith.constant 17 : i32
    %c0_i32_140 = arith.constant 0 : i32
    %179 = tpu.memref_slice %arg16[%c17_i32, %c0_i32_140] : memref<64x128xf32, #tpu.memory_space<vmem>> -> memref<1x128xf32, #tpu.memory_space<vmem>>
    %180 = tpu.memref_slice %arg17[%c1_i32_138] : memref<2x!tpu.dma_semaphore, #tpu.memory_space<semaphore_mem>> -> memref<1x!tpu.dma_semaphore, #tpu.memory_space<semaphore_mem>>
    %181 = tpu.memref_squeeze %180 : memref<1x!tpu.dma_semaphore, #tpu.memory_space<semaphore_mem>> -> memref<!tpu.dma_semaphore, #tpu.memory_space<semaphore_mem>>
    tpu.enqueue_dma source(%178 : memref<1x128xf32, #tpu.memory_space<any>>) target(%179 : memref<1x128xf32, #tpu.memory_space<vmem>>) target_semaphore(%181 : memref<!tpu.dma_semaphore, #tpu.memory_space<semaphore_mem>>)
    %c8_i32_141 = arith.constant 8 : i32
    %182 = arith.muli %arg0, %c8_i32_141 : i32
    %c2_i32_142 = arith.constant 2 : i32
    %183 = arith.addi %182, %c2_i32_142 : i32
    %c2_143 = arith.constant 2 : index
    %184 = arith.index_cast %183 : i32 to index
    %185 = memref.load %arg2[%c2_143, %184] : memref<8x16xi32, #tpu.memory_space<smem>>
    %c0_i32_144 = arith.constant 0 : i32
    %c49_i32_145 = arith.constant 49 : i32
    %186 = arith.maxsi %c0_i32_144, %185 : i32
    %187 = arith.minsi %c49_i32_145, %186 : i32
    %c1_i32_146 = arith.constant 1 : i32
    %c0_i32_147 = arith.constant 0 : i32
    %188 = tpu.memref_slice %arg6[%187, %c0_i32_147] : memref<50x128xf32, #tpu.memory_space<any>> -> memref<1x128xf32, #tpu.memory_space<any>>
    %c18_i32 = arith.constant 18 : i32
    %c0_i32_148 = arith.constant 0 : i32
    %189 = tpu.memref_slice %arg16[%c18_i32, %c0_i32_148] : memref<64x128xf32, #tpu.memory_space<vmem>> -> memref<1x128xf32, #tpu.memory_space<vmem>>
    %190 = tpu.memref_slice %arg17[%c1_i32_146] : memref<2x!tpu.dma_semaphore, #tpu.memory_space<semaphore_mem>> -> memref<1x!tpu.dma_semaphore, #tpu.memory_space<semaphore_mem>>
    %191 = tpu.memref_squeeze %190 : memref<1x!tpu.dma_semaphore, #tpu.memory_space<semaphore_mem>> -> memref<!tpu.dma_semaphore, #tpu.memory_space<semaphore_mem>>
    tpu.enqueue_dma source(%188 : memref<1x128xf32, #tpu.memory_space<any>>) target(%189 : memref<1x128xf32, #tpu.memory_space<vmem>>) target_semaphore(%191 : memref<!tpu.dma_semaphore, #tpu.memory_space<semaphore_mem>>)
    %c8_i32_149 = arith.constant 8 : i32
    %192 = arith.muli %arg0, %c8_i32_149 : i32
    %c3_i32_150 = arith.constant 3 : i32
    %193 = arith.addi %192, %c3_i32_150 : i32
    %c2_151 = arith.constant 2 : index
    %194 = arith.index_cast %193 : i32 to index
    %195 = memref.load %arg2[%c2_151, %194] : memref<8x16xi32, #tpu.memory_space<smem>>
    %c0_i32_152 = arith.constant 0 : i32
    %c49_i32_153 = arith.constant 49 : i32
    %196 = arith.maxsi %c0_i32_152, %195 : i32
    %197 = arith.minsi %c49_i32_153, %196 : i32
    %c1_i32_154 = arith.constant 1 : i32
    %c0_i32_155 = arith.constant 0 : i32
    %198 = tpu.memref_slice %arg6[%197, %c0_i32_155] : memref<50x128xf32, #tpu.memory_space<any>> -> memref<1x128xf32, #tpu.memory_space<any>>
    %c19_i32 = arith.constant 19 : i32
    %c0_i32_156 = arith.constant 0 : i32
    %199 = tpu.memref_slice %arg16[%c19_i32, %c0_i32_156] : memref<64x128xf32, #tpu.memory_space<vmem>> -> memref<1x128xf32, #tpu.memory_space<vmem>>
    %200 = tpu.memref_slice %arg17[%c1_i32_154] : memref<2x!tpu.dma_semaphore, #tpu.memory_space<semaphore_mem>> -> memref<1x!tpu.dma_semaphore, #tpu.memory_space<semaphore_mem>>
    %201 = tpu.memref_squeeze %200 : memref<1x!tpu.dma_semaphore, #tpu.memory_space<semaphore_mem>> -> memref<!tpu.dma_semaphore, #tpu.memory_space<semaphore_mem>>
    tpu.enqueue_dma source(%198 : memref<1x128xf32, #tpu.memory_space<any>>) target(%199 : memref<1x128xf32, #tpu.memory_space<vmem>>) target_semaphore(%201 : memref<!tpu.dma_semaphore, #tpu.memory_space<semaphore_mem>>)
    %c8_i32_157 = arith.constant 8 : i32
    %202 = arith.muli %arg0, %c8_i32_157 : i32
    %c4_i32_158 = arith.constant 4 : i32
    %203 = arith.addi %202, %c4_i32_158 : i32
    %c2_159 = arith.constant 2 : index
    %204 = arith.index_cast %203 : i32 to index
    %205 = memref.load %arg2[%c2_159, %204] : memref<8x16xi32, #tpu.memory_space<smem>>
    %c0_i32_160 = arith.constant 0 : i32
    %c49_i32_161 = arith.constant 49 : i32
    %206 = arith.maxsi %c0_i32_160, %205 : i32
    %207 = arith.minsi %c49_i32_161, %206 : i32
    %c1_i32_162 = arith.constant 1 : i32
    %c0_i32_163 = arith.constant 0 : i32
    %208 = tpu.memref_slice %arg6[%207, %c0_i32_163] : memref<50x128xf32, #tpu.memory_space<any>> -> memref<1x128xf32, #tpu.memory_space<any>>
    %c20_i32 = arith.constant 20 : i32
    %c0_i32_164 = arith.constant 0 : i32
    %209 = tpu.memref_slice %arg16[%c20_i32, %c0_i32_164] : memref<64x128xf32, #tpu.memory_space<vmem>> -> memref<1x128xf32, #tpu.memory_space<vmem>>
    %210 = tpu.memref_slice %arg17[%c1_i32_162] : memref<2x!tpu.dma_semaphore, #tpu.memory_space<semaphore_mem>> -> memref<1x!tpu.dma_semaphore, #tpu.memory_space<semaphore_mem>>
    %211 = tpu.memref_squeeze %210 : memref<1x!tpu.dma_semaphore, #tpu.memory_space<semaphore_mem>> -> memref<!tpu.dma_semaphore, #tpu.memory_space<semaphore_mem>>
    tpu.enqueue_dma source(%208 : memref<1x128xf32, #tpu.memory_space<any>>) target(%209 : memref<1x128xf32, #tpu.memory_space<vmem>>) target_semaphore(%211 : memref<!tpu.dma_semaphore, #tpu.memory_space<semaphore_mem>>)
    %c8_i32_165 = arith.constant 8 : i32
    %212 = arith.muli %arg0, %c8_i32_165 : i32
    %c5_i32_166 = arith.constant 5 : i32
    %213 = arith.addi %212, %c5_i32_166 : i32
    %c2_167 = arith.constant 2 : index
    %214 = arith.index_cast %213 : i32 to index
    %215 = memref.load %arg2[%c2_167, %214] : memref<8x16xi32, #tpu.memory_space<smem>>
    %c0_i32_168 = arith.constant 0 : i32
    %c49_i32_169 = arith.constant 49 : i32
    %216 = arith.maxsi %c0_i32_168, %215 : i32
    %217 = arith.minsi %c49_i32_169, %216 : i32
    %c1_i32_170 = arith.constant 1 : i32
    %c0_i32_171 = arith.constant 0 : i32
    %218 = tpu.memref_slice %arg6[%217, %c0_i32_171] : memref<50x128xf32, #tpu.memory_space<any>> -> memref<1x128xf32, #tpu.memory_space<any>>
    %c21_i32 = arith.constant 21 : i32
    %c0_i32_172 = arith.constant 0 : i32
    %219 = tpu.memref_slice %arg16[%c21_i32, %c0_i32_172] : memref<64x128xf32, #tpu.memory_space<vmem>> -> memref<1x128xf32, #tpu.memory_space<vmem>>
    %220 = tpu.memref_slice %arg17[%c1_i32_170] : memref<2x!tpu.dma_semaphore, #tpu.memory_space<semaphore_mem>> -> memref<1x!tpu.dma_semaphore, #tpu.memory_space<semaphore_mem>>
    %221 = tpu.memref_squeeze %220 : memref<1x!tpu.dma_semaphore, #tpu.memory_space<semaphore_mem>> -> memref<!tpu.dma_semaphore, #tpu.memory_space<semaphore_mem>>
    tpu.enqueue_dma source(%218 : memref<1x128xf32, #tpu.memory_space<any>>) target(%219 : memref<1x128xf32, #tpu.memory_space<vmem>>) target_semaphore(%221 : memref<!tpu.dma_semaphore, #tpu.memory_space<semaphore_mem>>)
    %c8_i32_173 = arith.constant 8 : i32
    %222 = arith.muli %arg0, %c8_i32_173 : i32
    %c6_i32_174 = arith.constant 6 : i32
    %223 = arith.addi %222, %c6_i32_174 : i32
    %c2_175 = arith.constant 2 : index
    %224 = arith.index_cast %223 : i32 to index
    %225 = memref.load %arg2[%c2_175, %224] : memref<8x16xi32, #tpu.memory_space<smem>>
    %c0_i32_176 = arith.constant 0 : i32
    %c49_i32_177 = arith.constant 49 : i32
    %226 = arith.maxsi %c0_i32_176, %225 : i32
    %227 = arith.minsi %c49_i32_177, %226 : i32
    %c1_i32_178 = arith.constant 1 : i32
    %c0_i32_179 = arith.constant 0 : i32
    %228 = tpu.memref_slice %arg6[%227, %c0_i32_179] : memref<50x128xf32, #tpu.memory_space<any>> -> memref<1x128xf32, #tpu.memory_space<any>>
    %c22_i32 = arith.constant 22 : i32
    %c0_i32_180 = arith.constant 0 : i32
    %229 = tpu.memref_slice %arg16[%c22_i32, %c0_i32_180] : memref<64x128xf32, #tpu.memory_space<vmem>> -> memref<1x128xf32, #tpu.memory_space<vmem>>
    %230 = tpu.memref_slice %arg17[%c1_i32_178] : memref<2x!tpu.dma_semaphore, #tpu.memory_space<semaphore_mem>> -> memref<1x!tpu.dma_semaphore, #tpu.memory_space<semaphore_mem>>
    %231 = tpu.memref_squeeze %230 : memref<1x!tpu.dma_semaphore, #tpu.memory_space<semaphore_mem>> -> memref<!tpu.dma_semaphore, #tpu.memory_space<semaphore_mem>>
    tpu.enqueue_dma source(%228 : memref<1x128xf32, #tpu.memory_space<any>>) target(%229 : memref<1x128xf32, #tpu.memory_space<vmem>>) target_semaphore(%231 : memref<!tpu.dma_semaphore, #tpu.memory_space<semaphore_mem>>)
    %c8_i32_181 = arith.constant 8 : i32
    %232 = arith.muli %arg0, %c8_i32_181 : i32
    %c7_i32_182 = arith.constant 7 : i32
    %233 = arith.addi %232, %c7_i32_182 : i32
    %c2_183 = arith.constant 2 : index
    %234 = arith.index_cast %233 : i32 to index
    %235 = memref.load %arg2[%c2_183, %234] : memref<8x16xi32, #tpu.memory_space<smem>>
    %c0_i32_184 = arith.constant 0 : i32
    %c49_i32_185 = arith.constant 49 : i32
    %236 = arith.maxsi %c0_i32_184, %235 : i32
    %237 = arith.minsi %c49_i32_185, %236 : i32
    %c1_i32_186 = arith.constant 1 : i32
    %c0_i32_187 = arith.constant 0 : i32
    %238 = tpu.memref_slice %arg6[%237, %c0_i32_187] : memref<50x128xf32, #tpu.memory_space<any>> -> memref<1x128xf32, #tpu.memory_space<any>>
    %c23_i32 = arith.constant 23 : i32
    %c0_i32_188 = arith.constant 0 : i32
    %239 = tpu.memref_slice %arg16[%c23_i32, %c0_i32_188] : memref<64x128xf32, #tpu.memory_space<vmem>> -> memref<1x128xf32, #tpu.memory_space<vmem>>
    %240 = tpu.memref_slice %arg17[%c1_i32_186] : memref<2x!tpu.dma_semaphore, #tpu.memory_space<semaphore_mem>> -> memref<1x!tpu.dma_semaphore, #tpu.memory_space<semaphore_mem>>
    %241 = tpu.memref_squeeze %240 : memref<1x!tpu.dma_semaphore, #tpu.memory_space<semaphore_mem>> -> memref<!tpu.dma_semaphore, #tpu.memory_space<semaphore_mem>>
    tpu.enqueue_dma source(%238 : memref<1x128xf32, #tpu.memory_space<any>>) target(%239 : memref<1x128xf32, #tpu.memory_space<vmem>>) target_semaphore(%241 : memref<!tpu.dma_semaphore, #tpu.memory_space<semaphore_mem>>)
    %c8_i32_189 = arith.constant 8 : i32
    %242 = arith.muli %arg0, %c8_i32_189 : i32
    %c0_i32_190 = arith.constant 0 : i32
    %243 = arith.addi %242, %c0_i32_190 : i32
    %c3 = arith.constant 3 : index
    %244 = arith.index_cast %243 : i32 to index
    %245 = memref.load %arg2[%c3, %244] : memref<8x16xi32, #tpu.memory_space<smem>>
    %c0_i32_191 = arith.constant 0 : i32
    %c49_i32_192 = arith.constant 49 : i32
    %246 = arith.maxsi %c0_i32_191, %245 : i32
    %247 = arith.minsi %c49_i32_192, %246 : i32
    %c1_i32_193 = arith.constant 1 : i32
    %c0_i32_194 = arith.constant 0 : i32
    %248 = tpu.memref_slice %arg6[%247, %c0_i32_194] : memref<50x128xf32, #tpu.memory_space<any>> -> memref<1x128xf32, #tpu.memory_space<any>>
    %c24_i32 = arith.constant 24 : i32
    %c0_i32_195 = arith.constant 0 : i32
    %249 = tpu.memref_slice %arg16[%c24_i32, %c0_i32_195] : memref<64x128xf32, #tpu.memory_space<vmem>> -> memref<1x128xf32, #tpu.memory_space<vmem>>
    %250 = tpu.memref_slice %arg17[%c1_i32_193] : memref<2x!tpu.dma_semaphore, #tpu.memory_space<semaphore_mem>> -> memref<1x!tpu.dma_semaphore, #tpu.memory_space<semaphore_mem>>
    %251 = tpu.memref_squeeze %250 : memref<1x!tpu.dma_semaphore, #tpu.memory_space<semaphore_mem>> -> memref<!tpu.dma_semaphore, #tpu.memory_space<semaphore_mem>>
    tpu.enqueue_dma source(%248 : memref<1x128xf32, #tpu.memory_space<any>>) target(%249 : memref<1x128xf32, #tpu.memory_space<vmem>>) target_semaphore(%251 : memref<!tpu.dma_semaphore, #tpu.memory_space<semaphore_mem>>)
    %c8_i32_196 = arith.constant 8 : i32
    %252 = arith.muli %arg0, %c8_i32_196 : i32
    %c1_i32_197 = arith.constant 1 : i32
    %253 = arith.addi %252, %c1_i32_197 : i32
    %c3_198 = arith.constant 3 : index
    %254 = arith.index_cast %253 : i32 to index
    %255 = memref.load %arg2[%c3_198, %254] : memref<8x16xi32, #tpu.memory_space<smem>>
    %c0_i32_199 = arith.constant 0 : i32
    %c49_i32_200 = arith.constant 49 : i32
    %256 = arith.maxsi %c0_i32_199, %255 : i32
    %257 = arith.minsi %c49_i32_200, %256 : i32
    %c1_i32_201 = arith.constant 1 : i32
    %c0_i32_202 = arith.constant 0 : i32
    %258 = tpu.memref_slice %arg6[%257, %c0_i32_202] : memref<50x128xf32, #tpu.memory_space<any>> -> memref<1x128xf32, #tpu.memory_space<any>>
    %c25_i32 = arith.constant 25 : i32
    %c0_i32_203 = arith.constant 0 : i32
    %259 = tpu.memref_slice %arg16[%c25_i32, %c0_i32_203] : memref<64x128xf32, #tpu.memory_space<vmem>> -> memref<1x128xf32, #tpu.memory_space<vmem>>
    %260 = tpu.memref_slice %arg17[%c1_i32_201] : memref<2x!tpu.dma_semaphore, #tpu.memory_space<semaphore_mem>> -> memref<1x!tpu.dma_semaphore, #tpu.memory_space<semaphore_mem>>
    %261 = tpu.memref_squeeze %260 : memref<1x!tpu.dma_semaphore, #tpu.memory_space<semaphore_mem>> -> memref<!tpu.dma_semaphore, #tpu.memory_space<semaphore_mem>>
    tpu.enqueue_dma source(%258 : memref<1x128xf32, #tpu.memory_space<any>>) target(%259 : memref<1x128xf32, #tpu.memory_space<vmem>>) target_semaphore(%261 : memref<!tpu.dma_semaphore, #tpu.memory_space<semaphore_mem>>)
    %c8_i32_204 = arith.constant 8 : i32
    %262 = arith.muli %arg0, %c8_i32_204 : i32
    %c2_i32_205 = arith.constant 2 : i32
    %263 = arith.addi %262, %c2_i32_205 : i32
    %c3_206 = arith.constant 3 : index
    %264 = arith.index_cast %263 : i32 to index
    %265 = memref.load %arg2[%c3_206, %264] : memref<8x16xi32, #tpu.memory_space<smem>>
    %c0_i32_207 = arith.constant 0 : i32
    %c49_i32_208 = arith.constant 49 : i32
    %266 = arith.maxsi %c0_i32_207, %265 : i32
    %267 = arith.minsi %c49_i32_208, %266 : i32
    %c1_i32_209 = arith.constant 1 : i32
    %c0_i32_210 = arith.constant 0 : i32
    %268 = tpu.memref_slice %arg6[%267, %c0_i32_210] : memref<50x128xf32, #tpu.memory_space<any>> -> memref<1x128xf32, #tpu.memory_space<any>>
    %c26_i32 = arith.constant 26 : i32
    %c0_i32_211 = arith.constant 0 : i32
    %269 = tpu.memref_slice %arg16[%c26_i32, %c0_i32_211] : memref<64x128xf32, #tpu.memory_space<vmem>> -> memref<1x128xf32, #tpu.memory_space<vmem>>
    %270 = tpu.memref_slice %arg17[%c1_i32_209] : memref<2x!tpu.dma_semaphore, #tpu.memory_space<semaphore_mem>> -> memref<1x!tpu.dma_semaphore, #tpu.memory_space<semaphore_mem>>
    %271 = tpu.memref_squeeze %270 : memref<1x!tpu.dma_semaphore, #tpu.memory_space<semaphore_mem>> -> memref<!tpu.dma_semaphore, #tpu.memory_space<semaphore_mem>>
    tpu.enqueue_dma source(%268 : memref<1x128xf32, #tpu.memory_space<any>>) target(%269 : memref<1x128xf32, #tpu.memory_space<vmem>>) target_semaphore(%271 : memref<!tpu.dma_semaphore, #tpu.memory_space<semaphore_mem>>)
    %c8_i32_212 = arith.constant 8 : i32
    %272 = arith.muli %arg0, %c8_i32_212 : i32
    %c3_i32_213 = arith.constant 3 : i32
    %273 = arith.addi %272, %c3_i32_213 : i32
    %c3_214 = arith.constant 3 : index
    %274 = arith.index_cast %273 : i32 to index
    %275 = memref.load %arg2[%c3_214, %274] : memref<8x16xi32, #tpu.memory_space<smem>>
    %c0_i32_215 = arith.constant 0 : i32
    %c49_i32_216 = arith.constant 49 : i32
    %276 = arith.maxsi %c0_i32_215, %275 : i32
    %277 = arith.minsi %c49_i32_216, %276 : i32
    %c1_i32_217 = arith.constant 1 : i32
    %c0_i32_218 = arith.constant 0 : i32
    %278 = tpu.memref_slice %arg6[%277, %c0_i32_218] : memref<50x128xf32, #tpu.memory_space<any>> -> memref<1x128xf32, #tpu.memory_space<any>>
    %c27_i32 = arith.constant 27 : i32
    %c0_i32_219 = arith.constant 0 : i32
    %279 = tpu.memref_slice %arg16[%c27_i32, %c0_i32_219] : memref<64x128xf32, #tpu.memory_space<vmem>> -> memref<1x128xf32, #tpu.memory_space<vmem>>
    %280 = tpu.memref_slice %arg17[%c1_i32_217] : memref<2x!tpu.dma_semaphore, #tpu.memory_space<semaphore_mem>> -> memref<1x!tpu.dma_semaphore, #tpu.memory_space<semaphore_mem>>
    %281 = tpu.memref_squeeze %280 : memref<1x!tpu.dma_semaphore, #tpu.memory_space<semaphore_mem>> -> memref<!tpu.dma_semaphore, #tpu.memory_space<semaphore_mem>>
    tpu.enqueue_dma source(%278 : memref<1x128xf32, #tpu.memory_space<any>>) target(%279 : memref<1x128xf32, #tpu.memory_space<vmem>>) target_semaphore(%281 : memref<!tpu.dma_semaphore, #tpu.memory_space<semaphore_mem>>)
    %c8_i32_220 = arith.constant 8 : i32
    %282 = arith.muli %arg0, %c8_i32_220 : i32
    %c4_i32_221 = arith.constant 4 : i32
    %283 = arith.addi %282, %c4_i32_221 : i32
    %c3_222 = arith.constant 3 : index
    %284 = arith.index_cast %283 : i32 to index
    %285 = memref.load %arg2[%c3_222, %284] : memref<8x16xi32, #tpu.memory_space<smem>>
    %c0_i32_223 = arith.constant 0 : i32
    %c49_i32_224 = arith.constant 49 : i32
    %286 = arith.maxsi %c0_i32_223, %285 : i32
    %287 = arith.minsi %c49_i32_224, %286 : i32
    %c1_i32_225 = arith.constant 1 : i32
    %c0_i32_226 = arith.constant 0 : i32
    %288 = tpu.memref_slice %arg6[%287, %c0_i32_226] : memref<50x128xf32, #tpu.memory_space<any>> -> memref<1x128xf32, #tpu.memory_space<any>>
    %c28_i32 = arith.constant 28 : i32
    %c0_i32_227 = arith.constant 0 : i32
    %289 = tpu.memref_slice %arg16[%c28_i32, %c0_i32_227] : memref<64x128xf32, #tpu.memory_space<vmem>> -> memref<1x128xf32, #tpu.memory_space<vmem>>
    %290 = tpu.memref_slice %arg17[%c1_i32_225] : memref<2x!tpu.dma_semaphore, #tpu.memory_space<semaphore_mem>> -> memref<1x!tpu.dma_semaphore, #tpu.memory_space<semaphore_mem>>
    %291 = tpu.memref_squeeze %290 : memref<1x!tpu.dma_semaphore, #tpu.memory_space<semaphore_mem>> -> memref<!tpu.dma_semaphore, #tpu.memory_space<semaphore_mem>>
    tpu.enqueue_dma source(%288 : memref<1x128xf32, #tpu.memory_space<any>>) target(%289 : memref<1x128xf32, #tpu.memory_space<vmem>>) target_semaphore(%291 : memref<!tpu.dma_semaphore, #tpu.memory_space<semaphore_mem>>)
    %c8_i32_228 = arith.constant 8 : i32
    %292 = arith.muli %arg0, %c8_i32_228 : i32
    %c5_i32_229 = arith.constant 5 : i32
    %293 = arith.addi %292, %c5_i32_229 : i32
    %c3_230 = arith.constant 3 : index
    %294 = arith.index_cast %293 : i32 to index
    %295 = memref.load %arg2[%c3_230, %294] : memref<8x16xi32, #tpu.memory_space<smem>>
    %c0_i32_231 = arith.constant 0 : i32
    %c49_i32_232 = arith.constant 49 : i32
    %296 = arith.maxsi %c0_i32_231, %295 : i32
    %297 = arith.minsi %c49_i32_232, %296 : i32
    %c1_i32_233 = arith.constant 1 : i32
    %c0_i32_234 = arith.constant 0 : i32
    %298 = tpu.memref_slice %arg6[%297, %c0_i32_234] : memref<50x128xf32, #tpu.memory_space<any>> -> memref<1x128xf32, #tpu.memory_space<any>>
    %c29_i32 = arith.constant 29 : i32
    %c0_i32_235 = arith.constant 0 : i32
    %299 = tpu.memref_slice %arg16[%c29_i32, %c0_i32_235] : memref<64x128xf32, #tpu.memory_space<vmem>> -> memref<1x128xf32, #tpu.memory_space<vmem>>
    %300 = tpu.memref_slice %arg17[%c1_i32_233] : memref<2x!tpu.dma_semaphore, #tpu.memory_space<semaphore_mem>> -> memref<1x!tpu.dma_semaphore, #tpu.memory_space<semaphore_mem>>
    %301 = tpu.memref_squeeze %300 : memref<1x!tpu.dma_semaphore, #tpu.memory_space<semaphore_mem>> -> memref<!tpu.dma_semaphore, #tpu.memory_space<semaphore_mem>>
    tpu.enqueue_dma source(%298 : memref<1x128xf32, #tpu.memory_space<any>>) target(%299 : memref<1x128xf32, #tpu.memory_space<vmem>>) target_semaphore(%301 : memref<!tpu.dma_semaphore, #tpu.memory_space<semaphore_mem>>)
    %c8_i32_236 = arith.constant 8 : i32
    %302 = arith.muli %arg0, %c8_i32_236 : i32
    %c6_i32_237 = arith.constant 6 : i32
    %303 = arith.addi %302, %c6_i32_237 : i32
    %c3_238 = arith.constant 3 : index
    %304 = arith.index_cast %303 : i32 to index
    %305 = memref.load %arg2[%c3_238, %304] : memref<8x16xi32, #tpu.memory_space<smem>>
    %c0_i32_239 = arith.constant 0 : i32
    %c49_i32_240 = arith.constant 49 : i32
    %306 = arith.maxsi %c0_i32_239, %305 : i32
    %307 = arith.minsi %c49_i32_240, %306 : i32
    %c1_i32_241 = arith.constant 1 : i32
    %c0_i32_242 = arith.constant 0 : i32
    %308 = tpu.memref_slice %arg6[%307, %c0_i32_242] : memref<50x128xf32, #tpu.memory_space<any>> -> memref<1x128xf32, #tpu.memory_space<any>>
    %c30_i32 = arith.constant 30 : i32
    %c0_i32_243 = arith.constant 0 : i32
    %309 = tpu.memref_slice %arg16[%c30_i32, %c0_i32_243] : memref<64x128xf32, #tpu.memory_space<vmem>> -> memref<1x128xf32, #tpu.memory_space<vmem>>
    %310 = tpu.memref_slice %arg17[%c1_i32_241] : memref<2x!tpu.dma_semaphore, #tpu.memory_space<semaphore_mem>> -> memref<1x!tpu.dma_semaphore, #tpu.memory_space<semaphore_mem>>
    %311 = tpu.memref_squeeze %310 : memref<1x!tpu.dma_semaphore, #tpu.memory_space<semaphore_mem>> -> memref<!tpu.dma_semaphore, #tpu.memory_space<semaphore_mem>>
    tpu.enqueue_dma source(%308 : memref<1x128xf32, #tpu.memory_space<any>>) target(%309 : memref<1x128xf32, #tpu.memory_space<vmem>>) target_semaphore(%311 : memref<!tpu.dma_semaphore, #tpu.memory_space<semaphore_mem>>)
    %c8_i32_244 = arith.constant 8 : i32
    %312 = arith.muli %arg0, %c8_i32_244 : i32
    %c7_i32_245 = arith.constant 7 : i32
    %313 = arith.addi %312, %c7_i32_245 : i32
    %c3_246 = arith.constant 3 : index
    %314 = arith.index_cast %313 : i32 to index
    %315 = memref.load %arg2[%c3_246, %314] : memref<8x16xi32, #tpu.memory_space<smem>>
    %c0_i32_247 = arith.constant 0 : i32
    %c49_i32_248 = arith.constant 49 : i32
    %316 = arith.maxsi %c0_i32_247, %315 : i32
    %317 = arith.minsi %c49_i32_248, %316 : i32
    %c1_i32_249 = arith.constant 1 : i32
    %c0_i32_250 = arith.constant 0 : i32
    %318 = tpu.memref_slice %arg6[%317, %c0_i32_250] : memref<50x128xf32, #tpu.memory_space<any>> -> memref<1x128xf32, #tpu.memory_space<any>>
    %c31_i32 = arith.constant 31 : i32
    %c0_i32_251 = arith.constant 0 : i32
    %319 = tpu.memref_slice %arg16[%c31_i32, %c0_i32_251] : memref<64x128xf32, #tpu.memory_space<vmem>> -> memref<1x128xf32, #tpu.memory_space<vmem>>
    %320 = tpu.memref_slice %arg17[%c1_i32_249] : memref<2x!tpu.dma_semaphore, #tpu.memory_space<semaphore_mem>> -> memref<1x!tpu.dma_semaphore, #tpu.memory_space<semaphore_mem>>
    %321 = tpu.memref_squeeze %320 : memref<1x!tpu.dma_semaphore, #tpu.memory_space<semaphore_mem>> -> memref<!tpu.dma_semaphore, #tpu.memory_space<semaphore_mem>>
    tpu.enqueue_dma source(%318 : memref<1x128xf32, #tpu.memory_space<any>>) target(%319 : memref<1x128xf32, #tpu.memory_space<vmem>>) target_semaphore(%321 : memref<!tpu.dma_semaphore, #tpu.memory_space<semaphore_mem>>)
    %c8_i32_252 = arith.constant 8 : i32
    %322 = arith.muli %arg0, %c8_i32_252 : i32
    %c0_i32_253 = arith.constant 0 : i32
    %323 = arith.addi %322, %c0_i32_253 : i32
    %c4 = arith.constant 4 : index
    %324 = arith.index_cast %323 : i32 to index
    %325 = memref.load %arg2[%c4, %324] : memref<8x16xi32, #tpu.memory_space<smem>>
    %c0_i32_254 = arith.constant 0 : i32
    %c49_i32_255 = arith.constant 49 : i32
    %326 = arith.maxsi %c0_i32_254, %325 : i32
    %327 = arith.minsi %c49_i32_255, %326 : i32
    %c1_i32_256 = arith.constant 1 : i32
    %c0_i32_257 = arith.constant 0 : i32
    %328 = tpu.memref_slice %arg6[%327, %c0_i32_257] : memref<50x128xf32, #tpu.memory_space<any>> -> memref<1x128xf32, #tpu.memory_space<any>>
    %c32_i32 = arith.constant 32 : i32
    %c0_i32_258 = arith.constant 0 : i32
    %329 = tpu.memref_slice %arg16[%c32_i32, %c0_i32_258] : memref<64x128xf32, #tpu.memory_space<vmem>> -> memref<1x128xf32, #tpu.memory_space<vmem>>
    %330 = tpu.memref_slice %arg17[%c1_i32_256] : memref<2x!tpu.dma_semaphore, #tpu.memory_space<semaphore_mem>> -> memref<1x!tpu.dma_semaphore, #tpu.memory_space<semaphore_mem>>
    %331 = tpu.memref_squeeze %330 : memref<1x!tpu.dma_semaphore, #tpu.memory_space<semaphore_mem>> -> memref<!tpu.dma_semaphore, #tpu.memory_space<semaphore_mem>>
    tpu.enqueue_dma source(%328 : memref<1x128xf32, #tpu.memory_space<any>>) target(%329 : memref<1x128xf32, #tpu.memory_space<vmem>>) target_semaphore(%331 : memref<!tpu.dma_semaphore, #tpu.memory_space<semaphore_mem>>)
    %c8_i32_259 = arith.constant 8 : i32
    %332 = arith.muli %arg0, %c8_i32_259 : i32
    %c1_i32_260 = arith.constant 1 : i32
    %333 = arith.addi %332, %c1_i32_260 : i32
    %c4_261 = arith.constant 4 : index
    %334 = arith.index_cast %333 : i32 to index
    %335 = memref.load %arg2[%c4_261, %334] : memref<8x16xi32, #tpu.memory_space<smem>>
    %c0_i32_262 = arith.constant 0 : i32
    %c49_i32_263 = arith.constant 49 : i32
    %336 = arith.maxsi %c0_i32_262, %335 : i32
    %337 = arith.minsi %c49_i32_263, %336 : i32
    %c1_i32_264 = arith.constant 1 : i32
    %c0_i32_265 = arith.constant 0 : i32
    %338 = tpu.memref_slice %arg6[%337, %c0_i32_265] : memref<50x128xf32, #tpu.memory_space<any>> -> memref<1x128xf32, #tpu.memory_space<any>>
    %c33_i32 = arith.constant 33 : i32
    %c0_i32_266 = arith.constant 0 : i32
    %339 = tpu.memref_slice %arg16[%c33_i32, %c0_i32_266] : memref<64x128xf32, #tpu.memory_space<vmem>> -> memref<1x128xf32, #tpu.memory_space<vmem>>
    %340 = tpu.memref_slice %arg17[%c1_i32_264] : memref<2x!tpu.dma_semaphore, #tpu.memory_space<semaphore_mem>> -> memref<1x!tpu.dma_semaphore, #tpu.memory_space<semaphore_mem>>
    %341 = tpu.memref_squeeze %340 : memref<1x!tpu.dma_semaphore, #tpu.memory_space<semaphore_mem>> -> memref<!tpu.dma_semaphore, #tpu.memory_space<semaphore_mem>>
    tpu.enqueue_dma source(%338 : memref<1x128xf32, #tpu.memory_space<any>>) target(%339 : memref<1x128xf32, #tpu.memory_space<vmem>>) target_semaphore(%341 : memref<!tpu.dma_semaphore, #tpu.memory_space<semaphore_mem>>)
    %c8_i32_267 = arith.constant 8 : i32
    %342 = arith.muli %arg0, %c8_i32_267 : i32
    %c2_i32_268 = arith.constant 2 : i32
    %343 = arith.addi %342, %c2_i32_268 : i32
    %c4_269 = arith.constant 4 : index
    %344 = arith.index_cast %343 : i32 to index
    %345 = memref.load %arg2[%c4_269, %344] : memref<8x16xi32, #tpu.memory_space<smem>>
    %c0_i32_270 = arith.constant 0 : i32
    %c49_i32_271 = arith.constant 49 : i32
    %346 = arith.maxsi %c0_i32_270, %345 : i32
    %347 = arith.minsi %c49_i32_271, %346 : i32
    %c1_i32_272 = arith.constant 1 : i32
    %c0_i32_273 = arith.constant 0 : i32
    %348 = tpu.memref_slice %arg6[%347, %c0_i32_273] : memref<50x128xf32, #tpu.memory_space<any>> -> memref<1x128xf32, #tpu.memory_space<any>>
    %c34_i32 = arith.constant 34 : i32
    %c0_i32_274 = arith.constant 0 : i32
    %349 = tpu.memref_slice %arg16[%c34_i32, %c0_i32_274] : memref<64x128xf32, #tpu.memory_space<vmem>> -> memref<1x128xf32, #tpu.memory_space<vmem>>
    %350 = tpu.memref_slice %arg17[%c1_i32_272] : memref<2x!tpu.dma_semaphore, #tpu.memory_space<semaphore_mem>> -> memref<1x!tpu.dma_semaphore, #tpu.memory_space<semaphore_mem>>
    %351 = tpu.memref_squeeze %350 : memref<1x!tpu.dma_semaphore, #tpu.memory_space<semaphore_mem>> -> memref<!tpu.dma_semaphore, #tpu.memory_space<semaphore_mem>>
    tpu.enqueue_dma source(%348 : memref<1x128xf32, #tpu.memory_space<any>>) target(%349 : memref<1x128xf32, #tpu.memory_space<vmem>>) target_semaphore(%351 : memref<!tpu.dma_semaphore, #tpu.memory_space<semaphore_mem>>)
    %c8_i32_275 = arith.constant 8 : i32
    %352 = arith.muli %arg0, %c8_i32_275 : i32
    %c3_i32_276 = arith.constant 3 : i32
    %353 = arith.addi %352, %c3_i32_276 : i32
    %c4_277 = arith.constant 4 : index
    %354 = arith.index_cast %353 : i32 to index
    %355 = memref.load %arg2[%c4_277, %354] : memref<8x16xi32, #tpu.memory_space<smem>>
    %c0_i32_278 = arith.constant 0 : i32
    %c49_i32_279 = arith.constant 49 : i32
    %356 = arith.maxsi %c0_i32_278, %355 : i32
    %357 = arith.minsi %c49_i32_279, %356 : i32
    %c1_i32_280 = arith.constant 1 : i32
    %c0_i32_281 = arith.constant 0 : i32
    %358 = tpu.memref_slice %arg6[%357, %c0_i32_281] : memref<50x128xf32, #tpu.memory_space<any>> -> memref<1x128xf32, #tpu.memory_space<any>>
    %c35_i32 = arith.constant 35 : i32
    %c0_i32_282 = arith.constant 0 : i32
    %359 = tpu.memref_slice %arg16[%c35_i32, %c0_i32_282] : memref<64x128xf32, #tpu.memory_space<vmem>> -> memref<1x128xf32, #tpu.memory_space<vmem>>
    %360 = tpu.memref_slice %arg17[%c1_i32_280] : memref<2x!tpu.dma_semaphore, #tpu.memory_space<semaphore_mem>> -> memref<1x!tpu.dma_semaphore, #tpu.memory_space<semaphore_mem>>
    %361 = tpu.memref_squeeze %360 : memref<1x!tpu.dma_semaphore, #tpu.memory_space<semaphore_mem>> -> memref<!tpu.dma_semaphore, #tpu.memory_space<semaphore_mem>>
    tpu.enqueue_dma source(%358 : memref<1x128xf32, #tpu.memory_space<any>>) target(%359 : memref<1x128xf32, #tpu.memory_space<vmem>>) target_semaphore(%361 : memref<!tpu.dma_semaphore, #tpu.memory_space<semaphore_mem>>)
    %c8_i32_283 = arith.constant 8 : i32
    %362 = arith.muli %arg0, %c8_i32_283 : i32
    %c4_i32_284 = arith.constant 4 : i32
    %363 = arith.addi %362, %c4_i32_284 : i32
    %c4_285 = arith.constant 4 : index
    %364 = arith.index_cast %363 : i32 to index
    %365 = memref.load %arg2[%c4_285, %364] : memref<8x16xi32, #tpu.memory_space<smem>>
    %c0_i32_286 = arith.constant 0 : i32
    %c49_i32_287 = arith.constant 49 : i32
    %366 = arith.maxsi %c0_i32_286, %365 : i32
    %367 = arith.minsi %c49_i32_287, %366 : i32
    %c1_i32_288 = arith.constant 1 : i32
    %c0_i32_289 = arith.constant 0 : i32
    %368 = tpu.memref_slice %arg6[%367, %c0_i32_289] : memref<50x128xf32, #tpu.memory_space<any>> -> memref<1x128xf32, #tpu.memory_space<any>>
    %c36_i32 = arith.constant 36 : i32
    %c0_i32_290 = arith.constant 0 : i32
    %369 = tpu.memref_slice %arg16[%c36_i32, %c0_i32_290] : memref<64x128xf32, #tpu.memory_space<vmem>> -> memref<1x128xf32, #tpu.memory_space<vmem>>
    %370 = tpu.memref_slice %arg17[%c1_i32_288] : memref<2x!tpu.dma_semaphore, #tpu.memory_space<semaphore_mem>> -> memref<1x!tpu.dma_semaphore, #tpu.memory_space<semaphore_mem>>
    %371 = tpu.memref_squeeze %370 : memref<1x!tpu.dma_semaphore, #tpu.memory_space<semaphore_mem>> -> memref<!tpu.dma_semaphore, #tpu.memory_space<semaphore_mem>>
    tpu.enqueue_dma source(%368 : memref<1x128xf32, #tpu.memory_space<any>>) target(%369 : memref<1x128xf32, #tpu.memory_space<vmem>>) target_semaphore(%371 : memref<!tpu.dma_semaphore, #tpu.memory_space<semaphore_mem>>)
    %c8_i32_291 = arith.constant 8 : i32
    %372 = arith.muli %arg0, %c8_i32_291 : i32
    %c5_i32_292 = arith.constant 5 : i32
    %373 = arith.addi %372, %c5_i32_292 : i32
    %c4_293 = arith.constant 4 : index
    %374 = arith.index_cast %373 : i32 to index
    %375 = memref.load %arg2[%c4_293, %374] : memref<8x16xi32, #tpu.memory_space<smem>>
    %c0_i32_294 = arith.constant 0 : i32
    %c49_i32_295 = arith.constant 49 : i32
    %376 = arith.maxsi %c0_i32_294, %375 : i32
    %377 = arith.minsi %c49_i32_295, %376 : i32
    %c1_i32_296 = arith.constant 1 : i32
    %c0_i32_297 = arith.constant 0 : i32
    %378 = tpu.memref_slice %arg6[%377, %c0_i32_297] : memref<50x128xf32, #tpu.memory_space<any>> -> memref<1x128xf32, #tpu.memory_space<any>>
    %c37_i32 = arith.constant 37 : i32
    %c0_i32_298 = arith.constant 0 : i32
    %379 = tpu.memref_slice %arg16[%c37_i32, %c0_i32_298] : memref<64x128xf32, #tpu.memory_space<vmem>> -> memref<1x128xf32, #tpu.memory_space<vmem>>
    %380 = tpu.memref_slice %arg17[%c1_i32_296] : memref<2x!tpu.dma_semaphore, #tpu.memory_space<semaphore_mem>> -> memref<1x!tpu.dma_semaphore, #tpu.memory_space<semaphore_mem>>
    %381 = tpu.memref_squeeze %380 : memref<1x!tpu.dma_semaphore, #tpu.memory_space<semaphore_mem>> -> memref<!tpu.dma_semaphore, #tpu.memory_space<semaphore_mem>>
    tpu.enqueue_dma source(%378 : memref<1x128xf32, #tpu.memory_space<any>>) target(%379 : memref<1x128xf32, #tpu.memory_space<vmem>>) target_semaphore(%381 : memref<!tpu.dma_semaphore, #tpu.memory_space<semaphore_mem>>)
    %c8_i32_299 = arith.constant 8 : i32
    %382 = arith.muli %arg0, %c8_i32_299 : i32
    %c6_i32_300 = arith.constant 6 : i32
    %383 = arith.addi %382, %c6_i32_300 : i32
    %c4_301 = arith.constant 4 : index
    %384 = arith.index_cast %383 : i32 to index
    %385 = memref.load %arg2[%c4_301, %384] : memref<8x16xi32, #tpu.memory_space<smem>>
    %c0_i32_302 = arith.constant 0 : i32
    %c49_i32_303 = arith.constant 49 : i32
    %386 = arith.maxsi %c0_i32_302, %385 : i32
    %387 = arith.minsi %c49_i32_303, %386 : i32
    %c1_i32_304 = arith.constant 1 : i32
    %c0_i32_305 = arith.constant 0 : i32
    %388 = tpu.memref_slice %arg6[%387, %c0_i32_305] : memref<50x128xf32, #tpu.memory_space<any>> -> memref<1x128xf32, #tpu.memory_space<any>>
    %c38_i32 = arith.constant 38 : i32
    %c0_i32_306 = arith.constant 0 : i32
    %389 = tpu.memref_slice %arg16[%c38_i32, %c0_i32_306] : memref<64x128xf32, #tpu.memory_space<vmem>> -> memref<1x128xf32, #tpu.memory_space<vmem>>
    %390 = tpu.memref_slice %arg17[%c1_i32_304] : memref<2x!tpu.dma_semaphore, #tpu.memory_space<semaphore_mem>> -> memref<1x!tpu.dma_semaphore, #tpu.memory_space<semaphore_mem>>
    %391 = tpu.memref_squeeze %390 : memref<1x!tpu.dma_semaphore, #tpu.memory_space<semaphore_mem>> -> memref<!tpu.dma_semaphore, #tpu.memory_space<semaphore_mem>>
    tpu.enqueue_dma source(%388 : memref<1x128xf32, #tpu.memory_space<any>>) target(%389 : memref<1x128xf32, #tpu.memory_space<vmem>>) target_semaphore(%391 : memref<!tpu.dma_semaphore, #tpu.memory_space<semaphore_mem>>)
    %c8_i32_307 = arith.constant 8 : i32
    %392 = arith.muli %arg0, %c8_i32_307 : i32
    %c7_i32_308 = arith.constant 7 : i32
    %393 = arith.addi %392, %c7_i32_308 : i32
    %c4_309 = arith.constant 4 : index
    %394 = arith.index_cast %393 : i32 to index
    %395 = memref.load %arg2[%c4_309, %394] : memref<8x16xi32, #tpu.memory_space<smem>>
    %c0_i32_310 = arith.constant 0 : i32
    %c49_i32_311 = arith.constant 49 : i32
    %396 = arith.maxsi %c0_i32_310, %395 : i32
    %397 = arith.minsi %c49_i32_311, %396 : i32
    %c1_i32_312 = arith.constant 1 : i32
    %c0_i32_313 = arith.constant 0 : i32
    %398 = tpu.memref_slice %arg6[%397, %c0_i32_313] : memref<50x128xf32, #tpu.memory_space<any>> -> memref<1x128xf32, #tpu.memory_space<any>>
    %c39_i32 = arith.constant 39 : i32
    %c0_i32_314 = arith.constant 0 : i32
    %399 = tpu.memref_slice %arg16[%c39_i32, %c0_i32_314] : memref<64x128xf32, #tpu.memory_space<vmem>> -> memref<1x128xf32, #tpu.memory_space<vmem>>
    %400 = tpu.memref_slice %arg17[%c1_i32_312] : memref<2x!tpu.dma_semaphore, #tpu.memory_space<semaphore_mem>> -> memref<1x!tpu.dma_semaphore, #tpu.memory_space<semaphore_mem>>
    %401 = tpu.memref_squeeze %400 : memref<1x!tpu.dma_semaphore, #tpu.memory_space<semaphore_mem>> -> memref<!tpu.dma_semaphore, #tpu.memory_space<semaphore_mem>>
    tpu.enqueue_dma source(%398 : memref<1x128xf32, #tpu.memory_space<any>>) target(%399 : memref<1x128xf32, #tpu.memory_space<vmem>>) target_semaphore(%401 : memref<!tpu.dma_semaphore, #tpu.memory_space<semaphore_mem>>)
    %c8_i32_315 = arith.constant 8 : i32
    %402 = arith.muli %arg0, %c8_i32_315 : i32
    %c0_i32_316 = arith.constant 0 : i32
    %403 = arith.addi %402, %c0_i32_316 : i32
    %c5 = arith.constant 5 : index
    %404 = arith.index_cast %403 : i32 to index
    %405 = memref.load %arg2[%c5, %404] : memref<8x16xi32, #tpu.memory_space<smem>>
    %c0_i32_317 = arith.constant 0 : i32
    %c49_i32_318 = arith.constant 49 : i32
    %406 = arith.maxsi %c0_i32_317, %405 : i32
    %407 = arith.minsi %c49_i32_318, %406 : i32
    %c1_i32_319 = arith.constant 1 : i32
    %c0_i32_320 = arith.constant 0 : i32
    %408 = tpu.memref_slice %arg6[%407, %c0_i32_320] : memref<50x128xf32, #tpu.memory_space<any>> -> memref<1x128xf32, #tpu.memory_space<any>>
    %c40_i32 = arith.constant 40 : i32
    %c0_i32_321 = arith.constant 0 : i32
    %409 = tpu.memref_slice %arg16[%c40_i32, %c0_i32_321] : memref<64x128xf32, #tpu.memory_space<vmem>> -> memref<1x128xf32, #tpu.memory_space<vmem>>
    %410 = tpu.memref_slice %arg17[%c1_i32_319] : memref<2x!tpu.dma_semaphore, #tpu.memory_space<semaphore_mem>> -> memref<1x!tpu.dma_semaphore, #tpu.memory_space<semaphore_mem>>
    %411 = tpu.memref_squeeze %410 : memref<1x!tpu.dma_semaphore, #tpu.memory_space<semaphore_mem>> -> memref<!tpu.dma_semaphore, #tpu.memory_space<semaphore_mem>>
    tpu.enqueue_dma source(%408 : memref<1x128xf32, #tpu.memory_space<any>>) target(%409 : memref<1x128xf32, #tpu.memory_space<vmem>>) target_semaphore(%411 : memref<!tpu.dma_semaphore, #tpu.memory_space<semaphore_mem>>)
    %c8_i32_322 = arith.constant 8 : i32
    %412 = arith.muli %arg0, %c8_i32_322 : i32
    %c1_i32_323 = arith.constant 1 : i32
    %413 = arith.addi %412, %c1_i32_323 : i32
    %c5_324 = arith.constant 5 : index
    %414 = arith.index_cast %413 : i32 to index
    %415 = memref.load %arg2[%c5_324, %414] : memref<8x16xi32, #tpu.memory_space<smem>>
    %c0_i32_325 = arith.constant 0 : i32
    %c49_i32_326 = arith.constant 49 : i32
    %416 = arith.maxsi %c0_i32_325, %415 : i32
    %417 = arith.minsi %c49_i32_326, %416 : i32
    %c1_i32_327 = arith.constant 1 : i32
    %c0_i32_328 = arith.constant 0 : i32
    %418 = tpu.memref_slice %arg6[%417, %c0_i32_328] : memref<50x128xf32, #tpu.memory_space<any>> -> memref<1x128xf32, #tpu.memory_space<any>>
    %c41_i32 = arith.constant 41 : i32
    %c0_i32_329 = arith.constant 0 : i32
    %419 = tpu.memref_slice %arg16[%c41_i32, %c0_i32_329] : memref<64x128xf32, #tpu.memory_space<vmem>> -> memref<1x128xf32, #tpu.memory_space<vmem>>
    %420 = tpu.memref_slice %arg17[%c1_i32_327] : memref<2x!tpu.dma_semaphore, #tpu.memory_space<semaphore_mem>> -> memref<1x!tpu.dma_semaphore, #tpu.memory_space<semaphore_mem>>
    %421 = tpu.memref_squeeze %420 : memref<1x!tpu.dma_semaphore, #tpu.memory_space<semaphore_mem>> -> memref<!tpu.dma_semaphore, #tpu.memory_space<semaphore_mem>>
    tpu.enqueue_dma source(%418 : memref<1x128xf32, #tpu.memory_space<any>>) target(%419 : memref<1x128xf32, #tpu.memory_space<vmem>>) target_semaphore(%421 : memref<!tpu.dma_semaphore, #tpu.memory_space<semaphore_mem>>)
    %c8_i32_330 = arith.constant 8 : i32
    %422 = arith.muli %arg0, %c8_i32_330 : i32
    %c2_i32_331 = arith.constant 2 : i32
    %423 = arith.addi %422, %c2_i32_331 : i32
    %c5_332 = arith.constant 5 : index
    %424 = arith.index_cast %423 : i32 to index
    %425 = memref.load %arg2[%c5_332, %424] : memref<8x16xi32, #tpu.memory_space<smem>>
    %c0_i32_333 = arith.constant 0 : i32
    %c49_i32_334 = arith.constant 49 : i32
    %426 = arith.maxsi %c0_i32_333, %425 : i32
    %427 = arith.minsi %c49_i32_334, %426 : i32
    %c1_i32_335 = arith.constant 1 : i32
    %c0_i32_336 = arith.constant 0 : i32
    %428 = tpu.memref_slice %arg6[%427, %c0_i32_336] : memref<50x128xf32, #tpu.memory_space<any>> -> memref<1x128xf32, #tpu.memory_space<any>>
    %c42_i32 = arith.constant 42 : i32
    %c0_i32_337 = arith.constant 0 : i32
    %429 = tpu.memref_slice %arg16[%c42_i32, %c0_i32_337] : memref<64x128xf32, #tpu.memory_space<vmem>> -> memref<1x128xf32, #tpu.memory_space<vmem>>
    %430 = tpu.memref_slice %arg17[%c1_i32_335] : memref<2x!tpu.dma_semaphore, #tpu.memory_space<semaphore_mem>> -> memref<1x!tpu.dma_semaphore, #tpu.memory_space<semaphore_mem>>
    %431 = tpu.memref_squeeze %430 : memref<1x!tpu.dma_semaphore, #tpu.memory_space<semaphore_mem>> -> memref<!tpu.dma_semaphore, #tpu.memory_space<semaphore_mem>>
    tpu.enqueue_dma source(%428 : memref<1x128xf32, #tpu.memory_space<any>>) target(%429 : memref<1x128xf32, #tpu.memory_space<vmem>>) target_semaphore(%431 : memref<!tpu.dma_semaphore, #tpu.memory_space<semaphore_mem>>)
    %c8_i32_338 = arith.constant 8 : i32
    %432 = arith.muli %arg0, %c8_i32_338 : i32
    %c3_i32_339 = arith.constant 3 : i32
    %433 = arith.addi %432, %c3_i32_339 : i32
    %c5_340 = arith.constant 5 : index
    %434 = arith.index_cast %433 : i32 to index
    %435 = memref.load %arg2[%c5_340, %434] : memref<8x16xi32, #tpu.memory_space<smem>>
    %c0_i32_341 = arith.constant 0 : i32
    %c49_i32_342 = arith.constant 49 : i32
    %436 = arith.maxsi %c0_i32_341, %435 : i32
    %437 = arith.minsi %c49_i32_342, %436 : i32
    %c1_i32_343 = arith.constant 1 : i32
    %c0_i32_344 = arith.constant 0 : i32
    %438 = tpu.memref_slice %arg6[%437, %c0_i32_344] : memref<50x128xf32, #tpu.memory_space<any>> -> memref<1x128xf32, #tpu.memory_space<any>>
    %c43_i32 = arith.constant 43 : i32
    %c0_i32_345 = arith.constant 0 : i32
    %439 = tpu.memref_slice %arg16[%c43_i32, %c0_i32_345] : memref<64x128xf32, #tpu.memory_space<vmem>> -> memref<1x128xf32, #tpu.memory_space<vmem>>
    %440 = tpu.memref_slice %arg17[%c1_i32_343] : memref<2x!tpu.dma_semaphore, #tpu.memory_space<semaphore_mem>> -> memref<1x!tpu.dma_semaphore, #tpu.memory_space<semaphore_mem>>
    %441 = tpu.memref_squeeze %440 : memref<1x!tpu.dma_semaphore, #tpu.memory_space<semaphore_mem>> -> memref<!tpu.dma_semaphore, #tpu.memory_space<semaphore_mem>>
    tpu.enqueue_dma source(%438 : memref<1x128xf32, #tpu.memory_space<any>>) target(%439 : memref<1x128xf32, #tpu.memory_space<vmem>>) target_semaphore(%441 : memref<!tpu.dma_semaphore, #tpu.memory_space<semaphore_mem>>)
    %c8_i32_346 = arith.constant 8 : i32
    %442 = arith.muli %arg0, %c8_i32_346 : i32
    %c4_i32_347 = arith.constant 4 : i32
    %443 = arith.addi %442, %c4_i32_347 : i32
    %c5_348 = arith.constant 5 : index
    %444 = arith.index_cast %443 : i32 to index
    %445 = memref.load %arg2[%c5_348, %444] : memref<8x16xi32, #tpu.memory_space<smem>>
    %c0_i32_349 = arith.constant 0 : i32
    %c49_i32_350 = arith.constant 49 : i32
    %446 = arith.maxsi %c0_i32_349, %445 : i32
    %447 = arith.minsi %c49_i32_350, %446 : i32
    %c1_i32_351 = arith.constant 1 : i32
    %c0_i32_352 = arith.constant 0 : i32
    %448 = tpu.memref_slice %arg6[%447, %c0_i32_352] : memref<50x128xf32, #tpu.memory_space<any>> -> memref<1x128xf32, #tpu.memory_space<any>>
    %c44_i32 = arith.constant 44 : i32
    %c0_i32_353 = arith.constant 0 : i32
    %449 = tpu.memref_slice %arg16[%c44_i32, %c0_i32_353] : memref<64x128xf32, #tpu.memory_space<vmem>> -> memref<1x128xf32, #tpu.memory_space<vmem>>
    %450 = tpu.memref_slice %arg17[%c1_i32_351] : memref<2x!tpu.dma_semaphore, #tpu.memory_space<semaphore_mem>> -> memref<1x!tpu.dma_semaphore, #tpu.memory_space<semaphore_mem>>
    %451 = tpu.memref_squeeze %450 : memref<1x!tpu.dma_semaphore, #tpu.memory_space<semaphore_mem>> -> memref<!tpu.dma_semaphore, #tpu.memory_space<semaphore_mem>>
    tpu.enqueue_dma source(%448 : memref<1x128xf32, #tpu.memory_space<any>>) target(%449 : memref<1x128xf32, #tpu.memory_space<vmem>>) target_semaphore(%451 : memref<!tpu.dma_semaphore, #tpu.memory_space<semaphore_mem>>)
    %c8_i32_354 = arith.constant 8 : i32
    %452 = arith.muli %arg0, %c8_i32_354 : i32
    %c5_i32_355 = arith.constant 5 : i32
    %453 = arith.addi %452, %c5_i32_355 : i32
    %c5_356 = arith.constant 5 : index
    %454 = arith.index_cast %453 : i32 to index
    %455 = memref.load %arg2[%c5_356, %454] : memref<8x16xi32, #tpu.memory_space<smem>>
    %c0_i32_357 = arith.constant 0 : i32
    %c49_i32_358 = arith.constant 49 : i32
    %456 = arith.maxsi %c0_i32_357, %455 : i32
    %457 = arith.minsi %c49_i32_358, %456 : i32
    %c1_i32_359 = arith.constant 1 : i32
    %c0_i32_360 = arith.constant 0 : i32
    %458 = tpu.memref_slice %arg6[%457, %c0_i32_360] : memref<50x128xf32, #tpu.memory_space<any>> -> memref<1x128xf32, #tpu.memory_space<any>>
    %c45_i32 = arith.constant 45 : i32
    %c0_i32_361 = arith.constant 0 : i32
    %459 = tpu.memref_slice %arg16[%c45_i32, %c0_i32_361] : memref<64x128xf32, #tpu.memory_space<vmem>> -> memref<1x128xf32, #tpu.memory_space<vmem>>
    %460 = tpu.memref_slice %arg17[%c1_i32_359] : memref<2x!tpu.dma_semaphore, #tpu.memory_space<semaphore_mem>> -> memref<1x!tpu.dma_semaphore, #tpu.memory_space<semaphore_mem>>
    %461 = tpu.memref_squeeze %460 : memref<1x!tpu.dma_semaphore, #tpu.memory_space<semaphore_mem>> -> memref<!tpu.dma_semaphore, #tpu.memory_space<semaphore_mem>>
    tpu.enqueue_dma source(%458 : memref<1x128xf32, #tpu.memory_space<any>>) target(%459 : memref<1x128xf32, #tpu.memory_space<vmem>>) target_semaphore(%461 : memref<!tpu.dma_semaphore, #tpu.memory_space<semaphore_mem>>)
    %c8_i32_362 = arith.constant 8 : i32
    %462 = arith.muli %arg0, %c8_i32_362 : i32
    %c6_i32_363 = arith.constant 6 : i32
    %463 = arith.addi %462, %c6_i32_363 : i32
    %c5_364 = arith.constant 5 : index
    %464 = arith.index_cast %463 : i32 to index
    %465 = memref.load %arg2[%c5_364, %464] : memref<8x16xi32, #tpu.memory_space<smem>>
    %c0_i32_365 = arith.constant 0 : i32
    %c49_i32_366 = arith.constant 49 : i32
    %466 = arith.maxsi %c0_i32_365, %465 : i32
    %467 = arith.minsi %c49_i32_366, %466 : i32
    %c1_i32_367 = arith.constant 1 : i32
    %c0_i32_368 = arith.constant 0 : i32
    %468 = tpu.memref_slice %arg6[%467, %c0_i32_368] : memref<50x128xf32, #tpu.memory_space<any>> -> memref<1x128xf32, #tpu.memory_space<any>>
    %c46_i32 = arith.constant 46 : i32
    %c0_i32_369 = arith.constant 0 : i32
    %469 = tpu.memref_slice %arg16[%c46_i32, %c0_i32_369] : memref<64x128xf32, #tpu.memory_space<vmem>> -> memref<1x128xf32, #tpu.memory_space<vmem>>
    %470 = tpu.memref_slice %arg17[%c1_i32_367] : memref<2x!tpu.dma_semaphore, #tpu.memory_space<semaphore_mem>> -> memref<1x!tpu.dma_semaphore, #tpu.memory_space<semaphore_mem>>
    %471 = tpu.memref_squeeze %470 : memref<1x!tpu.dma_semaphore, #tpu.memory_space<semaphore_mem>> -> memref<!tpu.dma_semaphore, #tpu.memory_space<semaphore_mem>>
    tpu.enqueue_dma source(%468 : memref<1x128xf32, #tpu.memory_space<any>>) target(%469 : memref<1x128xf32, #tpu.memory_space<vmem>>) target_semaphore(%471 : memref<!tpu.dma_semaphore, #tpu.memory_space<semaphore_mem>>)
    %c8_i32_370 = arith.constant 8 : i32
    %472 = arith.muli %arg0, %c8_i32_370 : i32
    %c7_i32_371 = arith.constant 7 : i32
    %473 = arith.addi %472, %c7_i32_371 : i32
    %c5_372 = arith.constant 5 : index
    %474 = arith.index_cast %473 : i32 to index
    %475 = memref.load %arg2[%c5_372, %474] : memref<8x16xi32, #tpu.memory_space<smem>>
    %c0_i32_373 = arith.constant 0 : i32
    %c49_i32_374 = arith.constant 49 : i32
    %476 = arith.maxsi %c0_i32_373, %475 : i32
    %477 = arith.minsi %c49_i32_374, %476 : i32
    %c1_i32_375 = arith.constant 1 : i32
    %c0_i32_376 = arith.constant 0 : i32
    %478 = tpu.memref_slice %arg6[%477, %c0_i32_376] : memref<50x128xf32, #tpu.memory_space<any>> -> memref<1x128xf32, #tpu.memory_space<any>>
    %c47_i32 = arith.constant 47 : i32
    %c0_i32_377 = arith.constant 0 : i32
    %479 = tpu.memref_slice %arg16[%c47_i32, %c0_i32_377] : memref<64x128xf32, #tpu.memory_space<vmem>> -> memref<1x128xf32, #tpu.memory_space<vmem>>
    %480 = tpu.memref_slice %arg17[%c1_i32_375] : memref<2x!tpu.dma_semaphore, #tpu.memory_space<semaphore_mem>> -> memref<1x!tpu.dma_semaphore, #tpu.memory_space<semaphore_mem>>
    %481 = tpu.memref_squeeze %480 : memref<1x!tpu.dma_semaphore, #tpu.memory_space<semaphore_mem>> -> memref<!tpu.dma_semaphore, #tpu.memory_space<semaphore_mem>>
    tpu.enqueue_dma source(%478 : memref<1x128xf32, #tpu.memory_space<any>>) target(%479 : memref<1x128xf32, #tpu.memory_space<vmem>>) target_semaphore(%481 : memref<!tpu.dma_semaphore, #tpu.memory_space<semaphore_mem>>)
    %c8_i32_378 = arith.constant 8 : i32
    %482 = arith.muli %arg0, %c8_i32_378 : i32
    %c0_i32_379 = arith.constant 0 : i32
    %483 = arith.addi %482, %c0_i32_379 : i32
    %c6 = arith.constant 6 : index
    %484 = arith.index_cast %483 : i32 to index
    %485 = memref.load %arg2[%c6, %484] : memref<8x16xi32, #tpu.memory_space<smem>>
    %c0_i32_380 = arith.constant 0 : i32
    %c49_i32_381 = arith.constant 49 : i32
    %486 = arith.maxsi %c0_i32_380, %485 : i32
    %487 = arith.minsi %c49_i32_381, %486 : i32
    %c1_i32_382 = arith.constant 1 : i32
    %c0_i32_383 = arith.constant 0 : i32
    %488 = tpu.memref_slice %arg6[%487, %c0_i32_383] : memref<50x128xf32, #tpu.memory_space<any>> -> memref<1x128xf32, #tpu.memory_space<any>>
    %c48_i32 = arith.constant 48 : i32
    %c0_i32_384 = arith.constant 0 : i32
    %489 = tpu.memref_slice %arg16[%c48_i32, %c0_i32_384] : memref<64x128xf32, #tpu.memory_space<vmem>> -> memref<1x128xf32, #tpu.memory_space<vmem>>
    %490 = tpu.memref_slice %arg17[%c1_i32_382] : memref<2x!tpu.dma_semaphore, #tpu.memory_space<semaphore_mem>> -> memref<1x!tpu.dma_semaphore, #tpu.memory_space<semaphore_mem>>
    %491 = tpu.memref_squeeze %490 : memref<1x!tpu.dma_semaphore, #tpu.memory_space<semaphore_mem>> -> memref<!tpu.dma_semaphore, #tpu.memory_space<semaphore_mem>>
    tpu.enqueue_dma source(%488 : memref<1x128xf32, #tpu.memory_space<any>>) target(%489 : memref<1x128xf32, #tpu.memory_space<vmem>>) target_semaphore(%491 : memref<!tpu.dma_semaphore, #tpu.memory_space<semaphore_mem>>)
    %c8_i32_385 = arith.constant 8 : i32
    %492 = arith.muli %arg0, %c8_i32_385 : i32
    %c1_i32_386 = arith.constant 1 : i32
    %493 = arith.addi %492, %c1_i32_386 : i32
    %c6_387 = arith.constant 6 : index
    %494 = arith.index_cast %493 : i32 to index
    %495 = memref.load %arg2[%c6_387, %494] : memref<8x16xi32, #tpu.memory_space<smem>>
    %c0_i32_388 = arith.constant 0 : i32
    %c49_i32_389 = arith.constant 49 : i32
    %496 = arith.maxsi %c0_i32_388, %495 : i32
    %497 = arith.minsi %c49_i32_389, %496 : i32
    %c1_i32_390 = arith.constant 1 : i32
    %c0_i32_391 = arith.constant 0 : i32
    %498 = tpu.memref_slice %arg6[%497, %c0_i32_391] : memref<50x128xf32, #tpu.memory_space<any>> -> memref<1x128xf32, #tpu.memory_space<any>>
    %c49_i32_392 = arith.constant 49 : i32
    %c0_i32_393 = arith.constant 0 : i32
    %499 = tpu.memref_slice %arg16[%c49_i32_392, %c0_i32_393] : memref<64x128xf32, #tpu.memory_space<vmem>> -> memref<1x128xf32, #tpu.memory_space<vmem>>
    %500 = tpu.memref_slice %arg17[%c1_i32_390] : memref<2x!tpu.dma_semaphore, #tpu.memory_space<semaphore_mem>> -> memref<1x!tpu.dma_semaphore, #tpu.memory_space<semaphore_mem>>
    %501 = tpu.memref_squeeze %500 : memref<1x!tpu.dma_semaphore, #tpu.memory_space<semaphore_mem>> -> memref<!tpu.dma_semaphore, #tpu.memory_space<semaphore_mem>>
    tpu.enqueue_dma source(%498 : memref<1x128xf32, #tpu.memory_space<any>>) target(%499 : memref<1x128xf32, #tpu.memory_space<vmem>>) target_semaphore(%501 : memref<!tpu.dma_semaphore, #tpu.memory_space<semaphore_mem>>)
    %c8_i32_394 = arith.constant 8 : i32
    %502 = arith.muli %arg0, %c8_i32_394 : i32
    %c2_i32_395 = arith.constant 2 : i32
    %503 = arith.addi %502, %c2_i32_395 : i32
    %c6_396 = arith.constant 6 : index
    %504 = arith.index_cast %503 : i32 to index
    %505 = memref.load %arg2[%c6_396, %504] : memref<8x16xi32, #tpu.memory_space<smem>>
    %c0_i32_397 = arith.constant 0 : i32
    %c49_i32_398 = arith.constant 49 : i32
    %506 = arith.maxsi %c0_i32_397, %505 : i32
    %507 = arith.minsi %c49_i32_398, %506 : i32
    %c1_i32_399 = arith.constant 1 : i32
    %c0_i32_400 = arith.constant 0 : i32
    %508 = tpu.memref_slice %arg6[%507, %c0_i32_400] : memref<50x128xf32, #tpu.memory_space<any>> -> memref<1x128xf32, #tpu.memory_space<any>>
    %c50_i32 = arith.constant 50 : i32
    %c0_i32_401 = arith.constant 0 : i32
    %509 = tpu.memref_slice %arg16[%c50_i32, %c0_i32_401] : memref<64x128xf32, #tpu.memory_space<vmem>> -> memref<1x128xf32, #tpu.memory_space<vmem>>
    %510 = tpu.memref_slice %arg17[%c1_i32_399] : memref<2x!tpu.dma_semaphore, #tpu.memory_space<semaphore_mem>> -> memref<1x!tpu.dma_semaphore, #tpu.memory_space<semaphore_mem>>
    %511 = tpu.memref_squeeze %510 : memref<1x!tpu.dma_semaphore, #tpu.memory_space<semaphore_mem>> -> memref<!tpu.dma_semaphore, #tpu.memory_space<semaphore_mem>>
    tpu.enqueue_dma source(%508 : memref<1x128xf32, #tpu.memory_space<any>>) target(%509 : memref<1x128xf32, #tpu.memory_space<vmem>>) target_semaphore(%511 : memref<!tpu.dma_semaphore, #tpu.memory_space<semaphore_mem>>)
    %c8_i32_402 = arith.constant 8 : i32
    %512 = arith.muli %arg0, %c8_i32_402 : i32
    %c3_i32_403 = arith.constant 3 : i32
    %513 = arith.addi %512, %c3_i32_403 : i32
    %c6_404 = arith.constant 6 : index
    %514 = arith.index_cast %513 : i32 to index
    %515 = memref.load %arg2[%c6_404, %514] : memref<8x16xi32, #tpu.memory_space<smem>>
    %c0_i32_405 = arith.constant 0 : i32
    %c49_i32_406 = arith.constant 49 : i32
    %516 = arith.maxsi %c0_i32_405, %515 : i32
    %517 = arith.minsi %c49_i32_406, %516 : i32
    %c1_i32_407 = arith.constant 1 : i32
    %c0_i32_408 = arith.constant 0 : i32
    %518 = tpu.memref_slice %arg6[%517, %c0_i32_408] : memref<50x128xf32, #tpu.memory_space<any>> -> memref<1x128xf32, #tpu.memory_space<any>>
    %c51_i32 = arith.constant 51 : i32
    %c0_i32_409 = arith.constant 0 : i32
    %519 = tpu.memref_slice %arg16[%c51_i32, %c0_i32_409] : memref<64x128xf32, #tpu.memory_space<vmem>> -> memref<1x128xf32, #tpu.memory_space<vmem>>
    %520 = tpu.memref_slice %arg17[%c1_i32_407] : memref<2x!tpu.dma_semaphore, #tpu.memory_space<semaphore_mem>> -> memref<1x!tpu.dma_semaphore, #tpu.memory_space<semaphore_mem>>
    %521 = tpu.memref_squeeze %520 : memref<1x!tpu.dma_semaphore, #tpu.memory_space<semaphore_mem>> -> memref<!tpu.dma_semaphore, #tpu.memory_space<semaphore_mem>>
    tpu.enqueue_dma source(%518 : memref<1x128xf32, #tpu.memory_space<any>>) target(%519 : memref<1x128xf32, #tpu.memory_space<vmem>>) target_semaphore(%521 : memref<!tpu.dma_semaphore, #tpu.memory_space<semaphore_mem>>)
    %c8_i32_410 = arith.constant 8 : i32
    %522 = arith.muli %arg0, %c8_i32_410 : i32
    %c4_i32_411 = arith.constant 4 : i32
    %523 = arith.addi %522, %c4_i32_411 : i32
    %c6_412 = arith.constant 6 : index
    %524 = arith.index_cast %523 : i32 to index
    %525 = memref.load %arg2[%c6_412, %524] : memref<8x16xi32, #tpu.memory_space<smem>>
    %c0_i32_413 = arith.constant 0 : i32
    %c49_i32_414 = arith.constant 49 : i32
    %526 = arith.maxsi %c0_i32_413, %525 : i32
    %527 = arith.minsi %c49_i32_414, %526 : i32
    %c1_i32_415 = arith.constant 1 : i32
    %c0_i32_416 = arith.constant 0 : i32
    %528 = tpu.memref_slice %arg6[%527, %c0_i32_416] : memref<50x128xf32, #tpu.memory_space<any>> -> memref<1x128xf32, #tpu.memory_space<any>>
    %c52_i32 = arith.constant 52 : i32
    %c0_i32_417 = arith.constant 0 : i32
    %529 = tpu.memref_slice %arg16[%c52_i32, %c0_i32_417] : memref<64x128xf32, #tpu.memory_space<vmem>> -> memref<1x128xf32, #tpu.memory_space<vmem>>
    %530 = tpu.memref_slice %arg17[%c1_i32_415] : memref<2x!tpu.dma_semaphore, #tpu.memory_space<semaphore_mem>> -> memref<1x!tpu.dma_semaphore, #tpu.memory_space<semaphore_mem>>
    %531 = tpu.memref_squeeze %530 : memref<1x!tpu.dma_semaphore, #tpu.memory_space<semaphore_mem>> -> memref<!tpu.dma_semaphore, #tpu.memory_space<semaphore_mem>>
    tpu.enqueue_dma source(%528 : memref<1x128xf32, #tpu.memory_space<any>>) target(%529 : memref<1x128xf32, #tpu.memory_space<vmem>>) target_semaphore(%531 : memref<!tpu.dma_semaphore, #tpu.memory_space<semaphore_mem>>)
    %c8_i32_418 = arith.constant 8 : i32
    %532 = arith.muli %arg0, %c8_i32_418 : i32
    %c5_i32_419 = arith.constant 5 : i32
    %533 = arith.addi %532, %c5_i32_419 : i32
    %c6_420 = arith.constant 6 : index
    %534 = arith.index_cast %533 : i32 to index
    %535 = memref.load %arg2[%c6_420, %534] : memref<8x16xi32, #tpu.memory_space<smem>>
    %c0_i32_421 = arith.constant 0 : i32
    %c49_i32_422 = arith.constant 49 : i32
    %536 = arith.maxsi %c0_i32_421, %535 : i32
    %537 = arith.minsi %c49_i32_422, %536 : i32
    %c1_i32_423 = arith.constant 1 : i32
    %c0_i32_424 = arith.constant 0 : i32
    %538 = tpu.memref_slice %arg6[%537, %c0_i32_424] : memref<50x128xf32, #tpu.memory_space<any>> -> memref<1x128xf32, #tpu.memory_space<any>>
    %c53_i32 = arith.constant 53 : i32
    %c0_i32_425 = arith.constant 0 : i32
    %539 = tpu.memref_slice %arg16[%c53_i32, %c0_i32_425] : memref<64x128xf32, #tpu.memory_space<vmem>> -> memref<1x128xf32, #tpu.memory_space<vmem>>
    %540 = tpu.memref_slice %arg17[%c1_i32_423] : memref<2x!tpu.dma_semaphore, #tpu.memory_space<semaphore_mem>> -> memref<1x!tpu.dma_semaphore, #tpu.memory_space<semaphore_mem>>
    %541 = tpu.memref_squeeze %540 : memref<1x!tpu.dma_semaphore, #tpu.memory_space<semaphore_mem>> -> memref<!tpu.dma_semaphore, #tpu.memory_space<semaphore_mem>>
    tpu.enqueue_dma source(%538 : memref<1x128xf32, #tpu.memory_space<any>>) target(%539 : memref<1x128xf32, #tpu.memory_space<vmem>>) target_semaphore(%541 : memref<!tpu.dma_semaphore, #tpu.memory_space<semaphore_mem>>)
    %c8_i32_426 = arith.constant 8 : i32
    %542 = arith.muli %arg0, %c8_i32_426 : i32
    %c6_i32_427 = arith.constant 6 : i32
    %543 = arith.addi %542, %c6_i32_427 : i32
    %c6_428 = arith.constant 6 : index
    %544 = arith.index_cast %543 : i32 to index
    %545 = memref.load %arg2[%c6_428, %544] : memref<8x16xi32, #tpu.memory_space<smem>>
    %c0_i32_429 = arith.constant 0 : i32
    %c49_i32_430 = arith.constant 49 : i32
    %546 = arith.maxsi %c0_i32_429, %545 : i32
    %547 = arith.minsi %c49_i32_430, %546 : i32
    %c1_i32_431 = arith.constant 1 : i32
    %c0_i32_432 = arith.constant 0 : i32
    %548 = tpu.memref_slice %arg6[%547, %c0_i32_432] : memref<50x128xf32, #tpu.memory_space<any>> -> memref<1x128xf32, #tpu.memory_space<any>>
    %c54_i32 = arith.constant 54 : i32
    %c0_i32_433 = arith.constant 0 : i32
    %549 = tpu.memref_slice %arg16[%c54_i32, %c0_i32_433] : memref<64x128xf32, #tpu.memory_space<vmem>> -> memref<1x128xf32, #tpu.memory_space<vmem>>
    %550 = tpu.memref_slice %arg17[%c1_i32_431] : memref<2x!tpu.dma_semaphore, #tpu.memory_space<semaphore_mem>> -> memref<1x!tpu.dma_semaphore, #tpu.memory_space<semaphore_mem>>
    %551 = tpu.memref_squeeze %550 : memref<1x!tpu.dma_semaphore, #tpu.memory_space<semaphore_mem>> -> memref<!tpu.dma_semaphore, #tpu.memory_space<semaphore_mem>>
    tpu.enqueue_dma source(%548 : memref<1x128xf32, #tpu.memory_space<any>>) target(%549 : memref<1x128xf32, #tpu.memory_space<vmem>>) target_semaphore(%551 : memref<!tpu.dma_semaphore, #tpu.memory_space<semaphore_mem>>)
    %c8_i32_434 = arith.constant 8 : i32
    %552 = arith.muli %arg0, %c8_i32_434 : i32
    %c7_i32_435 = arith.constant 7 : i32
    %553 = arith.addi %552, %c7_i32_435 : i32
    %c6_436 = arith.constant 6 : index
    %554 = arith.index_cast %553 : i32 to index
    %555 = memref.load %arg2[%c6_436, %554] : memref<8x16xi32, #tpu.memory_space<smem>>
    %c0_i32_437 = arith.constant 0 : i32
    %c49_i32_438 = arith.constant 49 : i32
    %556 = arith.maxsi %c0_i32_437, %555 : i32
    %557 = arith.minsi %c49_i32_438, %556 : i32
    %c1_i32_439 = arith.constant 1 : i32
    %c0_i32_440 = arith.constant 0 : i32
    %558 = tpu.memref_slice %arg6[%557, %c0_i32_440] : memref<50x128xf32, #tpu.memory_space<any>> -> memref<1x128xf32, #tpu.memory_space<any>>
    %c55_i32 = arith.constant 55 : i32
    %c0_i32_441 = arith.constant 0 : i32
    %559 = tpu.memref_slice %arg16[%c55_i32, %c0_i32_441] : memref<64x128xf32, #tpu.memory_space<vmem>> -> memref<1x128xf32, #tpu.memory_space<vmem>>
    %560 = tpu.memref_slice %arg17[%c1_i32_439] : memref<2x!tpu.dma_semaphore, #tpu.memory_space<semaphore_mem>> -> memref<1x!tpu.dma_semaphore, #tpu.memory_space<semaphore_mem>>
    %561 = tpu.memref_squeeze %560 : memref<1x!tpu.dma_semaphore, #tpu.memory_space<semaphore_mem>> -> memref<!tpu.dma_semaphore, #tpu.memory_space<semaphore_mem>>
    tpu.enqueue_dma source(%558 : memref<1x128xf32, #tpu.memory_space<any>>) target(%559 : memref<1x128xf32, #tpu.memory_space<vmem>>) target_semaphore(%561 : memref<!tpu.dma_semaphore, #tpu.memory_space<semaphore_mem>>)
    %c8_i32_442 = arith.constant 8 : i32
    %562 = arith.muli %arg0, %c8_i32_442 : i32
    %c0_i32_443 = arith.constant 0 : i32
    %563 = arith.addi %562, %c0_i32_443 : i32
    %c7 = arith.constant 7 : index
    %564 = arith.index_cast %563 : i32 to index
    %565 = memref.load %arg2[%c7, %564] : memref<8x16xi32, #tpu.memory_space<smem>>
    %c0_i32_444 = arith.constant 0 : i32
    %c49_i32_445 = arith.constant 49 : i32
    %566 = arith.maxsi %c0_i32_444, %565 : i32
    %567 = arith.minsi %c49_i32_445, %566 : i32
    %c1_i32_446 = arith.constant 1 : i32
    %c0_i32_447 = arith.constant 0 : i32
    %568 = tpu.memref_slice %arg6[%567, %c0_i32_447] : memref<50x128xf32, #tpu.memory_space<any>> -> memref<1x128xf32, #tpu.memory_space<any>>
    %c56_i32 = arith.constant 56 : i32
    %c0_i32_448 = arith.constant 0 : i32
    %569 = tpu.memref_slice %arg16[%c56_i32, %c0_i32_448] : memref<64x128xf32, #tpu.memory_space<vmem>> -> memref<1x128xf32, #tpu.memory_space<vmem>>
    %570 = tpu.memref_slice %arg17[%c1_i32_446] : memref<2x!tpu.dma_semaphore, #tpu.memory_space<semaphore_mem>> -> memref<1x!tpu.dma_semaphore, #tpu.memory_space<semaphore_mem>>
    %571 = tpu.memref_squeeze %570 : memref<1x!tpu.dma_semaphore, #tpu.memory_space<semaphore_mem>> -> memref<!tpu.dma_semaphore, #tpu.memory_space<semaphore_mem>>
    tpu.enqueue_dma source(%568 : memref<1x128xf32, #tpu.memory_space<any>>) target(%569 : memref<1x128xf32, #tpu.memory_space<vmem>>) target_semaphore(%571 : memref<!tpu.dma_semaphore, #tpu.memory_space<semaphore_mem>>)
    %c8_i32_449 = arith.constant 8 : i32
    %572 = arith.muli %arg0, %c8_i32_449 : i32
    %c1_i32_450 = arith.constant 1 : i32
    %573 = arith.addi %572, %c1_i32_450 : i32
    %c7_451 = arith.constant 7 : index
    %574 = arith.index_cast %573 : i32 to index
    %575 = memref.load %arg2[%c7_451, %574] : memref<8x16xi32, #tpu.memory_space<smem>>
    %c0_i32_452 = arith.constant 0 : i32
    %c49_i32_453 = arith.constant 49 : i32
    %576 = arith.maxsi %c0_i32_452, %575 : i32
    %577 = arith.minsi %c49_i32_453, %576 : i32
    %c1_i32_454 = arith.constant 1 : i32
    %c0_i32_455 = arith.constant 0 : i32
    %578 = tpu.memref_slice %arg6[%577, %c0_i32_455] : memref<50x128xf32, #tpu.memory_space<any>> -> memref<1x128xf32, #tpu.memory_space<any>>
    %c57_i32 = arith.constant 57 : i32
    %c0_i32_456 = arith.constant 0 : i32
    %579 = tpu.memref_slice %arg16[%c57_i32, %c0_i32_456] : memref<64x128xf32, #tpu.memory_space<vmem>> -> memref<1x128xf32, #tpu.memory_space<vmem>>
    %580 = tpu.memref_slice %arg17[%c1_i32_454] : memref<2x!tpu.dma_semaphore, #tpu.memory_space<semaphore_mem>> -> memref<1x!tpu.dma_semaphore, #tpu.memory_space<semaphore_mem>>
    %581 = tpu.memref_squeeze %580 : memref<1x!tpu.dma_semaphore, #tpu.memory_space<semaphore_mem>> -> memref<!tpu.dma_semaphore, #tpu.memory_space<semaphore_mem>>
    tpu.enqueue_dma source(%578 : memref<1x128xf32, #tpu.memory_space<any>>) target(%579 : memref<1x128xf32, #tpu.memory_space<vmem>>) target_semaphore(%581 : memref<!tpu.dma_semaphore, #tpu.memory_space<semaphore_mem>>)
    %c8_i32_457 = arith.constant 8 : i32
    %582 = arith.muli %arg0, %c8_i32_457 : i32
    %c2_i32_458 = arith.constant 2 : i32
    %583 = arith.addi %582, %c2_i32_458 : i32
    %c7_459 = arith.constant 7 : index
    %584 = arith.index_cast %583 : i32 to index
    %585 = memref.load %arg2[%c7_459, %584] : memref<8x16xi32, #tpu.memory_space<smem>>
    %c0_i32_460 = arith.constant 0 : i32
    %c49_i32_461 = arith.constant 49 : i32
    %586 = arith.maxsi %c0_i32_460, %585 : i32
    %587 = arith.minsi %c49_i32_461, %586 : i32
    %c1_i32_462 = arith.constant 1 : i32
    %c0_i32_463 = arith.constant 0 : i32
    %588 = tpu.memref_slice %arg6[%587, %c0_i32_463] : memref<50x128xf32, #tpu.memory_space<any>> -> memref<1x128xf32, #tpu.memory_space<any>>
    %c58_i32 = arith.constant 58 : i32
    %c0_i32_464 = arith.constant 0 : i32
    %589 = tpu.memref_slice %arg16[%c58_i32, %c0_i32_464] : memref<64x128xf32, #tpu.memory_space<vmem>> -> memref<1x128xf32, #tpu.memory_space<vmem>>
    %590 = tpu.memref_slice %arg17[%c1_i32_462] : memref<2x!tpu.dma_semaphore, #tpu.memory_space<semaphore_mem>> -> memref<1x!tpu.dma_semaphore, #tpu.memory_space<semaphore_mem>>
    %591 = tpu.memref_squeeze %590 : memref<1x!tpu.dma_semaphore, #tpu.memory_space<semaphore_mem>> -> memref<!tpu.dma_semaphore, #tpu.memory_space<semaphore_mem>>
    tpu.enqueue_dma source(%588 : memref<1x128xf32, #tpu.memory_space<any>>) target(%589 : memref<1x128xf32, #tpu.memory_space<vmem>>) target_semaphore(%591 : memref<!tpu.dma_semaphore, #tpu.memory_space<semaphore_mem>>)
    %c8_i32_465 = arith.constant 8 : i32
    %592 = arith.muli %arg0, %c8_i32_465 : i32
    %c3_i32_466 = arith.constant 3 : i32
    %593 = arith.addi %592, %c3_i32_466 : i32
    %c7_467 = arith.constant 7 : index
    %594 = arith.index_cast %593 : i32 to index
    %595 = memref.load %arg2[%c7_467, %594] : memref<8x16xi32, #tpu.memory_space<smem>>
    %c0_i32_468 = arith.constant 0 : i32
    %c49_i32_469 = arith.constant 49 : i32
    %596 = arith.maxsi %c0_i32_468, %595 : i32
    %597 = arith.minsi %c49_i32_469, %596 : i32
    %c1_i32_470 = arith.constant 1 : i32
    %c0_i32_471 = arith.constant 0 : i32
    %598 = tpu.memref_slice %arg6[%597, %c0_i32_471] : memref<50x128xf32, #tpu.memory_space<any>> -> memref<1x128xf32, #tpu.memory_space<any>>
    %c59_i32 = arith.constant 59 : i32
    %c0_i32_472 = arith.constant 0 : i32
    %599 = tpu.memref_slice %arg16[%c59_i32, %c0_i32_472] : memref<64x128xf32, #tpu.memory_space<vmem>> -> memref<1x128xf32, #tpu.memory_space<vmem>>
    %600 = tpu.memref_slice %arg17[%c1_i32_470] : memref<2x!tpu.dma_semaphore, #tpu.memory_space<semaphore_mem>> -> memref<1x!tpu.dma_semaphore, #tpu.memory_space<semaphore_mem>>
    %601 = tpu.memref_squeeze %600 : memref<1x!tpu.dma_semaphore, #tpu.memory_space<semaphore_mem>> -> memref<!tpu.dma_semaphore, #tpu.memory_space<semaphore_mem>>
    tpu.enqueue_dma source(%598 : memref<1x128xf32, #tpu.memory_space<any>>) target(%599 : memref<1x128xf32, #tpu.memory_space<vmem>>) target_semaphore(%601 : memref<!tpu.dma_semaphore, #tpu.memory_space<semaphore_mem>>)
    %c8_i32_473 = arith.constant 8 : i32
    %602 = arith.muli %arg0, %c8_i32_473 : i32
    %c4_i32_474 = arith.constant 4 : i32
    %603 = arith.addi %602, %c4_i32_474 : i32
    %c7_475 = arith.constant 7 : index
    %604 = arith.index_cast %603 : i32 to index
    %605 = memref.load %arg2[%c7_475, %604] : memref<8x16xi32, #tpu.memory_space<smem>>
    %c0_i32_476 = arith.constant 0 : i32
    %c49_i32_477 = arith.constant 49 : i32
    %606 = arith.maxsi %c0_i32_476, %605 : i32
    %607 = arith.minsi %c49_i32_477, %606 : i32
    %c1_i32_478 = arith.constant 1 : i32
    %c0_i32_479 = arith.constant 0 : i32
    %608 = tpu.memref_slice %arg6[%607, %c0_i32_479] : memref<50x128xf32, #tpu.memory_space<any>> -> memref<1x128xf32, #tpu.memory_space<any>>
    %c60_i32 = arith.constant 60 : i32
    %c0_i32_480 = arith.constant 0 : i32
    %609 = tpu.memref_slice %arg16[%c60_i32, %c0_i32_480] : memref<64x128xf32, #tpu.memory_space<vmem>> -> memref<1x128xf32, #tpu.memory_space<vmem>>
    %610 = tpu.memref_slice %arg17[%c1_i32_478] : memref<2x!tpu.dma_semaphore, #tpu.memory_space<semaphore_mem>> -> memref<1x!tpu.dma_semaphore, #tpu.memory_space<semaphore_mem>>
    %611 = tpu.memref_squeeze %610 : memref<1x!tpu.dma_semaphore, #tpu.memory_space<semaphore_mem>> -> memref<!tpu.dma_semaphore, #tpu.memory_space<semaphore_mem>>
    tpu.enqueue_dma source(%608 : memref<1x128xf32, #tpu.memory_space<any>>) target(%609 : memref<1x128xf32, #tpu.memory_space<vmem>>) target_semaphore(%611 : memref<!tpu.dma_semaphore, #tpu.memory_space<semaphore_mem>>)
    %c8_i32_481 = arith.constant 8 : i32
    %612 = arith.muli %arg0, %c8_i32_481 : i32
    %c5_i32_482 = arith.constant 5 : i32
    %613 = arith.addi %612, %c5_i32_482 : i32
    %c7_483 = arith.constant 7 : index
    %614 = arith.index_cast %613 : i32 to index
    %615 = memref.load %arg2[%c7_483, %614] : memref<8x16xi32, #tpu.memory_space<smem>>
    %c0_i32_484 = arith.constant 0 : i32
    %c49_i32_485 = arith.constant 49 : i32
    %616 = arith.maxsi %c0_i32_484, %615 : i32
    %617 = arith.minsi %c49_i32_485, %616 : i32
    %c1_i32_486 = arith.constant 1 : i32
    %c0_i32_487 = arith.constant 0 : i32
    %618 = tpu.memref_slice %arg6[%617, %c0_i32_487] : memref<50x128xf32, #tpu.memory_space<any>> -> memref<1x128xf32, #tpu.memory_space<any>>
    %c61_i32 = arith.constant 61 : i32
    %c0_i32_488 = arith.constant 0 : i32
    %619 = tpu.memref_slice %arg16[%c61_i32, %c0_i32_488] : memref<64x128xf32, #tpu.memory_space<vmem>> -> memref<1x128xf32, #tpu.memory_space<vmem>>
    %620 = tpu.memref_slice %arg17[%c1_i32_486] : memref<2x!tpu.dma_semaphore, #tpu.memory_space<semaphore_mem>> -> memref<1x!tpu.dma_semaphore, #tpu.memory_space<semaphore_mem>>
    %621 = tpu.memref_squeeze %620 : memref<1x!tpu.dma_semaphore, #tpu.memory_space<semaphore_mem>> -> memref<!tpu.dma_semaphore, #tpu.memory_space<semaphore_mem>>
    tpu.enqueue_dma source(%618 : memref<1x128xf32, #tpu.memory_space<any>>) target(%619 : memref<1x128xf32, #tpu.memory_space<vmem>>) target_semaphore(%621 : memref<!tpu.dma_semaphore, #tpu.memory_space<semaphore_mem>>)
    %c8_i32_489 = arith.constant 8 : i32
    %622 = arith.muli %arg0, %c8_i32_489 : i32
    %c6_i32_490 = arith.constant 6 : i32
    %623 = arith.addi %622, %c6_i32_490 : i32
    %c7_491 = arith.constant 7 : index
    %624 = arith.index_cast %623 : i32 to index
    %625 = memref.load %arg2[%c7_491, %624] : memref<8x16xi32, #tpu.memory_space<smem>>
    %c0_i32_492 = arith.constant 0 : i32
    %c49_i32_493 = arith.constant 49 : i32
    %626 = arith.maxsi %c0_i32_492, %625 : i32
    %627 = arith.minsi %c49_i32_493, %626 : i32
    %c1_i32_494 = arith.constant 1 : i32
    %c0_i32_495 = arith.constant 0 : i32
    %628 = tpu.memref_slice %arg6[%627, %c0_i32_495] : memref<50x128xf32, #tpu.memory_space<any>> -> memref<1x128xf32, #tpu.memory_space<any>>
    %c62_i32 = arith.constant 62 : i32
    %c0_i32_496 = arith.constant 0 : i32
    %629 = tpu.memref_slice %arg16[%c62_i32, %c0_i32_496] : memref<64x128xf32, #tpu.memory_space<vmem>> -> memref<1x128xf32, #tpu.memory_space<vmem>>
    %630 = tpu.memref_slice %arg17[%c1_i32_494] : memref<2x!tpu.dma_semaphore, #tpu.memory_space<semaphore_mem>> -> memref<1x!tpu.dma_semaphore, #tpu.memory_space<semaphore_mem>>
    %631 = tpu.memref_squeeze %630 : memref<1x!tpu.dma_semaphore, #tpu.memory_space<semaphore_mem>> -> memref<!tpu.dma_semaphore, #tpu.memory_space<semaphore_mem>>
    tpu.enqueue_dma source(%628 : memref<1x128xf32, #tpu.memory_space<any>>) target(%629 : memref<1x128xf32, #tpu.memory_space<vmem>>) target_semaphore(%631 : memref<!tpu.dma_semaphore, #tpu.memory_space<semaphore_mem>>)
    %c8_i32_497 = arith.constant 8 : i32
    %632 = arith.muli %arg0, %c8_i32_497 : i32
    %c7_i32_498 = arith.constant 7 : i32
    %633 = arith.addi %632, %c7_i32_498 : i32
    %c7_499 = arith.constant 7 : index
    %634 = arith.index_cast %633 : i32 to index
    %635 = memref.load %arg2[%c7_499, %634] : memref<8x16xi32, #tpu.memory_space<smem>>
    %c0_i32_500 = arith.constant 0 : i32
    %c49_i32_501 = arith.constant 49 : i32
    %636 = arith.maxsi %c0_i32_500, %635 : i32
    %637 = arith.minsi %c49_i32_501, %636 : i32
    %c1_i32_502 = arith.constant 1 : i32
    %c0_i32_503 = arith.constant 0 : i32
    %638 = tpu.memref_slice %arg6[%637, %c0_i32_503] : memref<50x128xf32, #tpu.memory_space<any>> -> memref<1x128xf32, #tpu.memory_space<any>>
    %c63_i32 = arith.constant 63 : i32
    %c0_i32_504 = arith.constant 0 : i32
    %639 = tpu.memref_slice %arg16[%c63_i32, %c0_i32_504] : memref<64x128xf32, #tpu.memory_space<vmem>> -> memref<1x128xf32, #tpu.memory_space<vmem>>
    %640 = tpu.memref_slice %arg17[%c1_i32_502] : memref<2x!tpu.dma_semaphore, #tpu.memory_space<semaphore_mem>> -> memref<1x!tpu.dma_semaphore, #tpu.memory_space<semaphore_mem>>
    %641 = tpu.memref_squeeze %640 : memref<1x!tpu.dma_semaphore, #tpu.memory_space<semaphore_mem>> -> memref<!tpu.dma_semaphore, #tpu.memory_space<semaphore_mem>>
    tpu.enqueue_dma source(%638 : memref<1x128xf32, #tpu.memory_space<any>>) target(%639 : memref<1x128xf32, #tpu.memory_space<vmem>>) target_semaphore(%641 : memref<!tpu.dma_semaphore, #tpu.memory_space<semaphore_mem>>)
    %c1_i32_505 = arith.constant 1 : i32
    %c0_i32_506 = arith.constant 0 : i32
    %642 = tpu.memref_slice %arg6[%7, %c0_i32_506] : memref<50x128xf32, #tpu.memory_space<any>> -> memref<1x128xf32, #tpu.memory_space<any>>
    %c0_i32_507 = arith.constant 0 : i32
    %c0_i32_508 = arith.constant 0 : i32
    %643 = tpu.memref_slice %arg16[%c0_i32_507, %c0_i32_508] : memref<64x128xf32, #tpu.memory_space<vmem>> -> memref<1x128xf32, #tpu.memory_space<vmem>>
    %644 = tpu.memref_slice %arg17[%c1_i32_505] : memref<2x!tpu.dma_semaphore, #tpu.memory_space<semaphore_mem>> -> memref<1x!tpu.dma_semaphore, #tpu.memory_space<semaphore_mem>>
    %645 = tpu.memref_squeeze %644 : memref<1x!tpu.dma_semaphore, #tpu.memory_space<semaphore_mem>> -> memref<!tpu.dma_semaphore, #tpu.memory_space<semaphore_mem>>
    tpu.wait_dma2 semaphore(%645 : memref<!tpu.dma_semaphore, #tpu.memory_space<semaphore_mem>>) src(%642 : memref<1x128xf32, #tpu.memory_space<any>>) dst(%643 : memref<1x128xf32, #tpu.memory_space<vmem>>)
    %c1_i32_509 = arith.constant 1 : i32
    %c0_i32_510 = arith.constant 0 : i32
    %646 = tpu.memref_slice %arg6[%17, %c0_i32_510] : memref<50x128xf32, #tpu.memory_space<any>> -> memref<1x128xf32, #tpu.memory_space<any>>
    %c1_i32_511 = arith.constant 1 : i32
    %c0_i32_512 = arith.constant 0 : i32
    %647 = tpu.memref_slice %arg16[%c1_i32_511, %c0_i32_512] : memref<64x128xf32, #tpu.memory_space<vmem>> -> memref<1x128xf32, #tpu.memory_space<vmem>>
    %648 = tpu.memref_slice %arg17[%c1_i32_509] : memref<2x!tpu.dma_semaphore, #tpu.memory_space<semaphore_mem>> -> memref<1x!tpu.dma_semaphore, #tpu.memory_space<semaphore_mem>>
    %649 = tpu.memref_squeeze %648 : memref<1x!tpu.dma_semaphore, #tpu.memory_space<semaphore_mem>> -> memref<!tpu.dma_semaphore, #tpu.memory_space<semaphore_mem>>
    tpu.wait_dma2 semaphore(%649 : memref<!tpu.dma_semaphore, #tpu.memory_space<semaphore_mem>>) src(%646 : memref<1x128xf32, #tpu.memory_space<any>>) dst(%647 : memref<1x128xf32, #tpu.memory_space<vmem>>)
    %c1_i32_513 = arith.constant 1 : i32
    %c0_i32_514 = arith.constant 0 : i32
    %650 = tpu.memref_slice %arg6[%27, %c0_i32_514] : memref<50x128xf32, #tpu.memory_space<any>> -> memref<1x128xf32, #tpu.memory_space<any>>
    %c2_i32_515 = arith.constant 2 : i32
    %c0_i32_516 = arith.constant 0 : i32
    %651 = tpu.memref_slice %arg16[%c2_i32_515, %c0_i32_516] : memref<64x128xf32, #tpu.memory_space<vmem>> -> memref<1x128xf32, #tpu.memory_space<vmem>>
    %652 = tpu.memref_slice %arg17[%c1_i32_513] : memref<2x!tpu.dma_semaphore, #tpu.memory_space<semaphore_mem>> -> memref<1x!tpu.dma_semaphore, #tpu.memory_space<semaphore_mem>>
    %653 = tpu.memref_squeeze %652 : memref<1x!tpu.dma_semaphore, #tpu.memory_space<semaphore_mem>> -> memref<!tpu.dma_semaphore, #tpu.memory_space<semaphore_mem>>
    tpu.wait_dma2 semaphore(%653 : memref<!tpu.dma_semaphore, #tpu.memory_space<semaphore_mem>>) src(%650 : memref<1x128xf32, #tpu.memory_space<any>>) dst(%651 : memref<1x128xf32, #tpu.memory_space<vmem>>)
    %c1_i32_517 = arith.constant 1 : i32
    %c0_i32_518 = arith.constant 0 : i32
    %654 = tpu.memref_slice %arg6[%37, %c0_i32_518] : memref<50x128xf32, #tpu.memory_space<any>> -> memref<1x128xf32, #tpu.memory_space<any>>
    %c3_i32_519 = arith.constant 3 : i32
    %c0_i32_520 = arith.constant 0 : i32
    %655 = tpu.memref_slice %arg16[%c3_i32_519, %c0_i32_520] : memref<64x128xf32, #tpu.memory_space<vmem>> -> memref<1x128xf32, #tpu.memory_space<vmem>>
    %656 = tpu.memref_slice %arg17[%c1_i32_517] : memref<2x!tpu.dma_semaphore, #tpu.memory_space<semaphore_mem>> -> memref<1x!tpu.dma_semaphore, #tpu.memory_space<semaphore_mem>>
    %657 = tpu.memref_squeeze %656 : memref<1x!tpu.dma_semaphore, #tpu.memory_space<semaphore_mem>> -> memref<!tpu.dma_semaphore, #tpu.memory_space<semaphore_mem>>
    tpu.wait_dma2 semaphore(%657 : memref<!tpu.dma_semaphore, #tpu.memory_space<semaphore_mem>>) src(%654 : memref<1x128xf32, #tpu.memory_space<any>>) dst(%655 : memref<1x128xf32, #tpu.memory_space<vmem>>)
    %c1_i32_521 = arith.constant 1 : i32
    %c0_i32_522 = arith.constant 0 : i32
    %658 = tpu.memref_slice %arg6[%47, %c0_i32_522] : memref<50x128xf32, #tpu.memory_space<any>> -> memref<1x128xf32, #tpu.memory_space<any>>
    %c4_i32_523 = arith.constant 4 : i32
    %c0_i32_524 = arith.constant 0 : i32
    %659 = tpu.memref_slice %arg16[%c4_i32_523, %c0_i32_524] : memref<64x128xf32, #tpu.memory_space<vmem>> -> memref<1x128xf32, #tpu.memory_space<vmem>>
    %660 = tpu.memref_slice %arg17[%c1_i32_521] : memref<2x!tpu.dma_semaphore, #tpu.memory_space<semaphore_mem>> -> memref<1x!tpu.dma_semaphore, #tpu.memory_space<semaphore_mem>>
    %661 = tpu.memref_squeeze %660 : memref<1x!tpu.dma_semaphore, #tpu.memory_space<semaphore_mem>> -> memref<!tpu.dma_semaphore, #tpu.memory_space<semaphore_mem>>
    tpu.wait_dma2 semaphore(%661 : memref<!tpu.dma_semaphore, #tpu.memory_space<semaphore_mem>>) src(%658 : memref<1x128xf32, #tpu.memory_space<any>>) dst(%659 : memref<1x128xf32, #tpu.memory_space<vmem>>)
    %c1_i32_525 = arith.constant 1 : i32
    %c0_i32_526 = arith.constant 0 : i32
    %662 = tpu.memref_slice %arg6[%57, %c0_i32_526] : memref<50x128xf32, #tpu.memory_space<any>> -> memref<1x128xf32, #tpu.memory_space<any>>
    %c5_i32_527 = arith.constant 5 : i32
    %c0_i32_528 = arith.constant 0 : i32
    %663 = tpu.memref_slice %arg16[%c5_i32_527, %c0_i32_528] : memref<64x128xf32, #tpu.memory_space<vmem>> -> memref<1x128xf32, #tpu.memory_space<vmem>>
    %664 = tpu.memref_slice %arg17[%c1_i32_525] : memref<2x!tpu.dma_semaphore, #tpu.memory_space<semaphore_mem>> -> memref<1x!tpu.dma_semaphore, #tpu.memory_space<semaphore_mem>>
    %665 = tpu.memref_squeeze %664 : memref<1x!tpu.dma_semaphore, #tpu.memory_space<semaphore_mem>> -> memref<!tpu.dma_semaphore, #tpu.memory_space<semaphore_mem>>
    tpu.wait_dma2 semaphore(%665 : memref<!tpu.dma_semaphore, #tpu.memory_space<semaphore_mem>>) src(%662 : memref<1x128xf32, #tpu.memory_space<any>>) dst(%663 : memref<1x128xf32, #tpu.memory_space<vmem>>)
    %c1_i32_529 = arith.constant 1 : i32
    %c0_i32_530 = arith.constant 0 : i32
    %666 = tpu.memref_slice %arg6[%67, %c0_i32_530] : memref<50x128xf32, #tpu.memory_space<any>> -> memref<1x128xf32, #tpu.memory_space<any>>
    %c6_i32_531 = arith.constant 6 : i32
    %c0_i32_532 = arith.constant 0 : i32
    %667 = tpu.memref_slice %arg16[%c6_i32_531, %c0_i32_532] : memref<64x128xf32, #tpu.memory_space<vmem>> -> memref<1x128xf32, #tpu.memory_space<vmem>>
    %668 = tpu.memref_slice %arg17[%c1_i32_529] : memref<2x!tpu.dma_semaphore, #tpu.memory_space<semaphore_mem>> -> memref<1x!tpu.dma_semaphore, #tpu.memory_space<semaphore_mem>>
    %669 = tpu.memref_squeeze %668 : memref<1x!tpu.dma_semaphore, #tpu.memory_space<semaphore_mem>> -> memref<!tpu.dma_semaphore, #tpu.memory_space<semaphore_mem>>
    tpu.wait_dma2 semaphore(%669 : memref<!tpu.dma_semaphore, #tpu.memory_space<semaphore_mem>>) src(%666 : memref<1x128xf32, #tpu.memory_space<any>>) dst(%667 : memref<1x128xf32, #tpu.memory_space<vmem>>)
    %c1_i32_533 = arith.constant 1 : i32
    %c0_i32_534 = arith.constant 0 : i32
    %670 = tpu.memref_slice %arg6[%77, %c0_i32_534] : memref<50x128xf32, #tpu.memory_space<any>> -> memref<1x128xf32, #tpu.memory_space<any>>
    %c7_i32_535 = arith.constant 7 : i32
    %c0_i32_536 = arith.constant 0 : i32
    %671 = tpu.memref_slice %arg16[%c7_i32_535, %c0_i32_536] : memref<64x128xf32, #tpu.memory_space<vmem>> -> memref<1x128xf32, #tpu.memory_space<vmem>>
    %672 = tpu.memref_slice %arg17[%c1_i32_533] : memref<2x!tpu.dma_semaphore, #tpu.memory_space<semaphore_mem>> -> memref<1x!tpu.dma_semaphore, #tpu.memory_space<semaphore_mem>>
    %673 = tpu.memref_squeeze %672 : memref<1x!tpu.dma_semaphore, #tpu.memory_space<semaphore_mem>> -> memref<!tpu.dma_semaphore, #tpu.memory_space<semaphore_mem>>
    tpu.wait_dma2 semaphore(%673 : memref<!tpu.dma_semaphore, #tpu.memory_space<semaphore_mem>>) src(%670 : memref<1x128xf32, #tpu.memory_space<any>>) dst(%671 : memref<1x128xf32, #tpu.memory_space<vmem>>)
    %c1_i32_537 = arith.constant 1 : i32
    %c0_i32_538 = arith.constant 0 : i32
    %674 = tpu.memref_slice %arg6[%87, %c0_i32_538] : memref<50x128xf32, #tpu.memory_space<any>> -> memref<1x128xf32, #tpu.memory_space<any>>
    %c8_i32_539 = arith.constant 8 : i32
    %c0_i32_540 = arith.constant 0 : i32
    %675 = tpu.memref_slice %arg16[%c8_i32_539, %c0_i32_540] : memref<64x128xf32, #tpu.memory_space<vmem>> -> memref<1x128xf32, #tpu.memory_space<vmem>>
    %676 = tpu.memref_slice %arg17[%c1_i32_537] : memref<2x!tpu.dma_semaphore, #tpu.memory_space<semaphore_mem>> -> memref<1x!tpu.dma_semaphore, #tpu.memory_space<semaphore_mem>>
    %677 = tpu.memref_squeeze %676 : memref<1x!tpu.dma_semaphore, #tpu.memory_space<semaphore_mem>> -> memref<!tpu.dma_semaphore, #tpu.memory_space<semaphore_mem>>
    tpu.wait_dma2 semaphore(%677 : memref<!tpu.dma_semaphore, #tpu.memory_space<semaphore_mem>>) src(%674 : memref<1x128xf32, #tpu.memory_space<any>>) dst(%675 : memref<1x128xf32, #tpu.memory_space<vmem>>)
    %c1_i32_541 = arith.constant 1 : i32
    %c0_i32_542 = arith.constant 0 : i32
    %678 = tpu.memref_slice %arg6[%97, %c0_i32_542] : memref<50x128xf32, #tpu.memory_space<any>> -> memref<1x128xf32, #tpu.memory_space<any>>
    %c9_i32_543 = arith.constant 9 : i32
    %c0_i32_544 = arith.constant 0 : i32
    %679 = tpu.memref_slice %arg16[%c9_i32_543, %c0_i32_544] : memref<64x128xf32, #tpu.memory_space<vmem>> -> memref<1x128xf32, #tpu.memory_space<vmem>>
    %680 = tpu.memref_slice %arg17[%c1_i32_541] : memref<2x!tpu.dma_semaphore, #tpu.memory_space<semaphore_mem>> -> memref<1x!tpu.dma_semaphore, #tpu.memory_space<semaphore_mem>>
    %681 = tpu.memref_squeeze %680 : memref<1x!tpu.dma_semaphore, #tpu.memory_space<semaphore_mem>> -> memref<!tpu.dma_semaphore, #tpu.memory_space<semaphore_mem>>
    tpu.wait_dma2 semaphore(%681 : memref<!tpu.dma_semaphore, #tpu.memory_space<semaphore_mem>>) src(%678 : memref<1x128xf32, #tpu.memory_space<any>>) dst(%679 : memref<1x128xf32, #tpu.memory_space<vmem>>)
    %c1_i32_545 = arith.constant 1 : i32
    %c0_i32_546 = arith.constant 0 : i32
    %682 = tpu.memref_slice %arg6[%107, %c0_i32_546] : memref<50x128xf32, #tpu.memory_space<any>> -> memref<1x128xf32, #tpu.memory_space<any>>
    %c10_i32_547 = arith.constant 10 : i32
    %c0_i32_548 = arith.constant 0 : i32
    %683 = tpu.memref_slice %arg16[%c10_i32_547, %c0_i32_548] : memref<64x128xf32, #tpu.memory_space<vmem>> -> memref<1x128xf32, #tpu.memory_space<vmem>>
    %684 = tpu.memref_slice %arg17[%c1_i32_545] : memref<2x!tpu.dma_semaphore, #tpu.memory_space<semaphore_mem>> -> memref<1x!tpu.dma_semaphore, #tpu.memory_space<semaphore_mem>>
    %685 = tpu.memref_squeeze %684 : memref<1x!tpu.dma_semaphore, #tpu.memory_space<semaphore_mem>> -> memref<!tpu.dma_semaphore, #tpu.memory_space<semaphore_mem>>
    tpu.wait_dma2 semaphore(%685 : memref<!tpu.dma_semaphore, #tpu.memory_space<semaphore_mem>>) src(%682 : memref<1x128xf32, #tpu.memory_space<any>>) dst(%683 : memref<1x128xf32, #tpu.memory_space<vmem>>)
    %c1_i32_549 = arith.constant 1 : i32
    %c0_i32_550 = arith.constant 0 : i32
    %686 = tpu.memref_slice %arg6[%117, %c0_i32_550] : memref<50x128xf32, #tpu.memory_space<any>> -> memref<1x128xf32, #tpu.memory_space<any>>
    %c11_i32_551 = arith.constant 11 : i32
    %c0_i32_552 = arith.constant 0 : i32
    %687 = tpu.memref_slice %arg16[%c11_i32_551, %c0_i32_552] : memref<64x128xf32, #tpu.memory_space<vmem>> -> memref<1x128xf32, #tpu.memory_space<vmem>>
    %688 = tpu.memref_slice %arg17[%c1_i32_549] : memref<2x!tpu.dma_semaphore, #tpu.memory_space<semaphore_mem>> -> memref<1x!tpu.dma_semaphore, #tpu.memory_space<semaphore_mem>>
    %689 = tpu.memref_squeeze %688 : memref<1x!tpu.dma_semaphore, #tpu.memory_space<semaphore_mem>> -> memref<!tpu.dma_semaphore, #tpu.memory_space<semaphore_mem>>
    tpu.wait_dma2 semaphore(%689 : memref<!tpu.dma_semaphore, #tpu.memory_space<semaphore_mem>>) src(%686 : memref<1x128xf32, #tpu.memory_space<any>>) dst(%687 : memref<1x128xf32, #tpu.memory_space<vmem>>)
    %c1_i32_553 = arith.constant 1 : i32
    %c0_i32_554 = arith.constant 0 : i32
    %690 = tpu.memref_slice %arg6[%127, %c0_i32_554] : memref<50x128xf32, #tpu.memory_space<any>> -> memref<1x128xf32, #tpu.memory_space<any>>
    %c12_i32_555 = arith.constant 12 : i32
    %c0_i32_556 = arith.constant 0 : i32
    %691 = tpu.memref_slice %arg16[%c12_i32_555, %c0_i32_556] : memref<64x128xf32, #tpu.memory_space<vmem>> -> memref<1x128xf32, #tpu.memory_space<vmem>>
    %692 = tpu.memref_slice %arg17[%c1_i32_553] : memref<2x!tpu.dma_semaphore, #tpu.memory_space<semaphore_mem>> -> memref<1x!tpu.dma_semaphore, #tpu.memory_space<semaphore_mem>>
    %693 = tpu.memref_squeeze %692 : memref<1x!tpu.dma_semaphore, #tpu.memory_space<semaphore_mem>> -> memref<!tpu.dma_semaphore, #tpu.memory_space<semaphore_mem>>
    tpu.wait_dma2 semaphore(%693 : memref<!tpu.dma_semaphore, #tpu.memory_space<semaphore_mem>>) src(%690 : memref<1x128xf32, #tpu.memory_space<any>>) dst(%691 : memref<1x128xf32, #tpu.memory_space<vmem>>)
    %c1_i32_557 = arith.constant 1 : i32
    %c0_i32_558 = arith.constant 0 : i32
    %694 = tpu.memref_slice %arg6[%137, %c0_i32_558] : memref<50x128xf32, #tpu.memory_space<any>> -> memref<1x128xf32, #tpu.memory_space<any>>
    %c13_i32_559 = arith.constant 13 : i32
    %c0_i32_560 = arith.constant 0 : i32
    %695 = tpu.memref_slice %arg16[%c13_i32_559, %c0_i32_560] : memref<64x128xf32, #tpu.memory_space<vmem>> -> memref<1x128xf32, #tpu.memory_space<vmem>>
    %696 = tpu.memref_slice %arg17[%c1_i32_557] : memref<2x!tpu.dma_semaphore, #tpu.memory_space<semaphore_mem>> -> memref<1x!tpu.dma_semaphore, #tpu.memory_space<semaphore_mem>>
    %697 = tpu.memref_squeeze %696 : memref<1x!tpu.dma_semaphore, #tpu.memory_space<semaphore_mem>> -> memref<!tpu.dma_semaphore, #tpu.memory_space<semaphore_mem>>
    tpu.wait_dma2 semaphore(%697 : memref<!tpu.dma_semaphore, #tpu.memory_space<semaphore_mem>>) src(%694 : memref<1x128xf32, #tpu.memory_space<any>>) dst(%695 : memref<1x128xf32, #tpu.memory_space<vmem>>)
    %c1_i32_561 = arith.constant 1 : i32
    %c0_i32_562 = arith.constant 0 : i32
    %698 = tpu.memref_slice %arg6[%147, %c0_i32_562] : memref<50x128xf32, #tpu.memory_space<any>> -> memref<1x128xf32, #tpu.memory_space<any>>
    %c14_i32_563 = arith.constant 14 : i32
    %c0_i32_564 = arith.constant 0 : i32
    %699 = tpu.memref_slice %arg16[%c14_i32_563, %c0_i32_564] : memref<64x128xf32, #tpu.memory_space<vmem>> -> memref<1x128xf32, #tpu.memory_space<vmem>>
    %700 = tpu.memref_slice %arg17[%c1_i32_561] : memref<2x!tpu.dma_semaphore, #tpu.memory_space<semaphore_mem>> -> memref<1x!tpu.dma_semaphore, #tpu.memory_space<semaphore_mem>>
    %701 = tpu.memref_squeeze %700 : memref<1x!tpu.dma_semaphore, #tpu.memory_space<semaphore_mem>> -> memref<!tpu.dma_semaphore, #tpu.memory_space<semaphore_mem>>
    tpu.wait_dma2 semaphore(%701 : memref<!tpu.dma_semaphore, #tpu.memory_space<semaphore_mem>>) src(%698 : memref<1x128xf32, #tpu.memory_space<any>>) dst(%699 : memref<1x128xf32, #tpu.memory_space<vmem>>)
    %c1_i32_565 = arith.constant 1 : i32
    %c0_i32_566 = arith.constant 0 : i32
    %702 = tpu.memref_slice %arg6[%157, %c0_i32_566] : memref<50x128xf32, #tpu.memory_space<any>> -> memref<1x128xf32, #tpu.memory_space<any>>
    %c15_i32_567 = arith.constant 15 : i32
    %c0_i32_568 = arith.constant 0 : i32
    %703 = tpu.memref_slice %arg16[%c15_i32_567, %c0_i32_568] : memref<64x128xf32, #tpu.memory_space<vmem>> -> memref<1x128xf32, #tpu.memory_space<vmem>>
    %704 = tpu.memref_slice %arg17[%c1_i32_565] : memref<2x!tpu.dma_semaphore, #tpu.memory_space<semaphore_mem>> -> memref<1x!tpu.dma_semaphore, #tpu.memory_space<semaphore_mem>>
    %705 = tpu.memref_squeeze %704 : memref<1x!tpu.dma_semaphore, #tpu.memory_space<semaphore_mem>> -> memref<!tpu.dma_semaphore, #tpu.memory_space<semaphore_mem>>
    tpu.wait_dma2 semaphore(%705 : memref<!tpu.dma_semaphore, #tpu.memory_space<semaphore_mem>>) src(%702 : memref<1x128xf32, #tpu.memory_space<any>>) dst(%703 : memref<1x128xf32, #tpu.memory_space<vmem>>)
    %c1_i32_569 = arith.constant 1 : i32
    %c0_i32_570 = arith.constant 0 : i32
    %706 = tpu.memref_slice %arg6[%167, %c0_i32_570] : memref<50x128xf32, #tpu.memory_space<any>> -> memref<1x128xf32, #tpu.memory_space<any>>
    %c16_i32_571 = arith.constant 16 : i32
    %c0_i32_572 = arith.constant 0 : i32
    %707 = tpu.memref_slice %arg16[%c16_i32_571, %c0_i32_572] : memref<64x128xf32, #tpu.memory_space<vmem>> -> memref<1x128xf32, #tpu.memory_space<vmem>>
    %708 = tpu.memref_slice %arg17[%c1_i32_569] : memref<2x!tpu.dma_semaphore, #tpu.memory_space<semaphore_mem>> -> memref<1x!tpu.dma_semaphore, #tpu.memory_space<semaphore_mem>>
    %709 = tpu.memref_squeeze %708 : memref<1x!tpu.dma_semaphore, #tpu.memory_space<semaphore_mem>> -> memref<!tpu.dma_semaphore, #tpu.memory_space<semaphore_mem>>
    tpu.wait_dma2 semaphore(%709 : memref<!tpu.dma_semaphore, #tpu.memory_space<semaphore_mem>>) src(%706 : memref<1x128xf32, #tpu.memory_space<any>>) dst(%707 : memref<1x128xf32, #tpu.memory_space<vmem>>)
    %c1_i32_573 = arith.constant 1 : i32
    %c0_i32_574 = arith.constant 0 : i32
    %710 = tpu.memref_slice %arg6[%177, %c0_i32_574] : memref<50x128xf32, #tpu.memory_space<any>> -> memref<1x128xf32, #tpu.memory_space<any>>
    %c17_i32_575 = arith.constant 17 : i32
    %c0_i32_576 = arith.constant 0 : i32
    %711 = tpu.memref_slice %arg16[%c17_i32_575, %c0_i32_576] : memref<64x128xf32, #tpu.memory_space<vmem>> -> memref<1x128xf32, #tpu.memory_space<vmem>>
    %712 = tpu.memref_slice %arg17[%c1_i32_573] : memref<2x!tpu.dma_semaphore, #tpu.memory_space<semaphore_mem>> -> memref<1x!tpu.dma_semaphore, #tpu.memory_space<semaphore_mem>>
    %713 = tpu.memref_squeeze %712 : memref<1x!tpu.dma_semaphore, #tpu.memory_space<semaphore_mem>> -> memref<!tpu.dma_semaphore, #tpu.memory_space<semaphore_mem>>
    tpu.wait_dma2 semaphore(%713 : memref<!tpu.dma_semaphore, #tpu.memory_space<semaphore_mem>>) src(%710 : memref<1x128xf32, #tpu.memory_space<any>>) dst(%711 : memref<1x128xf32, #tpu.memory_space<vmem>>)
    %c1_i32_577 = arith.constant 1 : i32
    %c0_i32_578 = arith.constant 0 : i32
    %714 = tpu.memref_slice %arg6[%187, %c0_i32_578] : memref<50x128xf32, #tpu.memory_space<any>> -> memref<1x128xf32, #tpu.memory_space<any>>
    %c18_i32_579 = arith.constant 18 : i32
    %c0_i32_580 = arith.constant 0 : i32
    %715 = tpu.memref_slice %arg16[%c18_i32_579, %c0_i32_580] : memref<64x128xf32, #tpu.memory_space<vmem>> -> memref<1x128xf32, #tpu.memory_space<vmem>>
    %716 = tpu.memref_slice %arg17[%c1_i32_577] : memref<2x!tpu.dma_semaphore, #tpu.memory_space<semaphore_mem>> -> memref<1x!tpu.dma_semaphore, #tpu.memory_space<semaphore_mem>>
    %717 = tpu.memref_squeeze %716 : memref<1x!tpu.dma_semaphore, #tpu.memory_space<semaphore_mem>> -> memref<!tpu.dma_semaphore, #tpu.memory_space<semaphore_mem>>
    tpu.wait_dma2 semaphore(%717 : memref<!tpu.dma_semaphore, #tpu.memory_space<semaphore_mem>>) src(%714 : memref<1x128xf32, #tpu.memory_space<any>>) dst(%715 : memref<1x128xf32, #tpu.memory_space<vmem>>)
    %c1_i32_581 = arith.constant 1 : i32
    %c0_i32_582 = arith.constant 0 : i32
    %718 = tpu.memref_slice %arg6[%197, %c0_i32_582] : memref<50x128xf32, #tpu.memory_space<any>> -> memref<1x128xf32, #tpu.memory_space<any>>
    %c19_i32_583 = arith.constant 19 : i32
    %c0_i32_584 = arith.constant 0 : i32
    %719 = tpu.memref_slice %arg16[%c19_i32_583, %c0_i32_584] : memref<64x128xf32, #tpu.memory_space<vmem>> -> memref<1x128xf32, #tpu.memory_space<vmem>>
    %720 = tpu.memref_slice %arg17[%c1_i32_581] : memref<2x!tpu.dma_semaphore, #tpu.memory_space<semaphore_mem>> -> memref<1x!tpu.dma_semaphore, #tpu.memory_space<semaphore_mem>>
    %721 = tpu.memref_squeeze %720 : memref<1x!tpu.dma_semaphore, #tpu.memory_space<semaphore_mem>> -> memref<!tpu.dma_semaphore, #tpu.memory_space<semaphore_mem>>
    tpu.wait_dma2 semaphore(%721 : memref<!tpu.dma_semaphore, #tpu.memory_space<semaphore_mem>>) src(%718 : memref<1x128xf32, #tpu.memory_space<any>>) dst(%719 : memref<1x128xf32, #tpu.memory_space<vmem>>)
    %c1_i32_585 = arith.constant 1 : i32
    %c0_i32_586 = arith.constant 0 : i32
    %722 = tpu.memref_slice %arg6[%207, %c0_i32_586] : memref<50x128xf32, #tpu.memory_space<any>> -> memref<1x128xf32, #tpu.memory_space<any>>
    %c20_i32_587 = arith.constant 20 : i32
    %c0_i32_588 = arith.constant 0 : i32
    %723 = tpu.memref_slice %arg16[%c20_i32_587, %c0_i32_588] : memref<64x128xf32, #tpu.memory_space<vmem>> -> memref<1x128xf32, #tpu.memory_space<vmem>>
    %724 = tpu.memref_slice %arg17[%c1_i32_585] : memref<2x!tpu.dma_semaphore, #tpu.memory_space<semaphore_mem>> -> memref<1x!tpu.dma_semaphore, #tpu.memory_space<semaphore_mem>>
    %725 = tpu.memref_squeeze %724 : memref<1x!tpu.dma_semaphore, #tpu.memory_space<semaphore_mem>> -> memref<!tpu.dma_semaphore, #tpu.memory_space<semaphore_mem>>
    tpu.wait_dma2 semaphore(%725 : memref<!tpu.dma_semaphore, #tpu.memory_space<semaphore_mem>>) src(%722 : memref<1x128xf32, #tpu.memory_space<any>>) dst(%723 : memref<1x128xf32, #tpu.memory_space<vmem>>)
    %c1_i32_589 = arith.constant 1 : i32
    %c0_i32_590 = arith.constant 0 : i32
    %726 = tpu.memref_slice %arg6[%217, %c0_i32_590] : memref<50x128xf32, #tpu.memory_space<any>> -> memref<1x128xf32, #tpu.memory_space<any>>
    %c21_i32_591 = arith.constant 21 : i32
    %c0_i32_592 = arith.constant 0 : i32
    %727 = tpu.memref_slice %arg16[%c21_i32_591, %c0_i32_592] : memref<64x128xf32, #tpu.memory_space<vmem>> -> memref<1x128xf32, #tpu.memory_space<vmem>>
    %728 = tpu.memref_slice %arg17[%c1_i32_589] : memref<2x!tpu.dma_semaphore, #tpu.memory_space<semaphore_mem>> -> memref<1x!tpu.dma_semaphore, #tpu.memory_space<semaphore_mem>>
    %729 = tpu.memref_squeeze %728 : memref<1x!tpu.dma_semaphore, #tpu.memory_space<semaphore_mem>> -> memref<!tpu.dma_semaphore, #tpu.memory_space<semaphore_mem>>
    tpu.wait_dma2 semaphore(%729 : memref<!tpu.dma_semaphore, #tpu.memory_space<semaphore_mem>>) src(%726 : memref<1x128xf32, #tpu.memory_space<any>>) dst(%727 : memref<1x128xf32, #tpu.memory_space<vmem>>)
    %c1_i32_593 = arith.constant 1 : i32
    %c0_i32_594 = arith.constant 0 : i32
    %730 = tpu.memref_slice %arg6[%227, %c0_i32_594] : memref<50x128xf32, #tpu.memory_space<any>> -> memref<1x128xf32, #tpu.memory_space<any>>
    %c22_i32_595 = arith.constant 22 : i32
    %c0_i32_596 = arith.constant 0 : i32
    %731 = tpu.memref_slice %arg16[%c22_i32_595, %c0_i32_596] : memref<64x128xf32, #tpu.memory_space<vmem>> -> memref<1x128xf32, #tpu.memory_space<vmem>>
    %732 = tpu.memref_slice %arg17[%c1_i32_593] : memref<2x!tpu.dma_semaphore, #tpu.memory_space<semaphore_mem>> -> memref<1x!tpu.dma_semaphore, #tpu.memory_space<semaphore_mem>>
    %733 = tpu.memref_squeeze %732 : memref<1x!tpu.dma_semaphore, #tpu.memory_space<semaphore_mem>> -> memref<!tpu.dma_semaphore, #tpu.memory_space<semaphore_mem>>
    tpu.wait_dma2 semaphore(%733 : memref<!tpu.dma_semaphore, #tpu.memory_space<semaphore_mem>>) src(%730 : memref<1x128xf32, #tpu.memory_space<any>>) dst(%731 : memref<1x128xf32, #tpu.memory_space<vmem>>)
    %c1_i32_597 = arith.constant 1 : i32
    %c0_i32_598 = arith.constant 0 : i32
    %734 = tpu.memref_slice %arg6[%237, %c0_i32_598] : memref<50x128xf32, #tpu.memory_space<any>> -> memref<1x128xf32, #tpu.memory_space<any>>
    %c23_i32_599 = arith.constant 23 : i32
    %c0_i32_600 = arith.constant 0 : i32
    %735 = tpu.memref_slice %arg16[%c23_i32_599, %c0_i32_600] : memref<64x128xf32, #tpu.memory_space<vmem>> -> memref<1x128xf32, #tpu.memory_space<vmem>>
    %736 = tpu.memref_slice %arg17[%c1_i32_597] : memref<2x!tpu.dma_semaphore, #tpu.memory_space<semaphore_mem>> -> memref<1x!tpu.dma_semaphore, #tpu.memory_space<semaphore_mem>>
    %737 = tpu.memref_squeeze %736 : memref<1x!tpu.dma_semaphore, #tpu.memory_space<semaphore_mem>> -> memref<!tpu.dma_semaphore, #tpu.memory_space<semaphore_mem>>
    tpu.wait_dma2 semaphore(%737 : memref<!tpu.dma_semaphore, #tpu.memory_space<semaphore_mem>>) src(%734 : memref<1x128xf32, #tpu.memory_space<any>>) dst(%735 : memref<1x128xf32, #tpu.memory_space<vmem>>)
    %c1_i32_601 = arith.constant 1 : i32
    %c0_i32_602 = arith.constant 0 : i32
    %738 = tpu.memref_slice %arg6[%247, %c0_i32_602] : memref<50x128xf32, #tpu.memory_space<any>> -> memref<1x128xf32, #tpu.memory_space<any>>
    %c24_i32_603 = arith.constant 24 : i32
    %c0_i32_604 = arith.constant 0 : i32
    %739 = tpu.memref_slice %arg16[%c24_i32_603, %c0_i32_604] : memref<64x128xf32, #tpu.memory_space<vmem>> -> memref<1x128xf32, #tpu.memory_space<vmem>>
    %740 = tpu.memref_slice %arg17[%c1_i32_601] : memref<2x!tpu.dma_semaphore, #tpu.memory_space<semaphore_mem>> -> memref<1x!tpu.dma_semaphore, #tpu.memory_space<semaphore_mem>>
    %741 = tpu.memref_squeeze %740 : memref<1x!tpu.dma_semaphore, #tpu.memory_space<semaphore_mem>> -> memref<!tpu.dma_semaphore, #tpu.memory_space<semaphore_mem>>
    tpu.wait_dma2 semaphore(%741 : memref<!tpu.dma_semaphore, #tpu.memory_space<semaphore_mem>>) src(%738 : memref<1x128xf32, #tpu.memory_space<any>>) dst(%739 : memref<1x128xf32, #tpu.memory_space<vmem>>)
    %c1_i32_605 = arith.constant 1 : i32
    %c0_i32_606 = arith.constant 0 : i32
    %742 = tpu.memref_slice %arg6[%257, %c0_i32_606] : memref<50x128xf32, #tpu.memory_space<any>> -> memref<1x128xf32, #tpu.memory_space<any>>
    %c25_i32_607 = arith.constant 25 : i32
    %c0_i32_608 = arith.constant 0 : i32
    %743 = tpu.memref_slice %arg16[%c25_i32_607, %c0_i32_608] : memref<64x128xf32, #tpu.memory_space<vmem>> -> memref<1x128xf32, #tpu.memory_space<vmem>>
    %744 = tpu.memref_slice %arg17[%c1_i32_605] : memref<2x!tpu.dma_semaphore, #tpu.memory_space<semaphore_mem>> -> memref<1x!tpu.dma_semaphore, #tpu.memory_space<semaphore_mem>>
    %745 = tpu.memref_squeeze %744 : memref<1x!tpu.dma_semaphore, #tpu.memory_space<semaphore_mem>> -> memref<!tpu.dma_semaphore, #tpu.memory_space<semaphore_mem>>
    tpu.wait_dma2 semaphore(%745 : memref<!tpu.dma_semaphore, #tpu.memory_space<semaphore_mem>>) src(%742 : memref<1x128xf32, #tpu.memory_space<any>>) dst(%743 : memref<1x128xf32, #tpu.memory_space<vmem>>)
    %c1_i32_609 = arith.constant 1 : i32
    %c0_i32_610 = arith.constant 0 : i32
    %746 = tpu.memref_slice %arg6[%267, %c0_i32_610] : memref<50x128xf32, #tpu.memory_space<any>> -> memref<1x128xf32, #tpu.memory_space<any>>
    %c26_i32_611 = arith.constant 26 : i32
    %c0_i32_612 = arith.constant 0 : i32
    %747 = tpu.memref_slice %arg16[%c26_i32_611, %c0_i32_612] : memref<64x128xf32, #tpu.memory_space<vmem>> -> memref<1x128xf32, #tpu.memory_space<vmem>>
    %748 = tpu.memref_slice %arg17[%c1_i32_609] : memref<2x!tpu.dma_semaphore, #tpu.memory_space<semaphore_mem>> -> memref<1x!tpu.dma_semaphore, #tpu.memory_space<semaphore_mem>>
    %749 = tpu.memref_squeeze %748 : memref<1x!tpu.dma_semaphore, #tpu.memory_space<semaphore_mem>> -> memref<!tpu.dma_semaphore, #tpu.memory_space<semaphore_mem>>
    tpu.wait_dma2 semaphore(%749 : memref<!tpu.dma_semaphore, #tpu.memory_space<semaphore_mem>>) src(%746 : memref<1x128xf32, #tpu.memory_space<any>>) dst(%747 : memref<1x128xf32, #tpu.memory_space<vmem>>)
    %c1_i32_613 = arith.constant 1 : i32
    %c0_i32_614 = arith.constant 0 : i32
    %750 = tpu.memref_slice %arg6[%277, %c0_i32_614] : memref<50x128xf32, #tpu.memory_space<any>> -> memref<1x128xf32, #tpu.memory_space<any>>
    %c27_i32_615 = arith.constant 27 : i32
    %c0_i32_616 = arith.constant 0 : i32
    %751 = tpu.memref_slice %arg16[%c27_i32_615, %c0_i32_616] : memref<64x128xf32, #tpu.memory_space<vmem>> -> memref<1x128xf32, #tpu.memory_space<vmem>>
    %752 = tpu.memref_slice %arg17[%c1_i32_613] : memref<2x!tpu.dma_semaphore, #tpu.memory_space<semaphore_mem>> -> memref<1x!tpu.dma_semaphore, #tpu.memory_space<semaphore_mem>>
    %753 = tpu.memref_squeeze %752 : memref<1x!tpu.dma_semaphore, #tpu.memory_space<semaphore_mem>> -> memref<!tpu.dma_semaphore, #tpu.memory_space<semaphore_mem>>
    tpu.wait_dma2 semaphore(%753 : memref<!tpu.dma_semaphore, #tpu.memory_space<semaphore_mem>>) src(%750 : memref<1x128xf32, #tpu.memory_space<any>>) dst(%751 : memref<1x128xf32, #tpu.memory_space<vmem>>)
    %c1_i32_617 = arith.constant 1 : i32
    %c0_i32_618 = arith.constant 0 : i32
    %754 = tpu.memref_slice %arg6[%287, %c0_i32_618] : memref<50x128xf32, #tpu.memory_space<any>> -> memref<1x128xf32, #tpu.memory_space<any>>
    %c28_i32_619 = arith.constant 28 : i32
    %c0_i32_620 = arith.constant 0 : i32
    %755 = tpu.memref_slice %arg16[%c28_i32_619, %c0_i32_620] : memref<64x128xf32, #tpu.memory_space<vmem>> -> memref<1x128xf32, #tpu.memory_space<vmem>>
    %756 = tpu.memref_slice %arg17[%c1_i32_617] : memref<2x!tpu.dma_semaphore, #tpu.memory_space<semaphore_mem>> -> memref<1x!tpu.dma_semaphore, #tpu.memory_space<semaphore_mem>>
    %757 = tpu.memref_squeeze %756 : memref<1x!tpu.dma_semaphore, #tpu.memory_space<semaphore_mem>> -> memref<!tpu.dma_semaphore, #tpu.memory_space<semaphore_mem>>
    tpu.wait_dma2 semaphore(%757 : memref<!tpu.dma_semaphore, #tpu.memory_space<semaphore_mem>>) src(%754 : memref<1x128xf32, #tpu.memory_space<any>>) dst(%755 : memref<1x128xf32, #tpu.memory_space<vmem>>)
    %c1_i32_621 = arith.constant 1 : i32
    %c0_i32_622 = arith.constant 0 : i32
    %758 = tpu.memref_slice %arg6[%297, %c0_i32_622] : memref<50x128xf32, #tpu.memory_space<any>> -> memref<1x128xf32, #tpu.memory_space<any>>
    %c29_i32_623 = arith.constant 29 : i32
    %c0_i32_624 = arith.constant 0 : i32
    %759 = tpu.memref_slice %arg16[%c29_i32_623, %c0_i32_624] : memref<64x128xf32, #tpu.memory_space<vmem>> -> memref<1x128xf32, #tpu.memory_space<vmem>>
    %760 = tpu.memref_slice %arg17[%c1_i32_621] : memref<2x!tpu.dma_semaphore, #tpu.memory_space<semaphore_mem>> -> memref<1x!tpu.dma_semaphore, #tpu.memory_space<semaphore_mem>>
    %761 = tpu.memref_squeeze %760 : memref<1x!tpu.dma_semaphore, #tpu.memory_space<semaphore_mem>> -> memref<!tpu.dma_semaphore, #tpu.memory_space<semaphore_mem>>
    tpu.wait_dma2 semaphore(%761 : memref<!tpu.dma_semaphore, #tpu.memory_space<semaphore_mem>>) src(%758 : memref<1x128xf32, #tpu.memory_space<any>>) dst(%759 : memref<1x128xf32, #tpu.memory_space<vmem>>)
    %c1_i32_625 = arith.constant 1 : i32
    %c0_i32_626 = arith.constant 0 : i32
    %762 = tpu.memref_slice %arg6[%307, %c0_i32_626] : memref<50x128xf32, #tpu.memory_space<any>> -> memref<1x128xf32, #tpu.memory_space<any>>
    %c30_i32_627 = arith.constant 30 : i32
    %c0_i32_628 = arith.constant 0 : i32
    %763 = tpu.memref_slice %arg16[%c30_i32_627, %c0_i32_628] : memref<64x128xf32, #tpu.memory_space<vmem>> -> memref<1x128xf32, #tpu.memory_space<vmem>>
    %764 = tpu.memref_slice %arg17[%c1_i32_625] : memref<2x!tpu.dma_semaphore, #tpu.memory_space<semaphore_mem>> -> memref<1x!tpu.dma_semaphore, #tpu.memory_space<semaphore_mem>>
    %765 = tpu.memref_squeeze %764 : memref<1x!tpu.dma_semaphore, #tpu.memory_space<semaphore_mem>> -> memref<!tpu.dma_semaphore, #tpu.memory_space<semaphore_mem>>
    tpu.wait_dma2 semaphore(%765 : memref<!tpu.dma_semaphore, #tpu.memory_space<semaphore_mem>>) src(%762 : memref<1x128xf32, #tpu.memory_space<any>>) dst(%763 : memref<1x128xf32, #tpu.memory_space<vmem>>)
    %c1_i32_629 = arith.constant 1 : i32
    %c0_i32_630 = arith.constant 0 : i32
    %766 = tpu.memref_slice %arg6[%317, %c0_i32_630] : memref<50x128xf32, #tpu.memory_space<any>> -> memref<1x128xf32, #tpu.memory_space<any>>
    %c31_i32_631 = arith.constant 31 : i32
    %c0_i32_632 = arith.constant 0 : i32
    %767 = tpu.memref_slice %arg16[%c31_i32_631, %c0_i32_632] : memref<64x128xf32, #tpu.memory_space<vmem>> -> memref<1x128xf32, #tpu.memory_space<vmem>>
    %768 = tpu.memref_slice %arg17[%c1_i32_629] : memref<2x!tpu.dma_semaphore, #tpu.memory_space<semaphore_mem>> -> memref<1x!tpu.dma_semaphore, #tpu.memory_space<semaphore_mem>>
    %769 = tpu.memref_squeeze %768 : memref<1x!tpu.dma_semaphore, #tpu.memory_space<semaphore_mem>> -> memref<!tpu.dma_semaphore, #tpu.memory_space<semaphore_mem>>
    tpu.wait_dma2 semaphore(%769 : memref<!tpu.dma_semaphore, #tpu.memory_space<semaphore_mem>>) src(%766 : memref<1x128xf32, #tpu.memory_space<any>>) dst(%767 : memref<1x128xf32, #tpu.memory_space<vmem>>)
    %c1_i32_633 = arith.constant 1 : i32
    %c0_i32_634 = arith.constant 0 : i32
    %770 = tpu.memref_slice %arg6[%327, %c0_i32_634] : memref<50x128xf32, #tpu.memory_space<any>> -> memref<1x128xf32, #tpu.memory_space<any>>
    %c32_i32_635 = arith.constant 32 : i32
    %c0_i32_636 = arith.constant 0 : i32
    %771 = tpu.memref_slice %arg16[%c32_i32_635, %c0_i32_636] : memref<64x128xf32, #tpu.memory_space<vmem>> -> memref<1x128xf32, #tpu.memory_space<vmem>>
    %772 = tpu.memref_slice %arg17[%c1_i32_633] : memref<2x!tpu.dma_semaphore, #tpu.memory_space<semaphore_mem>> -> memref<1x!tpu.dma_semaphore, #tpu.memory_space<semaphore_mem>>
    %773 = tpu.memref_squeeze %772 : memref<1x!tpu.dma_semaphore, #tpu.memory_space<semaphore_mem>> -> memref<!tpu.dma_semaphore, #tpu.memory_space<semaphore_mem>>
    tpu.wait_dma2 semaphore(%773 : memref<!tpu.dma_semaphore, #tpu.memory_space<semaphore_mem>>) src(%770 : memref<1x128xf32, #tpu.memory_space<any>>) dst(%771 : memref<1x128xf32, #tpu.memory_space<vmem>>)
    %c1_i32_637 = arith.constant 1 : i32
    %c0_i32_638 = arith.constant 0 : i32
    %774 = tpu.memref_slice %arg6[%337, %c0_i32_638] : memref<50x128xf32, #tpu.memory_space<any>> -> memref<1x128xf32, #tpu.memory_space<any>>
    %c33_i32_639 = arith.constant 33 : i32
    %c0_i32_640 = arith.constant 0 : i32
    %775 = tpu.memref_slice %arg16[%c33_i32_639, %c0_i32_640] : memref<64x128xf32, #tpu.memory_space<vmem>> -> memref<1x128xf32, #tpu.memory_space<vmem>>
    %776 = tpu.memref_slice %arg17[%c1_i32_637] : memref<2x!tpu.dma_semaphore, #tpu.memory_space<semaphore_mem>> -> memref<1x!tpu.dma_semaphore, #tpu.memory_space<semaphore_mem>>
    %777 = tpu.memref_squeeze %776 : memref<1x!tpu.dma_semaphore, #tpu.memory_space<semaphore_mem>> -> memref<!tpu.dma_semaphore, #tpu.memory_space<semaphore_mem>>
    tpu.wait_dma2 semaphore(%777 : memref<!tpu.dma_semaphore, #tpu.memory_space<semaphore_mem>>) src(%774 : memref<1x128xf32, #tpu.memory_space<any>>) dst(%775 : memref<1x128xf32, #tpu.memory_space<vmem>>)
    %c1_i32_641 = arith.constant 1 : i32
    %c0_i32_642 = arith.constant 0 : i32
    %778 = tpu.memref_slice %arg6[%347, %c0_i32_642] : memref<50x128xf32, #tpu.memory_space<any>> -> memref<1x128xf32, #tpu.memory_space<any>>
    %c34_i32_643 = arith.constant 34 : i32
    %c0_i32_644 = arith.constant 0 : i32
    %779 = tpu.memref_slice %arg16[%c34_i32_643, %c0_i32_644] : memref<64x128xf32, #tpu.memory_space<vmem>> -> memref<1x128xf32, #tpu.memory_space<vmem>>
    %780 = tpu.memref_slice %arg17[%c1_i32_641] : memref<2x!tpu.dma_semaphore, #tpu.memory_space<semaphore_mem>> -> memref<1x!tpu.dma_semaphore, #tpu.memory_space<semaphore_mem>>
    %781 = tpu.memref_squeeze %780 : memref<1x!tpu.dma_semaphore, #tpu.memory_space<semaphore_mem>> -> memref<!tpu.dma_semaphore, #tpu.memory_space<semaphore_mem>>
    tpu.wait_dma2 semaphore(%781 : memref<!tpu.dma_semaphore, #tpu.memory_space<semaphore_mem>>) src(%778 : memref<1x128xf32, #tpu.memory_space<any>>) dst(%779 : memref<1x128xf32, #tpu.memory_space<vmem>>)
    %c1_i32_645 = arith.constant 1 : i32
    %c0_i32_646 = arith.constant 0 : i32
    %782 = tpu.memref_slice %arg6[%357, %c0_i32_646] : memref<50x128xf32, #tpu.memory_space<any>> -> memref<1x128xf32, #tpu.memory_space<any>>
    %c35_i32_647 = arith.constant 35 : i32
    %c0_i32_648 = arith.constant 0 : i32
    %783 = tpu.memref_slice %arg16[%c35_i32_647, %c0_i32_648] : memref<64x128xf32, #tpu.memory_space<vmem>> -> memref<1x128xf32, #tpu.memory_space<vmem>>
    %784 = tpu.memref_slice %arg17[%c1_i32_645] : memref<2x!tpu.dma_semaphore, #tpu.memory_space<semaphore_mem>> -> memref<1x!tpu.dma_semaphore, #tpu.memory_space<semaphore_mem>>
    %785 = tpu.memref_squeeze %784 : memref<1x!tpu.dma_semaphore, #tpu.memory_space<semaphore_mem>> -> memref<!tpu.dma_semaphore, #tpu.memory_space<semaphore_mem>>
    tpu.wait_dma2 semaphore(%785 : memref<!tpu.dma_semaphore, #tpu.memory_space<semaphore_mem>>) src(%782 : memref<1x128xf32, #tpu.memory_space<any>>) dst(%783 : memref<1x128xf32, #tpu.memory_space<vmem>>)
    %c1_i32_649 = arith.constant 1 : i32
    %c0_i32_650 = arith.constant 0 : i32
    %786 = tpu.memref_slice %arg6[%367, %c0_i32_650] : memref<50x128xf32, #tpu.memory_space<any>> -> memref<1x128xf32, #tpu.memory_space<any>>
    %c36_i32_651 = arith.constant 36 : i32
    %c0_i32_652 = arith.constant 0 : i32
    %787 = tpu.memref_slice %arg16[%c36_i32_651, %c0_i32_652] : memref<64x128xf32, #tpu.memory_space<vmem>> -> memref<1x128xf32, #tpu.memory_space<vmem>>
    %788 = tpu.memref_slice %arg17[%c1_i32_649] : memref<2x!tpu.dma_semaphore, #tpu.memory_space<semaphore_mem>> -> memref<1x!tpu.dma_semaphore, #tpu.memory_space<semaphore_mem>>
    %789 = tpu.memref_squeeze %788 : memref<1x!tpu.dma_semaphore, #tpu.memory_space<semaphore_mem>> -> memref<!tpu.dma_semaphore, #tpu.memory_space<semaphore_mem>>
    tpu.wait_dma2 semaphore(%789 : memref<!tpu.dma_semaphore, #tpu.memory_space<semaphore_mem>>) src(%786 : memref<1x128xf32, #tpu.memory_space<any>>) dst(%787 : memref<1x128xf32, #tpu.memory_space<vmem>>)
    %c1_i32_653 = arith.constant 1 : i32
    %c0_i32_654 = arith.constant 0 : i32
    %790 = tpu.memref_slice %arg6[%377, %c0_i32_654] : memref<50x128xf32, #tpu.memory_space<any>> -> memref<1x128xf32, #tpu.memory_space<any>>
    %c37_i32_655 = arith.constant 37 : i32
    %c0_i32_656 = arith.constant 0 : i32
    %791 = tpu.memref_slice %arg16[%c37_i32_655, %c0_i32_656] : memref<64x128xf32, #tpu.memory_space<vmem>> -> memref<1x128xf32, #tpu.memory_space<vmem>>
    %792 = tpu.memref_slice %arg17[%c1_i32_653] : memref<2x!tpu.dma_semaphore, #tpu.memory_space<semaphore_mem>> -> memref<1x!tpu.dma_semaphore, #tpu.memory_space<semaphore_mem>>
    %793 = tpu.memref_squeeze %792 : memref<1x!tpu.dma_semaphore, #tpu.memory_space<semaphore_mem>> -> memref<!tpu.dma_semaphore, #tpu.memory_space<semaphore_mem>>
    tpu.wait_dma2 semaphore(%793 : memref<!tpu.dma_semaphore, #tpu.memory_space<semaphore_mem>>) src(%790 : memref<1x128xf32, #tpu.memory_space<any>>) dst(%791 : memref<1x128xf32, #tpu.memory_space<vmem>>)
    %c1_i32_657 = arith.constant 1 : i32
    %c0_i32_658 = arith.constant 0 : i32
    %794 = tpu.memref_slice %arg6[%387, %c0_i32_658] : memref<50x128xf32, #tpu.memory_space<any>> -> memref<1x128xf32, #tpu.memory_space<any>>
    %c38_i32_659 = arith.constant 38 : i32
    %c0_i32_660 = arith.constant 0 : i32
    %795 = tpu.memref_slice %arg16[%c38_i32_659, %c0_i32_660] : memref<64x128xf32, #tpu.memory_space<vmem>> -> memref<1x128xf32, #tpu.memory_space<vmem>>
    %796 = tpu.memref_slice %arg17[%c1_i32_657] : memref<2x!tpu.dma_semaphore, #tpu.memory_space<semaphore_mem>> -> memref<1x!tpu.dma_semaphore, #tpu.memory_space<semaphore_mem>>
    %797 = tpu.memref_squeeze %796 : memref<1x!tpu.dma_semaphore, #tpu.memory_space<semaphore_mem>> -> memref<!tpu.dma_semaphore, #tpu.memory_space<semaphore_mem>>
    tpu.wait_dma2 semaphore(%797 : memref<!tpu.dma_semaphore, #tpu.memory_space<semaphore_mem>>) src(%794 : memref<1x128xf32, #tpu.memory_space<any>>) dst(%795 : memref<1x128xf32, #tpu.memory_space<vmem>>)
    %c1_i32_661 = arith.constant 1 : i32
    %c0_i32_662 = arith.constant 0 : i32
    %798 = tpu.memref_slice %arg6[%397, %c0_i32_662] : memref<50x128xf32, #tpu.memory_space<any>> -> memref<1x128xf32, #tpu.memory_space<any>>
    %c39_i32_663 = arith.constant 39 : i32
    %c0_i32_664 = arith.constant 0 : i32
    %799 = tpu.memref_slice %arg16[%c39_i32_663, %c0_i32_664] : memref<64x128xf32, #tpu.memory_space<vmem>> -> memref<1x128xf32, #tpu.memory_space<vmem>>
    %800 = tpu.memref_slice %arg17[%c1_i32_661] : memref<2x!tpu.dma_semaphore, #tpu.memory_space<semaphore_mem>> -> memref<1x!tpu.dma_semaphore, #tpu.memory_space<semaphore_mem>>
    %801 = tpu.memref_squeeze %800 : memref<1x!tpu.dma_semaphore, #tpu.memory_space<semaphore_mem>> -> memref<!tpu.dma_semaphore, #tpu.memory_space<semaphore_mem>>
    tpu.wait_dma2 semaphore(%801 : memref<!tpu.dma_semaphore, #tpu.memory_space<semaphore_mem>>) src(%798 : memref<1x128xf32, #tpu.memory_space<any>>) dst(%799 : memref<1x128xf32, #tpu.memory_space<vmem>>)
    %c1_i32_665 = arith.constant 1 : i32
    %c0_i32_666 = arith.constant 0 : i32
    %802 = tpu.memref_slice %arg6[%407, %c0_i32_666] : memref<50x128xf32, #tpu.memory_space<any>> -> memref<1x128xf32, #tpu.memory_space<any>>
    %c40_i32_667 = arith.constant 40 : i32
    %c0_i32_668 = arith.constant 0 : i32
    %803 = tpu.memref_slice %arg16[%c40_i32_667, %c0_i32_668] : memref<64x128xf32, #tpu.memory_space<vmem>> -> memref<1x128xf32, #tpu.memory_space<vmem>>
    %804 = tpu.memref_slice %arg17[%c1_i32_665] : memref<2x!tpu.dma_semaphore, #tpu.memory_space<semaphore_mem>> -> memref<1x!tpu.dma_semaphore, #tpu.memory_space<semaphore_mem>>
    %805 = tpu.memref_squeeze %804 : memref<1x!tpu.dma_semaphore, #tpu.memory_space<semaphore_mem>> -> memref<!tpu.dma_semaphore, #tpu.memory_space<semaphore_mem>>
    tpu.wait_dma2 semaphore(%805 : memref<!tpu.dma_semaphore, #tpu.memory_space<semaphore_mem>>) src(%802 : memref<1x128xf32, #tpu.memory_space<any>>) dst(%803 : memref<1x128xf32, #tpu.memory_space<vmem>>)
    %c1_i32_669 = arith.constant 1 : i32
    %c0_i32_670 = arith.constant 0 : i32
    %806 = tpu.memref_slice %arg6[%417, %c0_i32_670] : memref<50x128xf32, #tpu.memory_space<any>> -> memref<1x128xf32, #tpu.memory_space<any>>
    %c41_i32_671 = arith.constant 41 : i32
    %c0_i32_672 = arith.constant 0 : i32
    %807 = tpu.memref_slice %arg16[%c41_i32_671, %c0_i32_672] : memref<64x128xf32, #tpu.memory_space<vmem>> -> memref<1x128xf32, #tpu.memory_space<vmem>>
    %808 = tpu.memref_slice %arg17[%c1_i32_669] : memref<2x!tpu.dma_semaphore, #tpu.memory_space<semaphore_mem>> -> memref<1x!tpu.dma_semaphore, #tpu.memory_space<semaphore_mem>>
    %809 = tpu.memref_squeeze %808 : memref<1x!tpu.dma_semaphore, #tpu.memory_space<semaphore_mem>> -> memref<!tpu.dma_semaphore, #tpu.memory_space<semaphore_mem>>
    tpu.wait_dma2 semaphore(%809 : memref<!tpu.dma_semaphore, #tpu.memory_space<semaphore_mem>>) src(%806 : memref<1x128xf32, #tpu.memory_space<any>>) dst(%807 : memref<1x128xf32, #tpu.memory_space<vmem>>)
    %c1_i32_673 = arith.constant 1 : i32
    %c0_i32_674 = arith.constant 0 : i32
    %810 = tpu.memref_slice %arg6[%427, %c0_i32_674] : memref<50x128xf32, #tpu.memory_space<any>> -> memref<1x128xf32, #tpu.memory_space<any>>
    %c42_i32_675 = arith.constant 42 : i32
    %c0_i32_676 = arith.constant 0 : i32
    %811 = tpu.memref_slice %arg16[%c42_i32_675, %c0_i32_676] : memref<64x128xf32, #tpu.memory_space<vmem>> -> memref<1x128xf32, #tpu.memory_space<vmem>>
    %812 = tpu.memref_slice %arg17[%c1_i32_673] : memref<2x!tpu.dma_semaphore, #tpu.memory_space<semaphore_mem>> -> memref<1x!tpu.dma_semaphore, #tpu.memory_space<semaphore_mem>>
    %813 = tpu.memref_squeeze %812 : memref<1x!tpu.dma_semaphore, #tpu.memory_space<semaphore_mem>> -> memref<!tpu.dma_semaphore, #tpu.memory_space<semaphore_mem>>
    tpu.wait_dma2 semaphore(%813 : memref<!tpu.dma_semaphore, #tpu.memory_space<semaphore_mem>>) src(%810 : memref<1x128xf32, #tpu.memory_space<any>>) dst(%811 : memref<1x128xf32, #tpu.memory_space<vmem>>)
    %c1_i32_677 = arith.constant 1 : i32
    %c0_i32_678 = arith.constant 0 : i32
    %814 = tpu.memref_slice %arg6[%437, %c0_i32_678] : memref<50x128xf32, #tpu.memory_space<any>> -> memref<1x128xf32, #tpu.memory_space<any>>
    %c43_i32_679 = arith.constant 43 : i32
    %c0_i32_680 = arith.constant 0 : i32
    %815 = tpu.memref_slice %arg16[%c43_i32_679, %c0_i32_680] : memref<64x128xf32, #tpu.memory_space<vmem>> -> memref<1x128xf32, #tpu.memory_space<vmem>>
    %816 = tpu.memref_slice %arg17[%c1_i32_677] : memref<2x!tpu.dma_semaphore, #tpu.memory_space<semaphore_mem>> -> memref<1x!tpu.dma_semaphore, #tpu.memory_space<semaphore_mem>>
    %817 = tpu.memref_squeeze %816 : memref<1x!tpu.dma_semaphore, #tpu.memory_space<semaphore_mem>> -> memref<!tpu.dma_semaphore, #tpu.memory_space<semaphore_mem>>
    tpu.wait_dma2 semaphore(%817 : memref<!tpu.dma_semaphore, #tpu.memory_space<semaphore_mem>>) src(%814 : memref<1x128xf32, #tpu.memory_space<any>>) dst(%815 : memref<1x128xf32, #tpu.memory_space<vmem>>)
    %c1_i32_681 = arith.constant 1 : i32
    %c0_i32_682 = arith.constant 0 : i32
    %818 = tpu.memref_slice %arg6[%447, %c0_i32_682] : memref<50x128xf32, #tpu.memory_space<any>> -> memref<1x128xf32, #tpu.memory_space<any>>
    %c44_i32_683 = arith.constant 44 : i32
    %c0_i32_684 = arith.constant 0 : i32
    %819 = tpu.memref_slice %arg16[%c44_i32_683, %c0_i32_684] : memref<64x128xf32, #tpu.memory_space<vmem>> -> memref<1x128xf32, #tpu.memory_space<vmem>>
    %820 = tpu.memref_slice %arg17[%c1_i32_681] : memref<2x!tpu.dma_semaphore, #tpu.memory_space<semaphore_mem>> -> memref<1x!tpu.dma_semaphore, #tpu.memory_space<semaphore_mem>>
    %821 = tpu.memref_squeeze %820 : memref<1x!tpu.dma_semaphore, #tpu.memory_space<semaphore_mem>> -> memref<!tpu.dma_semaphore, #tpu.memory_space<semaphore_mem>>
    tpu.wait_dma2 semaphore(%821 : memref<!tpu.dma_semaphore, #tpu.memory_space<semaphore_mem>>) src(%818 : memref<1x128xf32, #tpu.memory_space<any>>) dst(%819 : memref<1x128xf32, #tpu.memory_space<vmem>>)
    %c1_i32_685 = arith.constant 1 : i32
    %c0_i32_686 = arith.constant 0 : i32
    %822 = tpu.memref_slice %arg6[%457, %c0_i32_686] : memref<50x128xf32, #tpu.memory_space<any>> -> memref<1x128xf32, #tpu.memory_space<any>>
    %c45_i32_687 = arith.constant 45 : i32
    %c0_i32_688 = arith.constant 0 : i32
    %823 = tpu.memref_slice %arg16[%c45_i32_687, %c0_i32_688] : memref<64x128xf32, #tpu.memory_space<vmem>> -> memref<1x128xf32, #tpu.memory_space<vmem>>
    %824 = tpu.memref_slice %arg17[%c1_i32_685] : memref<2x!tpu.dma_semaphore, #tpu.memory_space<semaphore_mem>> -> memref<1x!tpu.dma_semaphore, #tpu.memory_space<semaphore_mem>>
    %825 = tpu.memref_squeeze %824 : memref<1x!tpu.dma_semaphore, #tpu.memory_space<semaphore_mem>> -> memref<!tpu.dma_semaphore, #tpu.memory_space<semaphore_mem>>
    tpu.wait_dma2 semaphore(%825 : memref<!tpu.dma_semaphore, #tpu.memory_space<semaphore_mem>>) src(%822 : memref<1x128xf32, #tpu.memory_space<any>>) dst(%823 : memref<1x128xf32, #tpu.memory_space<vmem>>)
    %c1_i32_689 = arith.constant 1 : i32
    %c0_i32_690 = arith.constant 0 : i32
    %826 = tpu.memref_slice %arg6[%467, %c0_i32_690] : memref<50x128xf32, #tpu.memory_space<any>> -> memref<1x128xf32, #tpu.memory_space<any>>
    %c46_i32_691 = arith.constant 46 : i32
    %c0_i32_692 = arith.constant 0 : i32
    %827 = tpu.memref_slice %arg16[%c46_i32_691, %c0_i32_692] : memref<64x128xf32, #tpu.memory_space<vmem>> -> memref<1x128xf32, #tpu.memory_space<vmem>>
    %828 = tpu.memref_slice %arg17[%c1_i32_689] : memref<2x!tpu.dma_semaphore, #tpu.memory_space<semaphore_mem>> -> memref<1x!tpu.dma_semaphore, #tpu.memory_space<semaphore_mem>>
    %829 = tpu.memref_squeeze %828 : memref<1x!tpu.dma_semaphore, #tpu.memory_space<semaphore_mem>> -> memref<!tpu.dma_semaphore, #tpu.memory_space<semaphore_mem>>
    tpu.wait_dma2 semaphore(%829 : memref<!tpu.dma_semaphore, #tpu.memory_space<semaphore_mem>>) src(%826 : memref<1x128xf32, #tpu.memory_space<any>>) dst(%827 : memref<1x128xf32, #tpu.memory_space<vmem>>)
    %c1_i32_693 = arith.constant 1 : i32
    %c0_i32_694 = arith.constant 0 : i32
    %830 = tpu.memref_slice %arg6[%477, %c0_i32_694] : memref<50x128xf32, #tpu.memory_space<any>> -> memref<1x128xf32, #tpu.memory_space<any>>
    %c47_i32_695 = arith.constant 47 : i32
    %c0_i32_696 = arith.constant 0 : i32
    %831 = tpu.memref_slice %arg16[%c47_i32_695, %c0_i32_696] : memref<64x128xf32, #tpu.memory_space<vmem>> -> memref<1x128xf32, #tpu.memory_space<vmem>>
    %832 = tpu.memref_slice %arg17[%c1_i32_693] : memref<2x!tpu.dma_semaphore, #tpu.memory_space<semaphore_mem>> -> memref<1x!tpu.dma_semaphore, #tpu.memory_space<semaphore_mem>>
    %833 = tpu.memref_squeeze %832 : memref<1x!tpu.dma_semaphore, #tpu.memory_space<semaphore_mem>> -> memref<!tpu.dma_semaphore, #tpu.memory_space<semaphore_mem>>
    tpu.wait_dma2 semaphore(%833 : memref<!tpu.dma_semaphore, #tpu.memory_space<semaphore_mem>>) src(%830 : memref<1x128xf32, #tpu.memory_space<any>>) dst(%831 : memref<1x128xf32, #tpu.memory_space<vmem>>)
    %c1_i32_697 = arith.constant 1 : i32
    %c0_i32_698 = arith.constant 0 : i32
    %834 = tpu.memref_slice %arg6[%487, %c0_i32_698] : memref<50x128xf32, #tpu.memory_space<any>> -> memref<1x128xf32, #tpu.memory_space<any>>
    %c48_i32_699 = arith.constant 48 : i32
    %c0_i32_700 = arith.constant 0 : i32
    %835 = tpu.memref_slice %arg16[%c48_i32_699, %c0_i32_700] : memref<64x128xf32, #tpu.memory_space<vmem>> -> memref<1x128xf32, #tpu.memory_space<vmem>>
    %836 = tpu.memref_slice %arg17[%c1_i32_697] : memref<2x!tpu.dma_semaphore, #tpu.memory_space<semaphore_mem>> -> memref<1x!tpu.dma_semaphore, #tpu.memory_space<semaphore_mem>>
    %837 = tpu.memref_squeeze %836 : memref<1x!tpu.dma_semaphore, #tpu.memory_space<semaphore_mem>> -> memref<!tpu.dma_semaphore, #tpu.memory_space<semaphore_mem>>
    tpu.wait_dma2 semaphore(%837 : memref<!tpu.dma_semaphore, #tpu.memory_space<semaphore_mem>>) src(%834 : memref<1x128xf32, #tpu.memory_space<any>>) dst(%835 : memref<1x128xf32, #tpu.memory_space<vmem>>)
    %c1_i32_701 = arith.constant 1 : i32
    %c0_i32_702 = arith.constant 0 : i32
    %838 = tpu.memref_slice %arg6[%497, %c0_i32_702] : memref<50x128xf32, #tpu.memory_space<any>> -> memref<1x128xf32, #tpu.memory_space<any>>
    %c49_i32_703 = arith.constant 49 : i32
    %c0_i32_704 = arith.constant 0 : i32
    %839 = tpu.memref_slice %arg16[%c49_i32_703, %c0_i32_704] : memref<64x128xf32, #tpu.memory_space<vmem>> -> memref<1x128xf32, #tpu.memory_space<vmem>>
    %840 = tpu.memref_slice %arg17[%c1_i32_701] : memref<2x!tpu.dma_semaphore, #tpu.memory_space<semaphore_mem>> -> memref<1x!tpu.dma_semaphore, #tpu.memory_space<semaphore_mem>>
    %841 = tpu.memref_squeeze %840 : memref<1x!tpu.dma_semaphore, #tpu.memory_space<semaphore_mem>> -> memref<!tpu.dma_semaphore, #tpu.memory_space<semaphore_mem>>
    tpu.wait_dma2 semaphore(%841 : memref<!tpu.dma_semaphore, #tpu.memory_space<semaphore_mem>>) src(%838 : memref<1x128xf32, #tpu.memory_space<any>>) dst(%839 : memref<1x128xf32, #tpu.memory_space<vmem>>)
    %c1_i32_705 = arith.constant 1 : i32
    %c0_i32_706 = arith.constant 0 : i32
    %842 = tpu.memref_slice %arg6[%507, %c0_i32_706] : memref<50x128xf32, #tpu.memory_space<any>> -> memref<1x128xf32, #tpu.memory_space<any>>
    %c50_i32_707 = arith.constant 50 : i32
    %c0_i32_708 = arith.constant 0 : i32
    %843 = tpu.memref_slice %arg16[%c50_i32_707, %c0_i32_708] : memref<64x128xf32, #tpu.memory_space<vmem>> -> memref<1x128xf32, #tpu.memory_space<vmem>>
    %844 = tpu.memref_slice %arg17[%c1_i32_705] : memref<2x!tpu.dma_semaphore, #tpu.memory_space<semaphore_mem>> -> memref<1x!tpu.dma_semaphore, #tpu.memory_space<semaphore_mem>>
    %845 = tpu.memref_squeeze %844 : memref<1x!tpu.dma_semaphore, #tpu.memory_space<semaphore_mem>> -> memref<!tpu.dma_semaphore, #tpu.memory_space<semaphore_mem>>
    tpu.wait_dma2 semaphore(%845 : memref<!tpu.dma_semaphore, #tpu.memory_space<semaphore_mem>>) src(%842 : memref<1x128xf32, #tpu.memory_space<any>>) dst(%843 : memref<1x128xf32, #tpu.memory_space<vmem>>)
    %c1_i32_709 = arith.constant 1 : i32
    %c0_i32_710 = arith.constant 0 : i32
    %846 = tpu.memref_slice %arg6[%517, %c0_i32_710] : memref<50x128xf32, #tpu.memory_space<any>> -> memref<1x128xf32, #tpu.memory_space<any>>
    %c51_i32_711 = arith.constant 51 : i32
    %c0_i32_712 = arith.constant 0 : i32
    %847 = tpu.memref_slice %arg16[%c51_i32_711, %c0_i32_712] : memref<64x128xf32, #tpu.memory_space<vmem>> -> memref<1x128xf32, #tpu.memory_space<vmem>>
    %848 = tpu.memref_slice %arg17[%c1_i32_709] : memref<2x!tpu.dma_semaphore, #tpu.memory_space<semaphore_mem>> -> memref<1x!tpu.dma_semaphore, #tpu.memory_space<semaphore_mem>>
    %849 = tpu.memref_squeeze %848 : memref<1x!tpu.dma_semaphore, #tpu.memory_space<semaphore_mem>> -> memref<!tpu.dma_semaphore, #tpu.memory_space<semaphore_mem>>
    tpu.wait_dma2 semaphore(%849 : memref<!tpu.dma_semaphore, #tpu.memory_space<semaphore_mem>>) src(%846 : memref<1x128xf32, #tpu.memory_space<any>>) dst(%847 : memref<1x128xf32, #tpu.memory_space<vmem>>)
    %c1_i32_713 = arith.constant 1 : i32
    %c0_i32_714 = arith.constant 0 : i32
    %850 = tpu.memref_slice %arg6[%527, %c0_i32_714] : memref<50x128xf32, #tpu.memory_space<any>> -> memref<1x128xf32, #tpu.memory_space<any>>
    %c52_i32_715 = arith.constant 52 : i32
    %c0_i32_716 = arith.constant 0 : i32
    %851 = tpu.memref_slice %arg16[%c52_i32_715, %c0_i32_716] : memref<64x128xf32, #tpu.memory_space<vmem>> -> memref<1x128xf32, #tpu.memory_space<vmem>>
    %852 = tpu.memref_slice %arg17[%c1_i32_713] : memref<2x!tpu.dma_semaphore, #tpu.memory_space<semaphore_mem>> -> memref<1x!tpu.dma_semaphore, #tpu.memory_space<semaphore_mem>>
    %853 = tpu.memref_squeeze %852 : memref<1x!tpu.dma_semaphore, #tpu.memory_space<semaphore_mem>> -> memref<!tpu.dma_semaphore, #tpu.memory_space<semaphore_mem>>
    tpu.wait_dma2 semaphore(%853 : memref<!tpu.dma_semaphore, #tpu.memory_space<semaphore_mem>>) src(%850 : memref<1x128xf32, #tpu.memory_space<any>>) dst(%851 : memref<1x128xf32, #tpu.memory_space<vmem>>)
    %c1_i32_717 = arith.constant 1 : i32
    %c0_i32_718 = arith.constant 0 : i32
    %854 = tpu.memref_slice %arg6[%537, %c0_i32_718] : memref<50x128xf32, #tpu.memory_space<any>> -> memref<1x128xf32, #tpu.memory_space<any>>
    %c53_i32_719 = arith.constant 53 : i32
    %c0_i32_720 = arith.constant 0 : i32
    %855 = tpu.memref_slice %arg16[%c53_i32_719, %c0_i32_720] : memref<64x128xf32, #tpu.memory_space<vmem>> -> memref<1x128xf32, #tpu.memory_space<vmem>>
    %856 = tpu.memref_slice %arg17[%c1_i32_717] : memref<2x!tpu.dma_semaphore, #tpu.memory_space<semaphore_mem>> -> memref<1x!tpu.dma_semaphore, #tpu.memory_space<semaphore_mem>>
    %857 = tpu.memref_squeeze %856 : memref<1x!tpu.dma_semaphore, #tpu.memory_space<semaphore_mem>> -> memref<!tpu.dma_semaphore, #tpu.memory_space<semaphore_mem>>
    tpu.wait_dma2 semaphore(%857 : memref<!tpu.dma_semaphore, #tpu.memory_space<semaphore_mem>>) src(%854 : memref<1x128xf32, #tpu.memory_space<any>>) dst(%855 : memref<1x128xf32, #tpu.memory_space<vmem>>)
    %c1_i32_721 = arith.constant 1 : i32
    %c0_i32_722 = arith.constant 0 : i32
    %858 = tpu.memref_slice %arg6[%547, %c0_i32_722] : memref<50x128xf32, #tpu.memory_space<any>> -> memref<1x128xf32, #tpu.memory_space<any>>
    %c54_i32_723 = arith.constant 54 : i32
    %c0_i32_724 = arith.constant 0 : i32
    %859 = tpu.memref_slice %arg16[%c54_i32_723, %c0_i32_724] : memref<64x128xf32, #tpu.memory_space<vmem>> -> memref<1x128xf32, #tpu.memory_space<vmem>>
    %860 = tpu.memref_slice %arg17[%c1_i32_721] : memref<2x!tpu.dma_semaphore, #tpu.memory_space<semaphore_mem>> -> memref<1x!tpu.dma_semaphore, #tpu.memory_space<semaphore_mem>>
    %861 = tpu.memref_squeeze %860 : memref<1x!tpu.dma_semaphore, #tpu.memory_space<semaphore_mem>> -> memref<!tpu.dma_semaphore, #tpu.memory_space<semaphore_mem>>
    tpu.wait_dma2 semaphore(%861 : memref<!tpu.dma_semaphore, #tpu.memory_space<semaphore_mem>>) src(%858 : memref<1x128xf32, #tpu.memory_space<any>>) dst(%859 : memref<1x128xf32, #tpu.memory_space<vmem>>)
    %c1_i32_725 = arith.constant 1 : i32
    %c0_i32_726 = arith.constant 0 : i32
    %862 = tpu.memref_slice %arg6[%557, %c0_i32_726] : memref<50x128xf32, #tpu.memory_space<any>> -> memref<1x128xf32, #tpu.memory_space<any>>
    %c55_i32_727 = arith.constant 55 : i32
    %c0_i32_728 = arith.constant 0 : i32
    %863 = tpu.memref_slice %arg16[%c55_i32_727, %c0_i32_728] : memref<64x128xf32, #tpu.memory_space<vmem>> -> memref<1x128xf32, #tpu.memory_space<vmem>>
    %864 = tpu.memref_slice %arg17[%c1_i32_725] : memref<2x!tpu.dma_semaphore, #tpu.memory_space<semaphore_mem>> -> memref<1x!tpu.dma_semaphore, #tpu.memory_space<semaphore_mem>>
    %865 = tpu.memref_squeeze %864 : memref<1x!tpu.dma_semaphore, #tpu.memory_space<semaphore_mem>> -> memref<!tpu.dma_semaphore, #tpu.memory_space<semaphore_mem>>
    tpu.wait_dma2 semaphore(%865 : memref<!tpu.dma_semaphore, #tpu.memory_space<semaphore_mem>>) src(%862 : memref<1x128xf32, #tpu.memory_space<any>>) dst(%863 : memref<1x128xf32, #tpu.memory_space<vmem>>)
    %c1_i32_729 = arith.constant 1 : i32
    %c0_i32_730 = arith.constant 0 : i32
    %866 = tpu.memref_slice %arg6[%567, %c0_i32_730] : memref<50x128xf32, #tpu.memory_space<any>> -> memref<1x128xf32, #tpu.memory_space<any>>
    %c56_i32_731 = arith.constant 56 : i32
    %c0_i32_732 = arith.constant 0 : i32
    %867 = tpu.memref_slice %arg16[%c56_i32_731, %c0_i32_732] : memref<64x128xf32, #tpu.memory_space<vmem>> -> memref<1x128xf32, #tpu.memory_space<vmem>>
    %868 = tpu.memref_slice %arg17[%c1_i32_729] : memref<2x!tpu.dma_semaphore, #tpu.memory_space<semaphore_mem>> -> memref<1x!tpu.dma_semaphore, #tpu.memory_space<semaphore_mem>>
    %869 = tpu.memref_squeeze %868 : memref<1x!tpu.dma_semaphore, #tpu.memory_space<semaphore_mem>> -> memref<!tpu.dma_semaphore, #tpu.memory_space<semaphore_mem>>
    tpu.wait_dma2 semaphore(%869 : memref<!tpu.dma_semaphore, #tpu.memory_space<semaphore_mem>>) src(%866 : memref<1x128xf32, #tpu.memory_space<any>>) dst(%867 : memref<1x128xf32, #tpu.memory_space<vmem>>)
    %c1_i32_733 = arith.constant 1 : i32
    %c0_i32_734 = arith.constant 0 : i32
    %870 = tpu.memref_slice %arg6[%577, %c0_i32_734] : memref<50x128xf32, #tpu.memory_space<any>> -> memref<1x128xf32, #tpu.memory_space<any>>
    %c57_i32_735 = arith.constant 57 : i32
    %c0_i32_736 = arith.constant 0 : i32
    %871 = tpu.memref_slice %arg16[%c57_i32_735, %c0_i32_736] : memref<64x128xf32, #tpu.memory_space<vmem>> -> memref<1x128xf32, #tpu.memory_space<vmem>>
    %872 = tpu.memref_slice %arg17[%c1_i32_733] : memref<2x!tpu.dma_semaphore, #tpu.memory_space<semaphore_mem>> -> memref<1x!tpu.dma_semaphore, #tpu.memory_space<semaphore_mem>>
    %873 = tpu.memref_squeeze %872 : memref<1x!tpu.dma_semaphore, #tpu.memory_space<semaphore_mem>> -> memref<!tpu.dma_semaphore, #tpu.memory_space<semaphore_mem>>
    tpu.wait_dma2 semaphore(%873 : memref<!tpu.dma_semaphore, #tpu.memory_space<semaphore_mem>>) src(%870 : memref<1x128xf32, #tpu.memory_space<any>>) dst(%871 : memref<1x128xf32, #tpu.memory_space<vmem>>)
    %c1_i32_737 = arith.constant 1 : i32
    %c0_i32_738 = arith.constant 0 : i32
    %874 = tpu.memref_slice %arg6[%587, %c0_i32_738] : memref<50x128xf32, #tpu.memory_space<any>> -> memref<1x128xf32, #tpu.memory_space<any>>
    %c58_i32_739 = arith.constant 58 : i32
    %c0_i32_740 = arith.constant 0 : i32
    %875 = tpu.memref_slice %arg16[%c58_i32_739, %c0_i32_740] : memref<64x128xf32, #tpu.memory_space<vmem>> -> memref<1x128xf32, #tpu.memory_space<vmem>>
    %876 = tpu.memref_slice %arg17[%c1_i32_737] : memref<2x!tpu.dma_semaphore, #tpu.memory_space<semaphore_mem>> -> memref<1x!tpu.dma_semaphore, #tpu.memory_space<semaphore_mem>>
    %877 = tpu.memref_squeeze %876 : memref<1x!tpu.dma_semaphore, #tpu.memory_space<semaphore_mem>> -> memref<!tpu.dma_semaphore, #tpu.memory_space<semaphore_mem>>
    tpu.wait_dma2 semaphore(%877 : memref<!tpu.dma_semaphore, #tpu.memory_space<semaphore_mem>>) src(%874 : memref<1x128xf32, #tpu.memory_space<any>>) dst(%875 : memref<1x128xf32, #tpu.memory_space<vmem>>)
    %c1_i32_741 = arith.constant 1 : i32
    %c0_i32_742 = arith.constant 0 : i32
    %878 = tpu.memref_slice %arg6[%597, %c0_i32_742] : memref<50x128xf32, #tpu.memory_space<any>> -> memref<1x128xf32, #tpu.memory_space<any>>
    %c59_i32_743 = arith.constant 59 : i32
    %c0_i32_744 = arith.constant 0 : i32
    %879 = tpu.memref_slice %arg16[%c59_i32_743, %c0_i32_744] : memref<64x128xf32, #tpu.memory_space<vmem>> -> memref<1x128xf32, #tpu.memory_space<vmem>>
    %880 = tpu.memref_slice %arg17[%c1_i32_741] : memref<2x!tpu.dma_semaphore, #tpu.memory_space<semaphore_mem>> -> memref<1x!tpu.dma_semaphore, #tpu.memory_space<semaphore_mem>>
    %881 = tpu.memref_squeeze %880 : memref<1x!tpu.dma_semaphore, #tpu.memory_space<semaphore_mem>> -> memref<!tpu.dma_semaphore, #tpu.memory_space<semaphore_mem>>
    tpu.wait_dma2 semaphore(%881 : memref<!tpu.dma_semaphore, #tpu.memory_space<semaphore_mem>>) src(%878 : memref<1x128xf32, #tpu.memory_space<any>>) dst(%879 : memref<1x128xf32, #tpu.memory_space<vmem>>)
    %c1_i32_745 = arith.constant 1 : i32
    %c0_i32_746 = arith.constant 0 : i32
    %882 = tpu.memref_slice %arg6[%607, %c0_i32_746] : memref<50x128xf32, #tpu.memory_space<any>> -> memref<1x128xf32, #tpu.memory_space<any>>
    %c60_i32_747 = arith.constant 60 : i32
    %c0_i32_748 = arith.constant 0 : i32
    %883 = tpu.memref_slice %arg16[%c60_i32_747, %c0_i32_748] : memref<64x128xf32, #tpu.memory_space<vmem>> -> memref<1x128xf32, #tpu.memory_space<vmem>>
    %884 = tpu.memref_slice %arg17[%c1_i32_745] : memref<2x!tpu.dma_semaphore, #tpu.memory_space<semaphore_mem>> -> memref<1x!tpu.dma_semaphore, #tpu.memory_space<semaphore_mem>>
    %885 = tpu.memref_squeeze %884 : memref<1x!tpu.dma_semaphore, #tpu.memory_space<semaphore_mem>> -> memref<!tpu.dma_semaphore, #tpu.memory_space<semaphore_mem>>
    tpu.wait_dma2 semaphore(%885 : memref<!tpu.dma_semaphore, #tpu.memory_space<semaphore_mem>>) src(%882 : memref<1x128xf32, #tpu.memory_space<any>>) dst(%883 : memref<1x128xf32, #tpu.memory_space<vmem>>)
    %c1_i32_749 = arith.constant 1 : i32
    %c0_i32_750 = arith.constant 0 : i32
    %886 = tpu.memref_slice %arg6[%617, %c0_i32_750] : memref<50x128xf32, #tpu.memory_space<any>> -> memref<1x128xf32, #tpu.memory_space<any>>
    %c61_i32_751 = arith.constant 61 : i32
    %c0_i32_752 = arith.constant 0 : i32
    %887 = tpu.memref_slice %arg16[%c61_i32_751, %c0_i32_752] : memref<64x128xf32, #tpu.memory_space<vmem>> -> memref<1x128xf32, #tpu.memory_space<vmem>>
    %888 = tpu.memref_slice %arg17[%c1_i32_749] : memref<2x!tpu.dma_semaphore, #tpu.memory_space<semaphore_mem>> -> memref<1x!tpu.dma_semaphore, #tpu.memory_space<semaphore_mem>>
    %889 = tpu.memref_squeeze %888 : memref<1x!tpu.dma_semaphore, #tpu.memory_space<semaphore_mem>> -> memref<!tpu.dma_semaphore, #tpu.memory_space<semaphore_mem>>
    tpu.wait_dma2 semaphore(%889 : memref<!tpu.dma_semaphore, #tpu.memory_space<semaphore_mem>>) src(%886 : memref<1x128xf32, #tpu.memory_space<any>>) dst(%887 : memref<1x128xf32, #tpu.memory_space<vmem>>)
    %c1_i32_753 = arith.constant 1 : i32
    %c0_i32_754 = arith.constant 0 : i32
    %890 = tpu.memref_slice %arg6[%627, %c0_i32_754] : memref<50x128xf32, #tpu.memory_space<any>> -> memref<1x128xf32, #tpu.memory_space<any>>
    %c62_i32_755 = arith.constant 62 : i32
    %c0_i32_756 = arith.constant 0 : i32
    %891 = tpu.memref_slice %arg16[%c62_i32_755, %c0_i32_756] : memref<64x128xf32, #tpu.memory_space<vmem>> -> memref<1x128xf32, #tpu.memory_space<vmem>>
    %892 = tpu.memref_slice %arg17[%c1_i32_753] : memref<2x!tpu.dma_semaphore, #tpu.memory_space<semaphore_mem>> -> memref<1x!tpu.dma_semaphore, #tpu.memory_space<semaphore_mem>>
    %893 = tpu.memref_squeeze %892 : memref<1x!tpu.dma_semaphore, #tpu.memory_space<semaphore_mem>> -> memref<!tpu.dma_semaphore, #tpu.memory_space<semaphore_mem>>
    tpu.wait_dma2 semaphore(%893 : memref<!tpu.dma_semaphore, #tpu.memory_space<semaphore_mem>>) src(%890 : memref<1x128xf32, #tpu.memory_space<any>>) dst(%891 : memref<1x128xf32, #tpu.memory_space<vmem>>)
    %c1_i32_757 = arith.constant 1 : i32
    %c0_i32_758 = arith.constant 0 : i32
    %894 = tpu.memref_slice %arg6[%637, %c0_i32_758] : memref<50x128xf32, #tpu.memory_space<any>> -> memref<1x128xf32, #tpu.memory_space<any>>
    %c63_i32_759 = arith.constant 63 : i32
    %c0_i32_760 = arith.constant 0 : i32
    %895 = tpu.memref_slice %arg16[%c63_i32_759, %c0_i32_760] : memref<64x128xf32, #tpu.memory_space<vmem>> -> memref<1x128xf32, #tpu.memory_space<vmem>>
    %896 = tpu.memref_slice %arg17[%c1_i32_757] : memref<2x!tpu.dma_semaphore, #tpu.memory_space<semaphore_mem>> -> memref<1x!tpu.dma_semaphore, #tpu.memory_space<semaphore_mem>>
    %897 = tpu.memref_squeeze %896 : memref<1x!tpu.dma_semaphore, #tpu.memory_space<semaphore_mem>> -> memref<!tpu.dma_semaphore, #tpu.memory_space<semaphore_mem>>
    tpu.wait_dma2 semaphore(%897 : memref<!tpu.dma_semaphore, #tpu.memory_space<semaphore_mem>>) src(%894 : memref<1x128xf32, #tpu.memory_space<any>>) dst(%895 : memref<1x128xf32, #tpu.memory_space<vmem>>)
    %c0_761 = arith.constant 0 : index
    %c0_762 = arith.constant 0 : index
    %898 = vector.load %arg16[%c0_761, %c0_762] : memref<64x128xf32, #tpu.memory_space<vmem>>, vector<64x128xf32>
    %899 = arith.truncf %898 : vector<64x128xf32> to vector<64x128xbf16>
    %c0_763 = arith.constant 0 : index
    %c0_764 = arith.constant 0 : index
    %900 = vector.load %arg7[%c0_763, %c0_764] : memref<128x128xbf16, #tpu.memory_space<vmem>>, vector<128x128xbf16>
    %cst = arith.constant dense<0.000000e+00> : vector<64x128xf32>
    %901 = tpu.matmul %899, %900, %cst {dimension_numbers = #tpu.dot_dimension_numbers<[1], [0], [0], [1], [0, 0, 1, 1], [], []>} : vector<64x128xbf16>, vector<128x128xbf16>, vector<64x128xf32> -> vector<64x128xf32>
    %c0_765 = arith.constant 0 : index
    %c0_766 = arith.constant 0 : index
    %902 = vector.load %arg9[%c0_765, %c0_766] : memref<1x128xf32, #tpu.memory_space<vmem>>, vector<1x128xf32>
    %903 = vector.broadcast %902 : vector<1x128xf32> to vector<64x128xf32>
    %904 = arith.addf %901, %903 : vector<64x128xf32>
    %c0_767 = arith.constant 0 : index
    %c0_768 = arith.constant 0 : index
    %905 = vector.load %arg8[%c0_767, %c0_768] : memref<32x128xbf16, #tpu.memory_space<vmem>>, vector<32x128xbf16>
    %cst_769 = arith.constant 0.000000e+00 : f32
    %906 = vector.broadcast %cst_769 : f32 to vector<8x32xf32>
    %cst_770 = arith.constant 0.000000e+00 : f32
    %907 = vector.broadcast %cst_770 : f32 to vector<8x32xf32>
    %908 = vector.extract_strided_slice %904 {offsets = [0, 0], sizes = [8, 128], strides = [1, 1]} : vector<64x128xf32> to vector<8x128xf32>
    %909 = arith.truncf %906 : vector<8x32xf32> to vector<8x32xbf16>
    %cst_771 = arith.constant dense<0.000000e+00> : vector<8x128xf32>
    %910 = tpu.matmul %909, %905, %cst_771 {dimension_numbers = #tpu.dot_dimension_numbers<[1], [0], [0], [1], [0, 0, 1, 1], [], []>} : vector<8x32xbf16>, vector<32x128xbf16>, vector<8x128xf32> -> vector<8x128xf32>
    %911 = arith.addf %908, %910 : vector<8x128xf32>
    %912 = arith.negf %911 : vector<8x128xf32>
    %913 = math.exp %912 : vector<8x128xf32>
    %cst_772 = arith.constant 1.000000e+00 : f32
    %914 = vector.broadcast %cst_772 : f32 to vector<8x128xf32>
    %915 = arith.addf %914, %913 : vector<8x128xf32>
    %916 = arith.divf %914, %915 : vector<8x128xf32>
    %917 = math.tanh %911 : vector<8x128xf32>
    %918 = vector.extract_strided_slice %916 {offsets = [0, 0], sizes = [8, 32], strides = [1, 1]} : vector<8x128xf32> to vector<8x32xf32>
    %919 = vector.extract_strided_slice %916 {offsets = [0, 32], sizes = [8, 32], strides = [1, 1]} : vector<8x128xf32> to vector<8x32xf32>
    %920 = vector.extract_strided_slice %917 {offsets = [0, 64], sizes = [8, 32], strides = [1, 1]} : vector<8x128xf32> to vector<8x32xf32>
    %921 = vector.extract_strided_slice %916 {offsets = [0, 96], sizes = [8, 32], strides = [1, 1]} : vector<8x128xf32> to vector<8x32xf32>
    %922 = arith.mulf %919, %907 : vector<8x32xf32>
    %923 = arith.mulf %918, %920 : vector<8x32xf32>
    %924 = arith.addf %922, %923 : vector<8x32xf32>
    %925 = math.tanh %924 : vector<8x32xf32>
    %926 = arith.mulf %921, %925 : vector<8x32xf32>
    %927 = vector.extract_strided_slice %904 {offsets = [8, 0], sizes = [8, 128], strides = [1, 1]} : vector<64x128xf32> to vector<8x128xf32>
    %928 = arith.truncf %926 : vector<8x32xf32> to vector<8x32xbf16>
    %cst_773 = arith.constant dense<0.000000e+00> : vector<8x128xf32>
    %929 = tpu.matmul %928, %905, %cst_773 {dimension_numbers = #tpu.dot_dimension_numbers<[1], [0], [0], [1], [0, 0, 1, 1], [], []>} : vector<8x32xbf16>, vector<32x128xbf16>, vector<8x128xf32> -> vector<8x128xf32>
    %930 = arith.addf %927, %929 : vector<8x128xf32>
    %931 = arith.negf %930 : vector<8x128xf32>
    %932 = math.exp %931 : vector<8x128xf32>
    %cst_774 = arith.constant 1.000000e+00 : f32
    %933 = vector.broadcast %cst_774 : f32 to vector<8x128xf32>
    %934 = arith.addf %933, %932 : vector<8x128xf32>
    %935 = arith.divf %933, %934 : vector<8x128xf32>
    %936 = math.tanh %930 : vector<8x128xf32>
    %937 = vector.extract_strided_slice %935 {offsets = [0, 0], sizes = [8, 32], strides = [1, 1]} : vector<8x128xf32> to vector<8x32xf32>
    %938 = vector.extract_strided_slice %935 {offsets = [0, 32], sizes = [8, 32], strides = [1, 1]} : vector<8x128xf32> to vector<8x32xf32>
    %939 = vector.extract_strided_slice %936 {offsets = [0, 64], sizes = [8, 32], strides = [1, 1]} : vector<8x128xf32> to vector<8x32xf32>
    %940 = vector.extract_strided_slice %935 {offsets = [0, 96], sizes = [8, 32], strides = [1, 1]} : vector<8x128xf32> to vector<8x32xf32>
    %941 = arith.mulf %938, %924 : vector<8x32xf32>
    %942 = arith.mulf %937, %939 : vector<8x32xf32>
    %943 = arith.addf %941, %942 : vector<8x32xf32>
    %944 = math.tanh %943 : vector<8x32xf32>
    %945 = arith.mulf %940, %944 : vector<8x32xf32>
    %946 = vector.extract_strided_slice %904 {offsets = [16, 0], sizes = [8, 128], strides = [1, 1]} : vector<64x128xf32> to vector<8x128xf32>
    %947 = arith.truncf %945 : vector<8x32xf32> to vector<8x32xbf16>
    %cst_775 = arith.constant dense<0.000000e+00> : vector<8x128xf32>
    %948 = tpu.matmul %947, %905, %cst_775 {dimension_numbers = #tpu.dot_dimension_numbers<[1], [0], [0], [1], [0, 0, 1, 1], [], []>} : vector<8x32xbf16>, vector<32x128xbf16>, vector<8x128xf32> -> vector<8x128xf32>
    %949 = arith.addf %946, %948 : vector<8x128xf32>
    %950 = arith.negf %949 : vector<8x128xf32>
    %951 = math.exp %950 : vector<8x128xf32>
    %cst_776 = arith.constant 1.000000e+00 : f32
    %952 = vector.broadcast %cst_776 : f32 to vector<8x128xf32>
    %953 = arith.addf %952, %951 : vector<8x128xf32>
    %954 = arith.divf %952, %953 : vector<8x128xf32>
    %955 = math.tanh %949 : vector<8x128xf32>
    %956 = vector.extract_strided_slice %954 {offsets = [0, 0], sizes = [8, 32], strides = [1, 1]} : vector<8x128xf32> to vector<8x32xf32>
    %957 = vector.extract_strided_slice %954 {offsets = [0, 32], sizes = [8, 32], strides = [1, 1]} : vector<8x128xf32> to vector<8x32xf32>
    %958 = vector.extract_strided_slice %955 {offsets = [0, 64], sizes = [8, 32], strides = [1, 1]} : vector<8x128xf32> to vector<8x32xf32>
    %959 = vector.extract_strided_slice %954 {offsets = [0, 96], sizes = [8, 32], strides = [1, 1]} : vector<8x128xf32> to vector<8x32xf32>
    %960 = arith.mulf %957, %943 : vector<8x32xf32>
    %961 = arith.mulf %956, %958 : vector<8x32xf32>
    %962 = arith.addf %960, %961 : vector<8x32xf32>
    %963 = math.tanh %962 : vector<8x32xf32>
    %964 = arith.mulf %959, %963 : vector<8x32xf32>
    %965 = vector.extract_strided_slice %904 {offsets = [24, 0], sizes = [8, 128], strides = [1, 1]} : vector<64x128xf32> to vector<8x128xf32>
    %966 = arith.truncf %964 : vector<8x32xf32> to vector<8x32xbf16>
    %cst_777 = arith.constant dense<0.000000e+00> : vector<8x128xf32>
    %967 = tpu.matmul %966, %905, %cst_777 {dimension_numbers = #tpu.dot_dimension_numbers<[1], [0], [0], [1], [0, 0, 1, 1], [], []>} : vector<8x32xbf16>, vector<32x128xbf16>, vector<8x128xf32> -> vector<8x128xf32>
    %968 = arith.addf %965, %967 : vector<8x128xf32>
    %969 = arith.negf %968 : vector<8x128xf32>
    %970 = math.exp %969 : vector<8x128xf32>
    %cst_778 = arith.constant 1.000000e+00 : f32
    %971 = vector.broadcast %cst_778 : f32 to vector<8x128xf32>
    %972 = arith.addf %971, %970 : vector<8x128xf32>
    %973 = arith.divf %971, %972 : vector<8x128xf32>
    %974 = math.tanh %968 : vector<8x128xf32>
    %975 = vector.extract_strided_slice %973 {offsets = [0, 0], sizes = [8, 32], strides = [1, 1]} : vector<8x128xf32> to vector<8x32xf32>
    %976 = vector.extract_strided_slice %973 {offsets = [0, 32], sizes = [8, 32], strides = [1, 1]} : vector<8x128xf32> to vector<8x32xf32>
    %977 = vector.extract_strided_slice %974 {offsets = [0, 64], sizes = [8, 32], strides = [1, 1]} : vector<8x128xf32> to vector<8x32xf32>
    %978 = vector.extract_strided_slice %973 {offsets = [0, 96], sizes = [8, 32], strides = [1, 1]} : vector<8x128xf32> to vector<8x32xf32>
    %979 = arith.mulf %976, %962 : vector<8x32xf32>
    %980 = arith.mulf %975, %977 : vector<8x32xf32>
    %981 = arith.addf %979, %980 : vector<8x32xf32>
    %982 = math.tanh %981 : vector<8x32xf32>
    %983 = arith.mulf %978, %982 : vector<8x32xf32>
    %984 = vector.extract_strided_slice %904 {offsets = [32, 0], sizes = [8, 128], strides = [1, 1]} : vector<64x128xf32> to vector<8x128xf32>
    %985 = arith.truncf %983 : vector<8x32xf32> to vector<8x32xbf16>
    %cst_779 = arith.constant dense<0.000000e+00> : vector<8x128xf32>
    %986 = tpu.matmul %985, %905, %cst_779 {dimension_numbers = #tpu.dot_dimension_numbers<[1], [0], [0], [1], [0, 0, 1, 1], [], []>} : vector<8x32xbf16>, vector<32x128xbf16>, vector<8x128xf32> -> vector<8x128xf32>
    %987 = arith.addf %984, %986 : vector<8x128xf32>
    %988 = arith.negf %987 : vector<8x128xf32>
    %989 = math.exp %988 : vector<8x128xf32>
    %cst_780 = arith.constant 1.000000e+00 : f32
    %990 = vector.broadcast %cst_780 : f32 to vector<8x128xf32>
    %991 = arith.addf %990, %989 : vector<8x128xf32>
    %992 = arith.divf %990, %991 : vector<8x128xf32>
    %993 = math.tanh %987 : vector<8x128xf32>
    %994 = vector.extract_strided_slice %992 {offsets = [0, 0], sizes = [8, 32], strides = [1, 1]} : vector<8x128xf32> to vector<8x32xf32>
    %995 = vector.extract_strided_slice %992 {offsets = [0, 32], sizes = [8, 32], strides = [1, 1]} : vector<8x128xf32> to vector<8x32xf32>
    %996 = vector.extract_strided_slice %993 {offsets = [0, 64], sizes = [8, 32], strides = [1, 1]} : vector<8x128xf32> to vector<8x32xf32>
    %997 = vector.extract_strided_slice %992 {offsets = [0, 96], sizes = [8, 32], strides = [1, 1]} : vector<8x128xf32> to vector<8x32xf32>
    %998 = arith.mulf %995, %981 : vector<8x32xf32>
    %999 = arith.mulf %994, %996 : vector<8x32xf32>
    %1000 = arith.addf %998, %999 : vector<8x32xf32>
    %1001 = math.tanh %1000 : vector<8x32xf32>
    %1002 = arith.mulf %997, %1001 : vector<8x32xf32>
    %1003 = vector.extract_strided_slice %904 {offsets = [40, 0], sizes = [8, 128], strides = [1, 1]} : vector<64x128xf32> to vector<8x128xf32>
    %1004 = arith.truncf %1002 : vector<8x32xf32> to vector<8x32xbf16>
    %cst_781 = arith.constant dense<0.000000e+00> : vector<8x128xf32>
    %1005 = tpu.matmul %1004, %905, %cst_781 {dimension_numbers = #tpu.dot_dimension_numbers<[1], [0], [0], [1], [0, 0, 1, 1], [], []>} : vector<8x32xbf16>, vector<32x128xbf16>, vector<8x128xf32> -> vector<8x128xf32>
    %1006 = arith.addf %1003, %1005 : vector<8x128xf32>
    %1007 = arith.negf %1006 : vector<8x128xf32>
    %1008 = math.exp %1007 : vector<8x128xf32>
    %cst_782 = arith.constant 1.000000e+00 : f32
    %1009 = vector.broadcast %cst_782 : f32 to vector<8x128xf32>
    %1010 = arith.addf %1009, %1008 : vector<8x128xf32>
    %1011 = arith.divf %1009, %1010 : vector<8x128xf32>
    %1012 = math.tanh %1006 : vector<8x128xf32>
    %1013 = vector.extract_strided_slice %1011 {offsets = [0, 0], sizes = [8, 32], strides = [1, 1]} : vector<8x128xf32> to vector<8x32xf32>
    %1014 = vector.extract_strided_slice %1011 {offsets = [0, 32], sizes = [8, 32], strides = [1, 1]} : vector<8x128xf32> to vector<8x32xf32>
    %1015 = vector.extract_strided_slice %1012 {offsets = [0, 64], sizes = [8, 32], strides = [1, 1]} : vector<8x128xf32> to vector<8x32xf32>
    %1016 = vector.extract_strided_slice %1011 {offsets = [0, 96], sizes = [8, 32], strides = [1, 1]} : vector<8x128xf32> to vector<8x32xf32>
    %1017 = arith.mulf %1014, %1000 : vector<8x32xf32>
    %1018 = arith.mulf %1013, %1015 : vector<8x32xf32>
    %1019 = arith.addf %1017, %1018 : vector<8x32xf32>
    %1020 = math.tanh %1019 : vector<8x32xf32>
    %1021 = arith.mulf %1016, %1020 : vector<8x32xf32>
    %1022 = vector.extract_strided_slice %904 {offsets = [48, 0], sizes = [8, 128], strides = [1, 1]} : vector<64x128xf32> to vector<8x128xf32>
    %1023 = arith.truncf %1021 : vector<8x32xf32> to vector<8x32xbf16>
    %cst_783 = arith.constant dense<0.000000e+00> : vector<8x128xf32>
    %1024 = tpu.matmul %1023, %905, %cst_783 {dimension_numbers = #tpu.dot_dimension_numbers<[1], [0], [0], [1], [0, 0, 1, 1], [], []>} : vector<8x32xbf16>, vector<32x128xbf16>, vector<8x128xf32> -> vector<8x128xf32>
    %1025 = arith.addf %1022, %1024 : vector<8x128xf32>
    %1026 = arith.negf %1025 : vector<8x128xf32>
    %1027 = math.exp %1026 : vector<8x128xf32>
    %cst_784 = arith.constant 1.000000e+00 : f32
    %1028 = vector.broadcast %cst_784 : f32 to vector<8x128xf32>
    %1029 = arith.addf %1028, %1027 : vector<8x128xf32>
    %1030 = arith.divf %1028, %1029 : vector<8x128xf32>
    %1031 = math.tanh %1025 : vector<8x128xf32>
    %1032 = vector.extract_strided_slice %1030 {offsets = [0, 0], sizes = [8, 32], strides = [1, 1]} : vector<8x128xf32> to vector<8x32xf32>
    %1033 = vector.extract_strided_slice %1030 {offsets = [0, 32], sizes = [8, 32], strides = [1, 1]} : vector<8x128xf32> to vector<8x32xf32>
    %1034 = vector.extract_strided_slice %1031 {offsets = [0, 64], sizes = [8, 32], strides = [1, 1]} : vector<8x128xf32> to vector<8x32xf32>
    %1035 = vector.extract_strided_slice %1030 {offsets = [0, 96], sizes = [8, 32], strides = [1, 1]} : vector<8x128xf32> to vector<8x32xf32>
    %1036 = arith.mulf %1033, %1019 : vector<8x32xf32>
    %1037 = arith.mulf %1032, %1034 : vector<8x32xf32>
    %1038 = arith.addf %1036, %1037 : vector<8x32xf32>
    %1039 = math.tanh %1038 : vector<8x32xf32>
    %1040 = arith.mulf %1035, %1039 : vector<8x32xf32>
    %1041 = vector.extract_strided_slice %904 {offsets = [56, 0], sizes = [8, 128], strides = [1, 1]} : vector<64x128xf32> to vector<8x128xf32>
    %1042 = arith.truncf %1040 : vector<8x32xf32> to vector<8x32xbf16>
    %cst_785 = arith.constant dense<0.000000e+00> : vector<8x128xf32>
    %1043 = tpu.matmul %1042, %905, %cst_785 {dimension_numbers = #tpu.dot_dimension_numbers<[1], [0], [0], [1], [0, 0, 1, 1], [], []>} : vector<8x32xbf16>, vector<32x128xbf16>, vector<8x128xf32> -> vector<8x128xf32>
    %1044 = arith.addf %1041, %1043 : vector<8x128xf32>
    %1045 = arith.negf %1044 : vector<8x128xf32>
    %1046 = math.exp %1045 : vector<8x128xf32>
    %cst_786 = arith.constant 1.000000e+00 : f32
    %1047 = vector.broadcast %cst_786 : f32 to vector<8x128xf32>
    %1048 = arith.addf %1047, %1046 : vector<8x128xf32>
    %1049 = arith.divf %1047, %1048 : vector<8x128xf32>
    %1050 = math.tanh %1044 : vector<8x128xf32>
    %1051 = vector.extract_strided_slice %1049 {offsets = [0, 0], sizes = [8, 32], strides = [1, 1]} : vector<8x128xf32> to vector<8x32xf32>
    %1052 = vector.extract_strided_slice %1049 {offsets = [0, 32], sizes = [8, 32], strides = [1, 1]} : vector<8x128xf32> to vector<8x32xf32>
    %1053 = vector.extract_strided_slice %1050 {offsets = [0, 64], sizes = [8, 32], strides = [1, 1]} : vector<8x128xf32> to vector<8x32xf32>
    %1054 = vector.extract_strided_slice %1049 {offsets = [0, 96], sizes = [8, 32], strides = [1, 1]} : vector<8x128xf32> to vector<8x32xf32>
    %1055 = arith.mulf %1052, %1038 : vector<8x32xf32>
    %1056 = arith.mulf %1051, %1053 : vector<8x32xf32>
    %1057 = arith.addf %1055, %1056 : vector<8x32xf32>
    %1058 = math.tanh %1057 : vector<8x32xf32>
    %1059 = arith.mulf %1054, %1058 : vector<8x32xf32>
    %1060 = tpu.concatenate %1059, %1057 in 1 : vector<8x32xf32>, vector<8x32xf32> -> vector<8x64xf32>
    %c0_i32_787 = arith.constant 0 : i32
    %1061 = tpu.memref_slice %arg17[%c0_i32_787] : memref<2x!tpu.dma_semaphore, #tpu.memory_space<semaphore_mem>> -> memref<1x!tpu.dma_semaphore, #tpu.memory_space<semaphore_mem>>
    %1062 = tpu.memref_squeeze %1061 : memref<1x!tpu.dma_semaphore, #tpu.memory_space<semaphore_mem>> -> memref<!tpu.dma_semaphore, #tpu.memory_space<semaphore_mem>>
    tpu.wait_dma2 semaphore(%1062 : memref<!tpu.dma_semaphore, #tpu.memory_space<semaphore_mem>>) src(%arg4 : memref<128x64xbf16, #tpu.memory_space<any>>) dst(%arg15 : memref<128x64xbf16, #tpu.memory_space<vmem>>)
    %c0_788 = arith.constant 0 : index
    %c0_789 = arith.constant 0 : index
    %1063 = vector.load %arg3[%c0_788, %c0_789] : memref<8x128xf32, #tpu.memory_space<vmem>>, vector<8x128xf32>
    %1064 = arith.truncf %1063 : vector<8x128xf32> to vector<8x128xbf16>
    %c0_790 = arith.constant 0 : index
    %c0_791 = arith.constant 0 : index
    %1065 = vector.load %arg15[%c0_790, %c0_791] : memref<128x64xbf16, #tpu.memory_space<vmem>>, vector<128x64xbf16>
    %cst_792 = arith.constant dense<0.000000e+00> : vector<8x64xf32>
    %1066 = tpu.matmul %1064, %1065, %cst_792 {dimension_numbers = #tpu.dot_dimension_numbers<[1], [0], [0], [1], [0, 0, 1, 1], [], []>} : vector<8x128xbf16>, vector<128x64xbf16>, vector<8x64xf32> -> vector<8x64xf32>
    %c0_793 = arith.constant 0 : index
    %c0_794 = arith.constant 0 : index
    %1067 = vector.load %arg5[%c0_793, %c0_794] : memref<1x64xf32, #tpu.memory_space<vmem>>, vector<1x64xf32>
    %1068 = vector.broadcast %1067 : vector<1x64xf32> to vector<8x64xf32>
    %1069 = arith.addf %1066, %1068 : vector<8x64xf32>
    %1070 = math.tanh %1069 : vector<8x64xf32>
    %1071 = arith.mulf %1070, %1060 : vector<8x64xf32>
    %1072 = arith.truncf %1071 : vector<8x64xf32> to vector<8x64xbf16>
    %c0_795 = arith.constant 0 : index
    %c0_796 = arith.constant 0 : index
    %1073 = vector.load %arg10[%c0_795, %c0_796] : memref<64x128xbf16, #tpu.memory_space<vmem>>, vector<64x128xbf16>
    %cst_797 = arith.constant dense<0.000000e+00> : vector<8x128xf32>
    %1074 = tpu.matmul %1072, %1073, %cst_797 {dimension_numbers = #tpu.dot_dimension_numbers<[1], [0], [0], [1], [0, 0, 1, 1], [], []>} : vector<8x64xbf16>, vector<64x128xbf16>, vector<8x128xf32> -> vector<8x128xf32>
    %c0_798 = arith.constant 0 : index
    %c0_799 = arith.constant 0 : index
    %1075 = vector.load %arg11[%c0_798, %c0_799] : memref<1x128xf32, #tpu.memory_space<vmem>>, vector<1x128xf32>
    %1076 = vector.broadcast %1075 : vector<1x128xf32> to vector<8x128xf32>
    %1077 = arith.addf %1074, %1076 : vector<8x128xf32>
    %1078 = math.tanh %1077 : vector<8x128xf32>
    %1079 = arith.truncf %1078 : vector<8x128xf32> to vector<8x128xbf16>
    %c0_800 = arith.constant 0 : index
    %c0_801 = arith.constant 0 : index
    %1080 = vector.load %arg12[%c0_800, %c0_801] : memref<128x128xbf16, #tpu.memory_space<vmem>>, vector<128x128xbf16>
    %cst_802 = arith.constant dense<0.000000e+00> : vector<8x128xf32>
    %1081 = tpu.matmul %1079, %1080, %cst_802 {dimension_numbers = #tpu.dot_dimension_numbers<[1], [0], [0], [1], [0, 0, 1, 1], [], []>} : vector<8x128xbf16>, vector<128x128xbf16>, vector<8x128xf32> -> vector<8x128xf32>
    %c0_803 = arith.constant 0 : index
    %c0_804 = arith.constant 0 : index
    %1082 = vector.load %arg13[%c0_803, %c0_804] : memref<1x128xf32, #tpu.memory_space<vmem>>, vector<1x128xf32>
    %1083 = vector.broadcast %1082 : vector<1x128xf32> to vector<8x128xf32>
    %1084 = arith.addf %1081, %1083 : vector<8x128xf32>
    %c0_805 = arith.constant 0 : index
    %c0_806 = arith.constant 0 : index
    %1085 = vector.load %arg14[%c0_805, %c0_806] : memref<8x128xf32, #tpu.memory_space<vmem>>, vector<8x128xf32>
    tpu.vector_store %arg14[%c0_805, %c0_806], %1084 {strides = array<i32>} : memref<8x128xf32, #tpu.memory_space<vmem>>, vector<8x128xf32>,
    return
  }
  func.func @transform_0(%arg0: i32, %arg1: memref<1xi32, #tpu.memory_space<smem>>, %arg2: memref<8x16xi32, #tpu.memory_space<smem>>) -> (i32, i32) {
    %c0_i32 = arith.constant 0 : i32
    %c0_i32_0 = arith.constant 0 : i32
    return %arg0, %c0_i32 : i32, i32
  }
  func.func @transform_2(%arg0: i32, %arg1: memref<1xi32, #tpu.memory_space<smem>>, %arg2: memref<8x16xi32, #tpu.memory_space<smem>>) -> (i32, i32) {
    %c0_i32 = arith.constant 0 : i32
    %c0_i32_0 = arith.constant 0 : i32
    %c0_i32_1 = arith.constant 0 : i32
    return %c0_i32, %c0_i32_0 : i32, i32
  }
  func.func @transform_4(%arg0: i32, %arg1: memref<1xi32, #tpu.memory_space<smem>>, %arg2: memref<8x16xi32, #tpu.memory_space<smem>>) -> (i32, i32) {
    %c0_i32 = arith.constant 0 : i32
    %c0_i32_0 = arith.constant 0 : i32
    %c0_i32_1 = arith.constant 0 : i32
    return %c0_i32, %c0_i32_0 : i32, i32
  }
  func.func @transform_5(%arg0: i32, %arg1: memref<1xi32, #tpu.memory_space<smem>>, %arg2: memref<8x16xi32, #tpu.memory_space<smem>>) -> (i32, i32) {
    %c0_i32 = arith.constant 0 : i32
    %c0_i32_0 = arith.constant 0 : i32
    %c0_i32_1 = arith.constant 0 : i32
    return %c0_i32, %c0_i32_0 : i32, i32
  }
  func.func @transform_6(%arg0: i32, %arg1: memref<1xi32, #tpu.memory_space<smem>>, %arg2: memref<8x16xi32, #tpu.memory_space<smem>>) -> (i32, i32) {
    %c0_i32 = arith.constant 0 : i32
    %c0_i32_0 = arith.constant 0 : i32
    %c0_i32_1 = arith.constant 0 : i32
    return %c0_i32, %c0_i32_0 : i32, i32
  }
  func.func @transform_7(%arg0: i32, %arg1: memref<1xi32, #tpu.memory_space<smem>>, %arg2: memref<8x16xi32, #tpu.memory_space<smem>>) -> (i32, i32) {
    %c0_i32 = arith.constant 0 : i32
    %c0_i32_0 = arith.constant 0 : i32
    %c0_i32_1 = arith.constant 0 : i32
    return %c0_i32, %c0_i32_0 : i32, i32
  }
  func.func @transform_8(%arg0: i32, %arg1: memref<1xi32, #tpu.memory_space<smem>>, %arg2: memref<8x16xi32, #tpu.memory_space<smem>>) -> (i32, i32) {
    %c0_i32 = arith.constant 0 : i32
    %c0_i32_0 = arith.constant 0 : i32
    %c0_i32_1 = arith.constant 0 : i32
    return %c0_i32, %c0_i32_0 : i32, i32
  }
  func.func @transform_9(%arg0: i32, %arg1: memref<1xi32, #tpu.memory_space<smem>>, %arg2: memref<8x16xi32, #tpu.memory_space<smem>>) -> (i32, i32) {
    %c0_i32 = arith.constant 0 : i32
    %c0_i32_0 = arith.constant 0 : i32
    %c0_i32_1 = arith.constant 0 : i32
    return %c0_i32, %c0_i32_0 : i32, i32
  }
  func.func @transform_10(%arg0: i32, %arg1: memref<1xi32, #tpu.memory_space<smem>>, %arg2: memref<8x16xi32, #tpu.memory_space<smem>>) -> (i32, i32) {
    %c0_i32 = arith.constant 0 : i32
    %c0_i32_0 = arith.constant 0 : i32
    %c0_i32_1 = arith.constant 0 : i32
    return %c0_i32, %c0_i32_0 : i32, i32
  }
  func.func @transform_11(%arg0: i32, %arg1: memref<1xi32, #tpu.memory_space<smem>>, %arg2: memref<8x16xi32, #tpu.memory_space<smem>>) -> (i32, i32) {
    %c0_i32 = arith.constant 0 : i32
    %c0_i32_0 = arith.constant 0 : i32
    return %arg0, %c0_i32 : i32, i32
  }
}

</mosaic_0001>

<bundles_post_ra>
// kernel: vqa_forward.1
= control target key start
LH: loop header
LB: loop body
LE: loop exit
PB: predicated region body
PF: predicated region fallthrough
CT: control target
= control target key end

     0   :  { %s5447_s27 = smov [#allocation7]   ;;  %s6102_s0 = inlined_call_operand.<no memory space> [shape: s32[1], index: 0, kind: input, shape index: {}]   ;;  %s6103_s1 = inlined_call_operand.vmem [shape: s32[8,16], index: 1, kind: input, shape index: {}]   ;;  %s6104_s2 = inlined_call_operand.vmem [shape: f32[16,128], index: 2, kind: input, shape index: {}]   ;;  %s6105_s3 = inlined_call_operand.vmem [shape: bf16[128,64], index: 3, kind: input, shape index: {}]   ;;  %s6106_s4 = inlined_call_operand.vmem [shape: f32[1,64], index: 4, kind: input, shape index: {}]   ;;  %s6107_s5 = inlined_call_operand.vmem [shape: f32[50,128], index: 5, kind: input, shape index: {}]   ;;  %s6108_s6 = inlined_call_operand.vmem [shape: bf16[128,128], index: 6, kind: input, shape index: {}]   ;;  %s6109_s7 = inlined_call_operand.vmem [shape: bf16[32,128], index: 7, kind: input, shape index: {}]   ;;  %s6110_s8 = inlined_call_operand.vmem [shape: f32[1,128], index: 8, kind: input, shape index: {}]   ;;  %s6111_s9 = inlined_call_operand.vmem [shape: bf16[64,128], index: 9, kind: input, shape index: {}]   ;;  %s6112_s10 = inlined_call_operand.vmem [shape: f32[1,128], index: 10, kind: input, shape index: {}]   ;;  %s6113_s11 = inlined_call_operand.vmem [shape: bf16[128,128], index: 11, kind: input, shape index: {}]   ;;  %s6114_s12 = inlined_call_operand.vmem [shape: f32[1,128], index: 12, kind: input, shape index: {}]   ;;  %s6115_s13 = inlined_call_operand.vmem [shape: f32[16,128], index: 13, kind: output, shape index: {}]  }
   0x1   :  { %6119 = sst [smem:[#allocation78_spill]] %s6104_s2  ;;  %s20_s26 = sshll.u32 %s6103_s1, 4  ;;  %s21_s26 = int_to_ptr.vmem [resolvable:$true] %s20_s26 }
   0x2   :  { %6120 = sst [smem:[#allocation79_spill]] %s6105_s3 }
   0x3   :  { %6121 = sst [smem:[#allocation80_spill]] %s6106_s4 }
   0x4   :  { %6122 = sst [smem:[#allocation81_spill]] %s6111_s9 }
   0x5   :  { %6123 = sst [smem:[#allocation82_spill]] %s6112_s10 }
   0x6   :  { %6124 = sst [smem:[#allocation83_spill]] %s6113_s11 }
   0x7   :  { %6125 = sst [smem:[#allocation84_spill]] %s6114_s12 }
   0x8   :  { %6126 = sst [smem:[#allocation85_spill]] %s6115_s13 }
   0x9   :  { %23 = dma.vmem_to_smem %s21_s26, 128, %s5447_s27, [#allocation5] }
   0xa   :  { %5437 = dma.done.wait [#allocation5], 128 }
   0xb   :  { %5438 = vsyncadd [#allocation5], 4294967168 }
   0xc   :  { %26 = sfence }
   0xd   :  { %s5524_s28 = smov 0  }
   0xe LB: > { %6127 = sst [smem:[#allocation76_spill]] %s5445_s28  ;;  %s4543_s0 = sadd.s32 4294967295, %s5445_s28   ;;  %s5445_s28 = sphi %s5524_s28, %s32_s28  }
   0xf   : > { %p4547_p0 = scmp.ge.s32.totalorder %s5445_s28, 1  ;;  %p299_p1 = scmp.lt.s32.totalorder %s5445_s28, 3 }
  0x11   : > { %p300_p2 = pnand %p4547_p0, %p299_p1 }
  0x13   : > { %303 = sbr.rel (%p300_p2) target bundleno = 6167 (0x1817), region = 56 }
  0x18   : > { %p333_p3 = scmp.lt.s32.totalorder %s4543_s0, 1  ;;  %s6128_s3 = sld [smem:[#allocation79_spill]] }
  0x19   : > { %s6129_s2 = sld [smem:[#allocation78_spill]] }
  0x1a   : > { %s334_s19 = scalar_select %p333_p3, %s4543_s0, 1 }
  0x1b   : > { %s6130_s13 = sld [smem:[#allocation85_spill]] }
  0x1c   : > { %s4548_s24 = sshll.u32 %s334_s19, 3 }
  0x1e   : > { %v352_v0 = vld [vmem:[%s6128_s3] sm:$0xff]  ;;  %v354_v1 = vld [vmem:[%s6128_s3 + $0x8] sm:$0xff]  ;;  %v356_v2 = vld [vmem:[%s6128_s3 + $0x10] sm:$0xff] }
  0x1f   : > { %353 = vst [vmem:[#allocation2 + $0x30] sm:$0xff] %v352_v0  ;;  %v358_v3 = vld [vmem:[%s6128_s3 + $0x18] sm:$0xff]  ;;  %v360_v4 = vld [vmem:[%s6128_s3 + $0x20] sm:$0xff]  ;;  %v362_v5 = vld [vmem:[%s6128_s3 + $0x28] sm:$0xff]  ;;  %s5556_s29 = scalar_lea.vmem %s6129_s2, %s4548_s24 }
  0x20   : > { %355 = vst [vmem:[#allocation2] sm:$0xff] %v354_v1  ;;  %v364_v6 = vld [vmem:[%s6128_s3 + $0x30] sm:$0xff]  ;;  %v366_v7 = vld [vmem:[%s6128_s3 + $0x38] sm:$0xff] }
  0x21   : > { %357 = vst [vmem:[#allocation2 + $0x18] sm:$0xff] %v356_v2  ;;  %s5561_s15 = scalar_lea.vmem %s6130_s13, %s4548_s24 }
  0x22   : > { %359 = vst [vmem:[#allocation2 + $0x10] sm:$0xff] %v358_v3  ;;  %6131 = sst [smem:[#allocation77_spill]] %s5561_s15 }
  0x23   : > { %361 = vst [vmem:[#allocation2 + $0x8] sm:$0xff] %v360_v4 }
  0x24   : > { %363 = vst [vmem:[#allocation2 + $0x20] sm:$0xff] %v362_v5 }
  0x25   : > { %365 = vst [vmem:[#allocation2 + $0x28] sm:$0xff] %v364_v6 }
  0x26   : > { %367 = vst [vmem:[#allocation2 + $0x38] sm:$0xff] %v366_v7 }
  0x27   : > { %373 = vsyncadd [#allocation4], 1024  ;;  %s5566_s18 = sshll.u32 %s4543_s0, 3 }
  0x28   : > { %s375_s19 = sld [smem:[#allocation7 + %s5566_s18]] }
  0x2e   : > { %p376_p4 = scmp.gt.s32.totalorder %s375_s19, 0  ;;  %p4551_p5 = scmp.lt.s32.totalorder %s375_s19, 49 }
  0x30   : > { %s6140_s19 = smov (!%p376_p4, %s375_s19), 0 }
  0x31   : > { %s6142_s19 = smov (!%p4551_p5, %s6140_s19), 49 }
  0x32   : > { %s380_s22 = scalar_lea.vmem %s6107_s5, %s6142_s19 }
  0x33   : > { %v396_v8 = vld [vmem:[%s380_s22] sm:$0x1] }
  0x34   : > { %397 = vst [vmem:[#allocation3] sm:$0x1] %v396_v8 }
  0x35   : > { %415 = vsyncadd [#allocation4 + $0x1], 16  ;;  %s5573_s23 = sadd.s32 1, %s5566_s18 }
  0x36   : > { %s417_s24 = sld [smem:[#allocation7 + %s5573_s23]] }
  0x3c   : > { %p418_p6 = scmp.gt.s32.totalorder %s417_s24, 0  ;;  %p4556_p7 = scmp.lt.s32.totalorder %s417_s24, 49 }
  0x3e   : > { %s6144_s24 = smov (!%p418_p6, %s417_s24), 0 }
  0x3f   : > { %s6146_s24 = smov (!%p4556_p7, %s6144_s24), 49 }
  0x40   : > { %s422_s26 = scalar_lea.vmem %s6107_s5, %s6146_s24 }
  0x41   : > { %v438_v9 = vld [vmem:[%s422_s26] sm:$0x1] }
  0x42   : > { %439 = vst [vmem:[#allocation3 + $0x1] sm:$0x1] %v438_v9 }
  0x43   : > { %457 = vsyncadd [#allocation4 + $0x1], 16  ;;  %s5580_s27 = sadd.s32 2, %s5566_s18 }
  0x44   : > { %s459_s1 = sld [smem:[#allocation7 + %s5580_s27]] }
  0x4a   : > { %p460_p8 = scmp.gt.s32.totalorder %s459_s1, 0  ;;  %p4561_p9 = scmp.lt.s32.totalorder %s459_s1, 49 }
  0x4c   : > { %s6148_s1 = smov (!%p460_p8, %s459_s1), 0 }
  0x4d   : > { %s6150_s1 = smov (!%p4561_p9, %s6148_s1), 49 }
  0x4e   : > { %s464_s16 = scalar_lea.vmem %s6107_s5, %s6150_s1 }
  0x4f   : > { %v480_v10 = vld [vmem:[%s464_s16] sm:$0x1] }
  0x50   : > { %481 = vst [vmem:[#allocation3 + $0x2] sm:$0x1] %v480_v10 }
  0x51   : > { %499 = vsyncadd [#allocation4 + $0x1], 16  ;;  %s5587_s17 = sadd.s32 3, %s5566_s18 }
  0x52   : > { %s501_s19 = sld [smem:[#allocation7 + %s5587_s17]] }
  0x58   : > { %p502_p10 = scmp.gt.s32.totalorder %s501_s19, 0  ;;  %p4566_p11 = scmp.lt.s32.totalorder %s501_s19, 49 }
  0x5a   : > { %s6152_s19 = smov (!%p502_p10, %s501_s19), 0 }
  0x5b   : > { %s6154_s19 = smov (!%p4566_p11, %s6152_s19), 49 }
  0x5c   : > { %s506_s22 = scalar_lea.vmem %s6107_s5, %s6154_s19 }
  0x5d   : > { %v522_v11 = vld [vmem:[%s506_s22] sm:$0x1] }
  0x5e   : > { %523 = vst [vmem:[#allocation3 + $0x3] sm:$0x1] %v522_v11 }
  0x5f   : > { %541 = vsyncadd [#allocation4 + $0x1], 16  ;;  %s5594_s24 = sadd.s32 4, %s5566_s18 }
  0x60   : > { %s543_s0 = sld [smem:[#allocation7 + %s5594_s24]] }
  0x66   : > { %p544_p12 = scmp.gt.s32.totalorder %s543_s0, 0  ;;  %p4571_p13 = scmp.lt.s32.totalorder %s543_s0, 49 }
  0x68   : > { %s6156_s0 = smov (!%p544_p12, %s543_s0), 0 }
  0x69   : > { %s6158_s0 = smov (!%p4571_p13, %s6156_s0), 49 }
  0x6a   : > { %s548_s1 = scalar_lea.vmem %s6107_s5, %s6158_s0 }
  0x6b   : > { %v564_v12 = vld [vmem:[%s548_s1] sm:$0x1] }
  0x6c   : > { %565 = vst [vmem:[#allocation3 + $0x4] sm:$0x1] %v564_v12 }
  0x6d   : > { %583 = vsyncadd [#allocation4 + $0x1], 16  ;;  %s5601_s30 = sadd.s32 5, %s5566_s18 }
  0x6e   : > { %s585_s14 = sld [smem:[#allocation7 + %s5601_s30]] }
  0x74   : > { %p586_p0 = scmp.gt.s32.totalorder %s585_s14, 0  ;;  %p4576_p1 = scmp.lt.s32.totalorder %s585_s14, 49 }
  0x76   : > { %s6160_s14 = smov (!%p586_p0, %s585_s14), 0 }
  0x77   : > { %s6162_s14 = smov (!%p4576_p1, %s6160_s14), 49 }
  0x78   : > { %s590_s20 = scalar_lea.vmem %s6107_s5, %s6162_s14 }
  0x79   : > { %v606_v13 = vld [vmem:[%s590_s20] sm:$0x1] }
  0x7a   : > { %607 = vst [vmem:[#allocation3 + $0x5] sm:$0x1] %v606_v13 }
  0x7b   : > { %625 = vsyncadd [#allocation4 + $0x1], 16  ;;  %s5608_s21 = sadd.s32 6, %s5566_s18 }
  0x7c   : > { %s627_s22 = sld [smem:[#allocation7 + %s5608_s21]] }
  0x82   : > { %p628_p2 = scmp.gt.s32.totalorder %s627_s22, 0  ;;  %p4581_p3 = scmp.lt.s32.totalorder %s627_s22, 49 }
  0x84   : > { %s6164_s22 = smov (!%p628_p2, %s627_s22), 0 }
  0x85   : > { %s6166_s22 = smov (!%p4581_p3, %s6164_s22), 49 }
  0x86   : > { %s632_s26 = scalar_lea.vmem %s6107_s5, %s6166_s22 }
  0x87   : > { %v648_v14 = vld [vmem:[%s632_s26] sm:$0x1] }
  0x88   : > { %649 = vst [vmem:[#allocation3 + $0x6] sm:$0x1] %v648_v14 }
  0x89   : > { %667 = vsyncadd [#allocation4 + $0x1], 16  ;;  %s5615_s1 = sadd.s32 7, %s5566_s18 }
  0x8a   : > { %s669_s14 = sld [smem:[#allocation7 + %s5615_s1]] }
  0x90   : > { %p670_p4 = scmp.gt.s32.totalorder %s669_s14, 0  ;;  %p4586_p5 = scmp.lt.s32.totalorder %s669_s14, 49 }
  0x92   : > { %s6168_s14 = smov (!%p670_p4, %s669_s14), 0 }
  0x93   : > { %s6170_s14 = smov (!%p4586_p5, %s6168_s14), 49 }
  0x94   : > { %s674_s20 = scalar_lea.vmem %s6107_s5, %s6170_s14 }
  0x95   : > { %v690_v15 = vld [vmem:[%s674_s20] sm:$0x1] }
  0x96   : > { %691 = vst [vmem:[#allocation3 + $0x7] sm:$0x1] %v690_v15 }
  0x97   : > { %709 = vsyncadd [#allocation4 + $0x1], 16  ;;  %s710_s22 = sshra.s32 %s5566_s18, 7  ;;  %s5623_s0 = sand.u32 127, %s5566_s18 }
  0x98   : > { %s5625_s25 = sshll.u32 %s710_s22, 7 }
  0x99   : > { %s5084_s26 = sadd.s32 128, %s5625_s25 }
  0x9a   : > { %s716_s2 = sadd.s32 %s5084_s26, %s5623_s0 }
  0x9b   : > { %s717_s3 = sld [smem:[#allocation7 + %s716_s2]] }
  0xa1   : > { %p718_p6 = scmp.gt.s32.totalorder %s717_s3, 0  ;;  %p4592_p7 = scmp.lt.s32.totalorder %s717_s3, 49 }
  0xa3   : > { %s6172_s3 = smov (!%p718_p6, %s717_s3), 0 }
  0xa4   : > { %s6174_s3 = smov (!%p4592_p7, %s6172_s3), 49 }
  0xa5   : > { %s722_s19 = scalar_lea.vmem %s6107_s5, %s6174_s3 }
  0xa6   : > { %v738_v16 = vld [vmem:[%s722_s19] sm:$0x1] }
  0xa7   : > { %739 = vst [vmem:[#allocation3 + $0x8] sm:$0x1] %v738_v16 }
  0xa8   : > { %757 = vsyncadd [#allocation4 + $0x1], 16  ;;  %s758_s18 = sshra.s32 %s5573_s23, 7  ;;  %s5634_s20 = sand.u32 127, %s5573_s23 }
  0xa9   : > { %s5636_s22 = sshll.u32 %s758_s18, 7 }
  0xaa   : > { %s5088_s2 = sadd.s32 128, %s5636_s22 }
  0xab   : > { %s764_s26 = sadd.s32 %s5088_s2, %s5634_s20 }
  0xac   : > { %s765_s13 = sld [smem:[#allocation7 + %s764_s26]] }
  0xb2   : > { %p766_p8 = scmp.gt.s32.totalorder %s765_s13, 0  ;;  %p4598_p9 = scmp.lt.s32.totalorder %s765_s13, 49 }
  0xb4   : > { %s6176_s13 = smov (!%p766_p8, %s765_s13), 0 }
  0xb5   : > { %s6178_s13 = smov (!%p4598_p9, %s6176_s13), 49 }
  0xb6   : > { %s770_s16 = scalar_lea.vmem %s6107_s5, %s6178_s13 }
  0xb7   : > { %v786_v17 = vld [vmem:[%s770_s16] sm:$0x1] }
  0xb8   : > { %787 = vst [vmem:[#allocation3 + $0x9] sm:$0x1] %v786_v17 }
  0xb9   : > { %805 = vsyncadd [#allocation4 + $0x1], 16  ;;  %s806_s23 = sshra.s32 %s5580_s27, 7  ;;  %s5645_s19 = sand.u32 127, %s5580_s27 }
  0xba   : > { %s5647_s18 = sshll.u32 %s806_s23, 7 }
  0xbb   : > { %s5092_s2 = sadd.s32 128, %s5647_s18 }
  0xbc   : > { %s812_s26 = sadd.s32 %s5092_s2, %s5645_s19 }
  0xbd   : > { %s813_s28 = sld [smem:[#allocation7 + %s812_s26]] }
  0xc3   : > { %p814_p10 = scmp.gt.s32.totalorder %s813_s28, 0  ;;  %p4604_p11 = scmp.lt.s32.totalorder %s813_s28, 49 }
  0xc5   : > { %s6180_s28 = smov (!%p814_p10, %s813_s28), 0 }
  0xc6   : > { %s6182_s28 = smov (!%p4604_p11, %s6180_s28), 49 }
  0xc7   : > { %s818_s14 = scalar_lea.vmem %s6107_s5, %s6182_s28 }
  0xc8   : > { %v834_v18 = vld [vmem:[%s818_s14] sm:$0x1] }
  0xc9   : > { %835 = vst [vmem:[#allocation3 + $0xa] sm:$0x1] %v834_v18 }
  0xca   : > { %853 = vsyncadd [#allocation4 + $0x1], 16  ;;  %s854_s27 = sshra.s32 %s5587_s17, 7  ;;  %s5656_s16 = sand.u32 127, %s5587_s17 }
  0xcb   : > { %s5658_s23 = sshll.u32 %s854_s27, 7 }
  0xcc   : > { %s5096_s2 = sadd.s32 128, %s5658_s23 }
  0xcd   : > { %s860_s26 = sadd.s32 %s5096_s2, %s5656_s16 }
  0xce   : > { %s861_s12 = sld [smem:[#allocation7 + %s860_s26]] }
  0xd4   : > { %p862_p12 = scmp.gt.s32.totalorder %s861_s12, 0  ;;  %p4610_p13 = scmp.lt.s32.totalorder %s861_s12, 49 }
  0xd6   : > { %s6184_s12 = smov (!%p862_p12, %s861_s12), 0 }
  0xd7   : > { %s6186_s12 = smov (!%p4610_p13, %s6184_s12), 49 }
  0xd8   : > { %s866_s3 = scalar_lea.vmem %s6107_s5, %s6186_s12 }
  0xd9   : > { %v882_v19 = vld [vmem:[%s866_s3] sm:$0x1] }
  0xda   : > { %883 = vst [vmem:[#allocation3 + $0xb] sm:$0x1] %v882_v19 }
  0xdb   : > { %901 = vsyncadd [#allocation4 + $0x1], 16  ;;  %s902_s17 = sshra.s32 %s5594_s24, 7  ;;  %s5667_s14 = sand.u32 127, %s5594_s24 }
  0xdc   : > { %s5669_s27 = sshll.u32 %s902_s17, 7 }
  0xdd   : > { %s5100_s2 = sadd.s32 128, %s5669_s27 }
  0xde   : > { %s908_s26 = sadd.s32 %s5100_s2, %s5667_s14 }
  0xdf   : > { %s909_s10 = sld [smem:[#allocation7 + %s908_s26]] }
  0xe5   : > { %p910_p0 = scmp.gt.s32.totalorder %s909_s10, 0  ;;  %p4616_p1 = scmp.lt.s32.totalorder %s909_s10, 49 }
  0xe7   : > { %s6188_s10 = smov (!%p910_p0, %s909_s10), 0 }
  0xe8   : > { %s6190_s10 = smov (!%p4616_p1, %s6188_s10), 49 }
  0xe9   : > { %s914_s13 = scalar_lea.vmem %s6107_s5, %s6190_s10 }
  0xea   : > { %v930_v20 = vld [vmem:[%s914_s13] sm:$0x1] }
  0xeb   : > { %931 = vst [vmem:[#allocation3 + $0xc] sm:$0x1] %v930_v20 }
  0xec   : > { %949 = vsyncadd [#allocation4 + $0x1], 16  ;;  %s950_s24 = sshra.s32 %s5601_s30, 7  ;;  %s5678_s3 = sand.u32 127, %s5601_s30 }
  0xed   : > { %s5680_s17 = sshll.u32 %s950_s24, 7 }
  0xee   : > { %s5104_s2 = sadd.s32 128, %s5680_s17 }
  0xef   : > { %s956_s26 = sadd.s32 %s5104_s2, %s5678_s3 }
  0xf0   : > { %s957_s15 = sld [smem:[#allocation7 + %s956_s26]] }
  0xf6   : > { %p958_p2 = scmp.gt.s32.totalorder %s957_s15, 0  ;;  %p4622_p3 = scmp.lt.s32.totalorder %s957_s15, 49 }
  0xf8   : > { %s6192_s15 = smov (!%p958_p2, %s957_s15), 0 }
  0xf9   : > { %s6194_s15 = smov (!%p4622_p3, %s6192_s15), 49 }
  0xfa   : > { %s962_s28 = scalar_lea.vmem %s6107_s5, %s6194_s15 }
  0xfb   : > { %v978_v21 = vld [vmem:[%s962_s28] sm:$0x1] }
  0xfc   : > { %979 = vst [vmem:[#allocation3 + $0xd] sm:$0x1] %v978_v21 }
  0xfd   : > { %997 = vsyncadd [#allocation4 + $0x1], 16  ;;  %s998_s30 = sshra.s32 %s5608_s21, 7  ;;  %s5689_s13 = sand.u32 127, %s5608_s21 }
  0xfe   : > { %s5691_s24 = sshll.u32 %s998_s30, 7 }
  0xff   : > { %s5108_s2 = sadd.s32 128, %s5691_s24 }
 0x100   : > { %s1004_s26 = sadd.s32 %s5108_s2, %s5689_s13 }
 0x101   : > { %s1005_s4 = sld [smem:[#allocation7 + %s1004_s26]] }
 0x107   : > { %p1006_p4 = scmp.gt.s32.totalorder %s1005_s4, 0  ;;  %p4628_p5 = scmp.lt.s32.totalorder %s1005_s4, 49 }
 0x109   : > { %s6196_s4 = smov (!%p1006_p4, %s1005_s4), 0 }
 0x10a   : > { %s6198_s4 = smov (!%p4628_p5, %s6196_s4), 49 }
 0x10b   : > { %s1010_s12 = scalar_lea.vmem %s6107_s5, %s6198_s4 }
 0x10c   : > { %v1026_v22 = vld [vmem:[%s1010_s12] sm:$0x1] }
 0x10d   : > { %1027 = vst [vmem:[#allocation3 + $0xe] sm:$0x1] %v1026_v22 }
 0x10e   : > { %1045 = vsyncadd [#allocation4 + $0x1], 16  ;;  %s1046_s21 = sshra.s32 %s5615_s1, 7  ;;  %s5700_s28 = sand.u32 127, %s5615_s1 }
 0x10f   : > { %s5702_s30 = sshll.u32 %s1046_s21, 7 }
 0x110   : > { %s5112_s2 = sadd.s32 128, %s5702_s30 }
 0x111   : > { %s1052_s26 = sadd.s32 %s5112_s2, %s5700_s28 }
 0x112   : > { %s1053_s11 = sld [smem:[#allocation7 + %s1052_s26]] }
 0x118   : > { %p1054_p6 = scmp.gt.s32.totalorder %s1053_s11, 0  ;;  %p4634_p7 = scmp.lt.s32.totalorder %s1053_s11, 49 }
 0x11a   : > { %s6200_s11 = smov (!%p1054_p6, %s1053_s11), 0 }
 0x11b   : > { %s6202_s11 = smov (!%p4634_p7, %s6200_s11), 49 }
 0x11c   : > { %s1058_s10 = scalar_lea.vmem %s6107_s5, %s6202_s11 }
 0x11d   : > { %v1074_v23 = vld [vmem:[%s1058_s10] sm:$0x1] }
 0x11e   : > { %1075 = vst [vmem:[#allocation3 + $0xf] sm:$0x1] %v1074_v23 }
 0x11f   : > { %1093 = vsyncadd [#allocation4 + $0x1], 16  ;;  %s5116_s1 = sadd.s32 256, %s5625_s25 }
 0x120   : > { %s1096_s12 = sadd.s32 %s5116_s1, %s5623_s0 }
 0x121   : > { %s1097_s21 = sld [smem:[#allocation7 + %s1096_s12]] }
 0x127   : > { %p1098_p8 = scmp.gt.s32.totalorder %s1097_s21, 0  ;;  %p4640_p9 = scmp.lt.s32.totalorder %s1097_s21, 49 }
 0x129   : > { %s6204_s21 = smov (!%p1098_p8, %s1097_s21), 0 }
 0x12a   : > { %s6206_s21 = smov (!%p4640_p9, %s6204_s21), 49 }
 0x12b   : > { %s1102_s9 = scalar_lea.vmem %s6107_s5, %s6206_s21 }
 0x12c   : > { %v1118_v24 = vld [vmem:[%s1102_s9] sm:$0x1] }
 0x12d   : > { %1119 = vst [vmem:[#allocation3 + $0x10] sm:$0x1] %v1118_v24 }
 0x12e   : > { %1137 = vsyncadd [#allocation4 + $0x1], 16  ;;  %s5120_s11 = sadd.s32 256, %s5636_s22 }
 0x12f   : > { %s1140_s4 = sadd.s32 %s5120_s11, %s5634_s20 }
 0x130   : > { %s1141_s15 = sld [smem:[#allocation7 + %s1140_s4]] }
 0x136   : > { %p1142_p10 = scmp.gt.s32.totalorder %s1141_s15, 0  ;;  %p4646_p11 = scmp.lt.s32.totalorder %s1141_s15, 49 }
 0x138   : > { %s6208_s15 = smov (!%p1142_p10, %s1141_s15), 0 }
 0x139   : > { %s6210_s15 = smov (!%p4646_p11, %s6208_s15), 49 }
 0x13a   : > { %s1146_s12 = scalar_lea.vmem %s6107_s5, %s6210_s15 }
 0x13b   : > { %v1162_v25 = vld [vmem:[%s1146_s12] sm:$0x1] }
 0x13c   : > { %1163 = vst [vmem:[#allocation3 + $0x11] sm:$0x1] %v1162_v25 }
 0x13d   : > { %1181 = vsyncadd [#allocation4 + $0x1], 16  ;;  %s5124_s9 = sadd.s32 256, %s5647_s18 }
 0x13e   : > { %s1184_s21 = sadd.s32 %s5124_s9, %s5645_s19 }
 0x13f   : > { %s1185_s2 = sld [smem:[#allocation7 + %s1184_s21]] }
 0x145   : > { %p1186_p12 = scmp.gt.s32.totalorder %s1185_s2, 0  ;;  %p4652_p13 = scmp.lt.s32.totalorder %s1185_s2, 49 }
 0x147   : > { %s6212_s2 = smov (!%p1186_p12, %s1185_s2), 0 }
 0x148   : > { %s6214_s2 = smov (!%p4652_p13, %s6212_s2), 49 }
 0x149   : > { %s1190_s4 = scalar_lea.vmem %s6107_s5, %s6214_s2 }
 0x14a   : > { %v1206_v26 = vld [vmem:[%s1190_s4] sm:$0x1] }
 0x14b   : > { %1207 = vst [vmem:[#allocation3 + $0x12] sm:$0x1] %v1206_v26 }
 0x14c   : > { %1225 = vsyncadd [#allocation4 + $0x1], 16  ;;  %s5128_s15 = sadd.s32 256, %s5658_s23 }
 0x14d   : > { %s1228_s10 = sadd.s32 %s5128_s15, %s5656_s16 }
 0x14e   : > { %s1229_s1 = sld [smem:[#allocation7 + %s1228_s10]] }
 0x154   : > { %p1230_p0 = scmp.gt.s32.totalorder %s1229_s1, 0  ;;  %p4658_p1 = scmp.lt.s32.totalorder %s1229_s1, 49 }
 0x156   : > { %s6216_s1 = smov (!%p1230_p0, %s1229_s1), 0 }
 0x157   : > { %s6218_s1 = smov (!%p4658_p1, %s6216_s1), 49 }
 0x158   : > { %s1234_s21 = scalar_lea.vmem %s6107_s5, %s6218_s1 }
 0x159   : > { %v1250_v27 = vld [vmem:[%s1234_s21] sm:$0x1] }
 0x15a   : > { %1251 = vst [vmem:[#allocation3 + $0x13] sm:$0x1] %v1250_v27 }
 0x15b   : > { %1269 = vsyncadd [#allocation4 + $0x1], 16  ;;  %s5132_s2 = sadd.s32 256, %s5669_s27 }
 0x15c   : > { %s1272_s26 = sadd.s32 %s5132_s2, %s5667_s14 }
 0x15d   : > { %s1273_s11 = sld [smem:[#allocation7 + %s1272_s26]] }
 0x163   : > { %p1274_p2 = scmp.gt.s32.totalorder %s1273_s11, 0  ;;  %p4664_p3 = scmp.lt.s32.totalorder %s1273_s11, 49 }
 0x165   : > { %s6220_s11 = smov (!%p1274_p2, %s1273_s11), 0 }
 0x166   : > { %s6222_s11 = smov (!%p4664_p3, %s6220_s11), 49 }
 0x167   : > { %s1278_s10 = scalar_lea.vmem %s6107_s5, %s6222_s11 }
 0x168   : > { %v1294_v28 = vld [vmem:[%s1278_s10] sm:$0x1] }
 0x169   : > { %1295 = vst [vmem:[#allocation3 + $0x14] sm:$0x1] %v1294_v28 }
 0x16a   : > { %1313 = vsyncadd [#allocation4 + $0x1], 16  ;;  %s5136_s1 = sadd.s32 256, %s5680_s17 }
 0x16b   : > { %s1316_s12 = sadd.s32 %s5136_s1, %s5678_s3 }
 0x16c   : > { %s1317_s9 = sld [smem:[#allocation7 + %s1316_s12]] }
 0x172   : > { %p1318_p4 = scmp.gt.s32.totalorder %s1317_s9, 0  ;;  %p4670_p5 = scmp.lt.s32.totalorder %s1317_s9, 49 }
 0x174   : > { %s6224_s9 = smov (!%p1318_p4, %s1317_s9), 0 }
 0x175   : > { %s6226_s9 = smov (!%p4670_p5, %s6224_s9), 49 }
 0x176   : > { %s1322_s26 = scalar_lea.vmem %s6107_s5, %s6226_s9 }
 0x177   : > { %v1338_v29 = vld [vmem:[%s1322_s26] sm:$0x1] }
 0x178   : > { %1339 = vst [vmem:[#allocation3 + $0x15] sm:$0x1] %v1338_v29 }
 0x179   : > { %1357 = vsyncadd [#allocation4 + $0x1], 16  ;;  %s5140_s11 = sadd.s32 256, %s5691_s24 }
 0x17a   : > { %s1360_s4 = sadd.s32 %s5140_s11, %s5689_s13 }
 0x17b   : > { %s1361_s15 = sld [smem:[#allocation7 + %s1360_s4]] }
 0x181   : > { %p1362_p6 = scmp.gt.s32.totalorder %s1361_s15, 0  ;;  %p4676_p7 = scmp.lt.s32.totalorder %s1361_s15, 49 }
 0x183   : > { %s6228_s15 = smov (!%p1362_p6, %s1361_s15), 0 }
 0x184   : > { %s6230_s15 = smov (!%p4676_p7, %s6228_s15), 49 }
 0x185   : > { %s1366_s12 = scalar_lea.vmem %s6107_s5, %s6230_s15 }
 0x186   : > { %v1382_v30 = vld [vmem:[%s1366_s12] sm:$0x1] }
 0x187   : > { %1383 = vst [vmem:[#allocation3 + $0x16] sm:$0x1] %v1382_v30 }
 0x188   : > { %1401 = vsyncadd [#allocation4 + $0x1], 16  ;;  %s5144_s9 = sadd.s32 256, %s5702_s30 }
 0x189   : > { %s1404_s21 = sadd.s32 %s5144_s9, %s5700_s28 }
 0x18a   : > { %s1405_s2 = sld [smem:[#allocation7 + %s1404_s21]] }
 0x190   : > { %p1406_p8 = scmp.gt.s32.totalorder %s1405_s2, 0  ;;  %p4682_p9 = scmp.lt.s32.totalorder %s1405_s2, 49 }
 0x192   : > { %s6232_s2 = smov (!%p1406_p8, %s1405_s2), 0 }
 0x193   : > { %s6234_s2 = smov (!%p4682_p9, %s6232_s2), 49 }
 0x194   : > { %s1410_s4 = scalar_lea.vmem %s6107_s5, %s6234_s2 }
 0x195   : > { %v1426_v31 = vld [vmem:[%s1410_s4] sm:$0x1] }
 0x196   : > { %1427 = vst [vmem:[#allocation3 + $0x17] sm:$0x1] %v1426_v31 }
 0x197   : > { %1445 = vsyncadd [#allocation4 + $0x1], 16  ;;  %s5148_s15 = sadd.s32 384, %s5625_s25 }
 0x198   : > { %s1448_s10 = sadd.s32 %s5148_s15, %s5623_s0 }
 0x199   : > { %s1449_s1 = sld [smem:[#allocation7 + %s1448_s10]] }
 0x19f   : > { %p1450_p10 = scmp.gt.s32.totalorder %s1449_s1, 0  ;;  %p4688_p11 = scmp.lt.s32.totalorder %s1449_s1, 49 }
 0x1a1   : > { %s6236_s1 = smov (!%p1450_p10, %s1449_s1), 0 }
 0x1a2   : > { %s6238_s1 = smov (!%p4688_p11, %s6236_s1), 49 }
 0x1a3   : > { %s1454_s21 = scalar_lea.vmem %s6107_s5, %s6238_s1 }
 0x1a4   : > { %v1470_v32 = vld [vmem:[%s1454_s21] sm:$0x1] }
 0x1a5   : > { %1471 = vst [vmem:[#allocation3 + $0x18] sm:$0x1] %v1470_v32 }
 0x1a6   : > { %1489 = vsyncadd [#allocation4 + $0x1], 16  ;;  %s5152_s2 = sadd.s32 384, %s5636_s22 }
 0x1a7   : > { %s1492_s26 = sadd.s32 %s5152_s2, %s5634_s20 }
 0x1a8   : > { %s1493_s11 = sld [smem:[#allocation7 + %s1492_s26]] }
 0x1ae   : > { %p1494_p12 = scmp.gt.s32.totalorder %s1493_s11, 0  ;;  %p4694_p13 = scmp.lt.s32.totalorder %s1493_s11, 49 }
 0x1b0   : > { %s6240_s11 = smov (!%p1494_p12, %s1493_s11), 0 }
 0x1b1   : > { %s6242_s11 = smov (!%p4694_p13, %s6240_s11), 49 }
 0x1b2   : > { %s1498_s10 = scalar_lea.vmem %s6107_s5, %s6242_s11 }
 0x1b3   : > { %v1514_v33 = vld [vmem:[%s1498_s10] sm:$0x1] }
 0x1b4   : > { %1515 = vst [vmem:[#allocation3 + $0x19] sm:$0x1] %v1514_v33 }
 0x1b5   : > { %1533 = vsyncadd [#allocation4 + $0x1], 16  ;;  %s5156_s1 = sadd.s32 384, %s5647_s18 }
 0x1b6   : > { %s1536_s12 = sadd.s32 %s5156_s1, %s5645_s19 }
 0x1b7   : > { %s1537_s9 = sld [smem:[#allocation7 + %s1536_s12]] }
 0x1bd   : > { %p1538_p0 = scmp.gt.s32.totalorder %s1537_s9, 0  ;;  %p4700_p1 = scmp.lt.s32.totalorder %s1537_s9, 49 }
 0x1bf   : > { %s6244_s9 = smov (!%p1538_p0, %s1537_s9), 0 }
 0x1c0   : > { %s6246_s9 = smov (!%p4700_p1, %s6244_s9), 49 }
 0x1c1   : > { %s1542_s26 = scalar_lea.vmem %s6107_s5, %s6246_s9 }
 0x1c2   : > { %v1558_v34 = vld [vmem:[%s1542_s26] sm:$0x1] }
 0x1c3   : > { %1559 = vst [vmem:[#allocation3 + $0x1a] sm:$0x1] %v1558_v34 }
 0x1c4   : > { %1577 = vsyncadd [#allocation4 + $0x1], 16  ;;  %s5160_s11 = sadd.s32 384, %s5658_s23 }
 0x1c5   : > { %s1580_s4 = sadd.s32 %s5160_s11, %s5656_s16 }
 0x1c6   : > { %s1581_s15 = sld [smem:[#allocation7 + %s1580_s4]] }
 0x1cc   : > { %p1582_p2 = scmp.gt.s32.totalorder %s1581_s15, 0  ;;  %p4706_p3 = scmp.lt.s32.totalorder %s1581_s15, 49 }
 0x1ce   : > { %s6248_s15 = smov (!%p1582_p2, %s1581_s15), 0 }
 0x1cf   : > { %s6250_s15 = smov (!%p4706_p3, %s6248_s15), 49 }
 0x1d0   : > { %s1586_s12 = scalar_lea.vmem %s6107_s5, %s6250_s15 }
 0x1d1   : > { %v1602_v35 = vld [vmem:[%s1586_s12] sm:$0x1] }
 0x1d2   : > { %1603 = vst [vmem:[#allocation3 + $0x1b] sm:$0x1] %v1602_v35 }
 0x1d3   : > { %1621 = vsyncadd [#allocation4 + $0x1], 16  ;;  %s5164_s9 = sadd.s32 384, %s5669_s27 }
 0x1d4   : > { %s1624_s21 = sadd.s32 %s5164_s9, %s5667_s14 }
 0x1d5   : > { %s1625_s2 = sld [smem:[#allocation7 + %s1624_s21]] }
 0x1db   : > { %p1626_p4 = scmp.gt.s32.totalorder %s1625_s2, 0  ;;  %p4712_p5 = scmp.lt.s32.totalorder %s1625_s2, 49 }
 0x1dd   : > { %s6252_s2 = smov (!%p1626_p4, %s1625_s2), 0 }
 0x1de   : > { %s6254_s2 = smov (!%p4712_p5, %s6252_s2), 49 }
 0x1df   : > { %s1630_s4 = scalar_lea.vmem %s6107_s5, %s6254_s2 }
 0x1e0   : > { %v1646_v36 = vld [vmem:[%s1630_s4] sm:$0x1] }
 0x1e1   : > { %1647 = vst [vmem:[#allocation3 + $0x1c] sm:$0x1] %v1646_v36 }
 0x1e2   : > { %1665 = vsyncadd [#allocation4 + $0x1], 16  ;;  %s5168_s15 = sadd.s32 384, %s5680_s17 }
 0x1e3   : > { %s1668_s10 = sadd.s32 %s5168_s15, %s5678_s3 }
 0x1e4   : > { %s1669_s1 = sld [smem:[#allocation7 + %s1668_s10]] }
 0x1ea   : > { %p1670_p6 = scmp.gt.s32.totalorder %s1669_s1, 0  ;;  %p4718_p7 = scmp.lt.s32.totalorder %s1669_s1, 49 }
 0x1ec   : > { %s6256_s1 = smov (!%p1670_p6, %s1669_s1), 0 }
 0x1ed   : > { %s6258_s1 = smov (!%p4718_p7, %s6256_s1), 49 }
 0x1ee   : > { %s1674_s21 = scalar_lea.vmem %s6107_s5, %s6258_s1 }
 0x1ef   : > { %v1690_v37 = vld [vmem:[%s1674_s21] sm:$0x1] }
 0x1f0   : > { %1691 = vst [vmem:[#allocation3 + $0x1d] sm:$0x1] %v1690_v37 }
 0x1f1   : > { %1709 = vsyncadd [#allocation4 + $0x1], 16  ;;  %s5172_s2 = sadd.s32 384, %s5691_s24 }
 0x1f2   : > { %s1712_s26 = sadd.s32 %s5172_s2, %s5689_s13 }
 0x1f3   : > { %s1713_s11 = sld [smem:[#allocation7 + %s1712_s26]] }
 0x1f9   : > { %p1714_p8 = scmp.gt.s32.totalorder %s1713_s11, 0  ;;  %p4724_p9 = scmp.lt.s32.totalorder %s1713_s11, 49 }
 0x1fb   : > { %s6260_s11 = smov (!%p1714_p8, %s1713_s11), 0 }
 0x1fc   : > { %s6262_s11 = smov (!%p4724_p9, %s6260_s11), 49 }
 0x1fd   : > { %s1718_s10 = scalar_lea.vmem %s6107_s5, %s6262_s11 }
 0x1fe   : > { %v1734_v38 = vld [vmem:[%s1718_s10] sm:$0x1] }
 0x1ff   : > { %1735 = vst [vmem:[#allocation3 + $0x1e] sm:$0x1] %v1734_v38 }
 0x200   : > { %1753 = vsyncadd [#allocation4 + $0x1], 16  ;;  %s5176_s1 = sadd.s32 384, %s5702_s30 }
 0x201   : > { %s1756_s12 = sadd.s32 %s5176_s1, %s5700_s28 }
 0x202   : > { %s1757_s9 = sld [smem:[#allocation7 + %s1756_s12]] }
 0x208   : > { %p1758_p10 = scmp.gt.s32.totalorder %s1757_s9, 0  ;;  %p4730_p11 = scmp.lt.s32.totalorder %s1757_s9, 49 }
 0x20a   : > { %s6264_s9 = smov (!%p1758_p10, %s1757_s9), 0 }
 0x20b   : > { %s6266_s9 = smov (!%p4730_p11, %s6264_s9), 49 }
 0x20c   : > { %s1762_s26 = scalar_lea.vmem %s6107_s5, %s6266_s9 }
 0x20d   : > { %v1778_v39 = vld [vmem:[%s1762_s26] sm:$0x1] }
 0x20e   : > { %1779 = vst [vmem:[#allocation3 + $0x1f] sm:$0x1] %v1778_v39 }
 0x20f   : > { %1797 = vsyncadd [#allocation4 + $0x1], 16  ;;  %s5180_s11 = sadd.s32 512, %s5625_s25 }
 0x210   : > { %s1800_s4 = sadd.s32 %s5180_s11, %s5623_s0 }
 0x211   : > { %s1801_s15 = sld [smem:[#allocation7 + %s1800_s4]] }
 0x217   : > { %p1802_p12 = scmp.gt.s32.totalorder %s1801_s15, 0  ;;  %p4736_p13 = scmp.lt.s32.totalorder %s1801_s15, 49 }
 0x219   : > { %s6268_s15 = smov (!%p1802_p12, %s1801_s15), 0 }
 0x21a   : > { %s6270_s15 = smov (!%p4736_p13, %s6268_s15), 49 }
 0x21b   : > { %s1806_s12 = scalar_lea.vmem %s6107_s5, %s6270_s15 }
 0x21c   : > { %v1822_v40 = vld [vmem:[%s1806_s12] sm:$0x1] }
 0x21d   : > { %1823 = vst [vmem:[#allocation3 + $0x20] sm:$0x1] %v1822_v40 }
 0x21e   : > { %1841 = vsyncadd [#allocation4 + $0x1], 16  ;;  %s5184_s9 = sadd.s32 512, %s5636_s22 }
 0x21f   : > { %s1844_s21 = sadd.s32 %s5184_s9, %s5634_s20 }
 0x220   : > { %s1845_s2 = sld [smem:[#allocation7 + %s1844_s21]] }
 0x226   : > { %p1846_p0 = scmp.gt.s32.totalorder %s1845_s2, 0  ;;  %p4742_p1 = scmp.lt.s32.totalorder %s1845_s2, 49 }
 0x228   : > { %s6272_s2 = smov (!%p1846_p0, %s1845_s2), 0 }
 0x229   : > { %s6274_s2 = smov (!%p4742_p1, %s6272_s2), 49 }
 0x22a   : > { %s1850_s4 = scalar_lea.vmem %s6107_s5, %s6274_s2 }
 0x22b   : > { %v1866_v41 = vld [vmem:[%s1850_s4] sm:$0x1] }
 0x22c   : > { %1867 = vst [vmem:[#allocation3 + $0x21] sm:$0x1] %v1866_v41 }
 0x22d   : > { %1885 = vsyncadd [#allocation4 + $0x1], 16  ;;  %s5188_s15 = sadd.s32 512, %s5647_s18 }
 0x22e   : > { %s1888_s10 = sadd.s32 %s5188_s15, %s5645_s19 }
 0x22f   : > { %s1889_s1 = sld [smem:[#allocation7 + %s1888_s10]] }
 0x235   : > { %p1890_p2 = scmp.gt.s32.totalorder %s1889_s1, 0  ;;  %p4748_p3 = scmp.lt.s32.totalorder %s1889_s1, 49 }
 0x237   : > { %s6276_s1 = smov (!%p1890_p2, %s1889_s1), 0 }
 0x238   : > { %s6278_s1 = smov (!%p4748_p3, %s6276_s1), 49 }
 0x239   : > { %s1894_s21 = scalar_lea.vmem %s6107_s5, %s6278_s1 }
 0x23a   : > { %v1910_v42 = vld [vmem:[%s1894_s21] sm:$0x1] }
 0x23b   : > { %1911 = vst [vmem:[#allocation3 + $0x22] sm:$0x1] %v1910_v42 }
 0x23c   : > { %1929 = vsyncadd [#allocation4 + $0x1], 16  ;;  %s5192_s2 = sadd.s32 512, %s5658_s23 }
 0x23d   : > { %s1932_s26 = sadd.s32 %s5192_s2, %s5656_s16 }
 0x23e   : > { %s1933_s11 = sld [smem:[#allocation7 + %s1932_s26]] }
 0x244   : > { %p1934_p4 = scmp.gt.s32.totalorder %s1933_s11, 0  ;;  %p4754_p5 = scmp.lt.s32.totalorder %s1933_s11, 49 }
 0x246   : > { %s6280_s11 = smov (!%p1934_p4, %s1933_s11), 0 }
 0x247   : > { %s6282_s11 = smov (!%p4754_p5, %s6280_s11), 49 }
 0x248   : > { %s1938_s10 = scalar_lea.vmem %s6107_s5, %s6282_s11 }
 0x249   : > { %v1954_v43 = vld [vmem:[%s1938_s10] sm:$0x1] }
 0x24a   : > { %1955 = vst [vmem:[#allocation3 + $0x23] sm:$0x1] %v1954_v43 }
 0x24b   : > { %1973 = vsyncadd [#allocation4 + $0x1], 16  ;;  %s5196_s1 = sadd.s32 512, %s5669_s27 }
 0x24c   : > { %s1976_s12 = sadd.s32 %s5196_s1, %s5667_s14 }
 0x24d   : > { %s1977_s9 = sld [smem:[#allocation7 + %s1976_s12]] }
 0x253   : > { %p1978_p6 = scmp.gt.s32.totalorder %s1977_s9, 0  ;;  %p4760_p7 = scmp.lt.s32.totalorder %s1977_s9, 49 }
 0x255   : > { %s6284_s9 = smov (!%p1978_p6, %s1977_s9), 0 }
 0x256   : > { %s6286_s9 = smov (!%p4760_p7, %s6284_s9), 49 }
 0x257   : > { %s1982_s26 = scalar_lea.vmem %s6107_s5, %s6286_s9 }
 0x258   : > { %v1998_v44 = vld [vmem:[%s1982_s26] sm:$0x1] }
 0x259   : > { %1999 = vst [vmem:[#allocation3 + $0x24] sm:$0x1] %v1998_v44 }
 0x25a   : > { %2017 = vsyncadd [#allocation4 + $0x1], 16  ;;  %s5200_s11 = sadd.s32 512, %s5680_s17 }
 0x25b   : > { %s2020_s4 = sadd.s32 %s5200_s11, %s5678_s3 }
 0x25c   : > { %s2021_s15 = sld [smem:[#allocation7 + %s2020_s4]] }
 0x262   : > { %p2022_p8 = scmp.gt.s32.totalorder %s2021_s15, 0  ;;  %p4766_p9 = scmp.lt.s32.totalorder %s2021_s15, 49 }
 0x264   : > { %s6288_s15 = smov (!%p2022_p8, %s2021_s15), 0 }
 0x265   : > { %s6290_s15 = smov (!%p4766_p9, %s6288_s15), 49 }
 0x266   : > { %s2026_s12 = scalar_lea.vmem %s6107_s5, %s6290_s15 }
 0x267   : > { %v2042_v45 = vld [vmem:[%s2026_s12] sm:$0x1] }
 0x268   : > { %2043 = vst [vmem:[#allocation3 + $0x25] sm:$0x1] %v2042_v45 }
 0x269   : > { %2061 = vsyncadd [#allocation4 + $0x1], 16  ;;  %s5204_s9 = sadd.s32 512, %s5691_s24 }
 0x26a   : > { %s2064_s21 = sadd.s32 %s5204_s9, %s5689_s13 }
 0x26b   : > { %s2065_s2 = sld [smem:[#allocation7 + %s2064_s21]] }
 0x271   : > { %p2066_p10 = scmp.gt.s32.totalorder %s2065_s2, 0  ;;  %p4772_p11 = scmp.lt.s32.totalorder %s2065_s2, 49 }
 0x273   : > { %s6292_s2 = smov (!%p2066_p10, %s2065_s2), 0 }
 0x274   : > { %s6294_s2 = smov (!%p4772_p11, %s6292_s2), 49 }
 0x275   : > { %s2070_s4 = scalar_lea.vmem %s6107_s5, %s6294_s2 }
 0x276   : > { %v2086_v46 = vld [vmem:[%s2070_s4] sm:$0x1] }
 0x277   : > { %2087 = vst [vmem:[#allocation3 + $0x26] sm:$0x1] %v2086_v46 }
 0x278   : > { %2105 = vsyncadd [#allocation4 + $0x1], 16  ;;  %s5208_s15 = sadd.s32 512, %s5702_s30 }
 0x279   : > { %s2108_s10 = sadd.s32 %s5208_s15, %s5700_s28 }
 0x27a   : > { %s2109_s1 = sld [smem:[#allocation7 + %s2108_s10]] }
 0x280   : > { %p2110_p12 = scmp.gt.s32.totalorder %s2109_s1, 0  ;;  %p4778_p13 = scmp.lt.s32.totalorder %s2109_s1, 49 }
 0x282   : > { %s6296_s1 = smov (!%p2110_p12, %s2109_s1), 0 }
 0x283   : > { %s6298_s1 = smov (!%p4778_p13, %s6296_s1), 49 }
 0x284   : > { %s2114_s21 = scalar_lea.vmem %s6107_s5, %s6298_s1 }
 0x285   : > { %v2130_v47 = vld [vmem:[%s2114_s21] sm:$0x1] }
 0x286   : > { %2131 = vst [vmem:[#allocation3 + $0x27] sm:$0x1] %v2130_v47 }
 0x287   : > { %2149 = vsyncadd [#allocation4 + $0x1], 16  ;;  %s5212_s2 = sadd.s32 640, %s5625_s25 }
 0x288   : > { %s2152_s26 = sadd.s32 %s5212_s2, %s5623_s0 }
 0x289   : > { %s2153_s11 = sld [smem:[#allocation7 + %s2152_s26]] }
 0x28f   : > { %p2154_p0 = scmp.gt.s32.totalorder %s2153_s11, 0  ;;  %p4784_p1 = scmp.lt.s32.totalorder %s2153_s11, 49 }
 0x291   : > { %s6300_s11 = smov (!%p2154_p0, %s2153_s11), 0 }
 0x292   : > { %s6302_s11 = smov (!%p4784_p1, %s6300_s11), 49 }
 0x293   : > { %s2158_s10 = scalar_lea.vmem %s6107_s5, %s6302_s11 }
 0x294   : > { %v2174_v48 = vld [vmem:[%s2158_s10] sm:$0x1] }
 0x295   : > { %2175 = vst [vmem:[#allocation3 + $0x28] sm:$0x1] %v2174_v48 }
 0x296   : > { %2193 = vsyncadd [#allocation4 + $0x1], 16  ;;  %s5216_s1 = sadd.s32 640, %s5636_s22 }
 0x297   : > { %s2196_s12 = sadd.s32 %s5216_s1, %s5634_s20 }
 0x298   : > { %s2197_s9 = sld [smem:[#allocation7 + %s2196_s12]] }
 0x29e   : > { %p2198_p2 = scmp.gt.s32.totalorder %s2197_s9, 0  ;;  %p4790_p3 = scmp.lt.s32.totalorder %s2197_s9, 49 }
 0x2a0   : > { %s6304_s9 = smov (!%p2198_p2, %s2197_s9), 0 }
 0x2a1   : > { %s6306_s9 = smov (!%p4790_p3, %s6304_s9), 49 }
 0x2a2   : > { %s2202_s26 = scalar_lea.vmem %s6107_s5, %s6306_s9 }
 0x2a3   : > { %v2218_v49 = vld [vmem:[%s2202_s26] sm:$0x1] }
 0x2a4   : > { %2219 = vst [vmem:[#allocation3 + $0x29] sm:$0x1] %v2218_v49 }
 0x2a5   : > { %2237 = vsyncadd [#allocation4 + $0x1], 16  ;;  %s5220_s11 = sadd.s32 640, %s5647_s18 }
 0x2a6   : > { %s2240_s4 = sadd.s32 %s5220_s11, %s5645_s19 }
 0x2a7   : > { %s2241_s15 = sld [smem:[#allocation7 + %s2240_s4]] }
 0x2ad   : > { %p2242_p4 = scmp.gt.s32.totalorder %s2241_s15, 0  ;;  %p4796_p5 = scmp.lt.s32.totalorder %s2241_s15, 49 }
 0x2af   : > { %s6308_s15 = smov (!%p2242_p4, %s2241_s15), 0 }
 0x2b0   : > { %s6310_s15 = smov (!%p4796_p5, %s6308_s15), 49 }
 0x2b1   : > { %s2246_s12 = scalar_lea.vmem %s6107_s5, %s6310_s15 }
 0x2b2   : > { %v2262_v50 = vld [vmem:[%s2246_s12] sm:$0x1] }
 0x2b3   : > { %2263 = vst [vmem:[#allocation3 + $0x2a] sm:$0x1] %v2262_v50 }
 0x2b4   : > { %2281 = vsyncadd [#allocation4 + $0x1], 16  ;;  %s5224_s9 = sadd.s32 640, %s5658_s23 }
 0x2b5   : > { %s2284_s21 = sadd.s32 %s5224_s9, %s5656_s16 }
 0x2b6   : > { %s2285_s2 = sld [smem:[#allocation7 + %s2284_s21]] }
 0x2bc   : > { %p2286_p6 = scmp.gt.s32.totalorder %s2285_s2, 0  ;;  %p4802_p7 = scmp.lt.s32.totalorder %s2285_s2, 49 }
 0x2be   : > { %s6312_s2 = smov (!%p2286_p6, %s2285_s2), 0 }
 0x2bf   : > { %s6314_s2 = smov (!%p4802_p7, %s6312_s2), 49 }
 0x2c0   : > { %s2290_s4 = scalar_lea.vmem %s6107_s5, %s6314_s2 }
 0x2c1   : > { %v2306_v51 = vld [vmem:[%s2290_s4] sm:$0x1] }
 0x2c2   : > { %2307 = vst [vmem:[#allocation3 + $0x2b] sm:$0x1] %v2306_v51 }
 0x2c3   : > { %2325 = vsyncadd [#allocation4 + $0x1], 16  ;;  %s5228_s15 = sadd.s32 640, %s5669_s27 }
 0x2c4   : > { %s2328_s10 = sadd.s32 %s5228_s15, %s5667_s14 }
 0x2c5   : > { %s2329_s1 = sld [smem:[#allocation7 + %s2328_s10]] }
 0x2cb   : > { %p2330_p8 = scmp.gt.s32.totalorder %s2329_s1, 0  ;;  %p4808_p9 = scmp.lt.s32.totalorder %s2329_s1, 49 }
 0x2cd   : > { %s6316_s1 = smov (!%p2330_p8, %s2329_s1), 0 }
 0x2ce   : > { %s6318_s1 = smov (!%p4808_p9, %s6316_s1), 49 }
 0x2cf   : > { %s2334_s21 = scalar_lea.vmem %s6107_s5, %s6318_s1 }
 0x2d0   : > { %v2350_v52 = vld [vmem:[%s2334_s21] sm:$0x1] }
 0x2d1   : > { %2351 = vst [vmem:[#allocation3 + $0x2c] sm:$0x1] %v2350_v52 }
 0x2d2   : > { %2369 = vsyncadd [#allocation4 + $0x1], 16  ;;  %s5232_s2 = sadd.s32 640, %s5680_s17 }
 0x2d3   : > { %s2372_s26 = sadd.s32 %s5232_s2, %s5678_s3 }
 0x2d4   : > { %s2373_s11 = sld [smem:[#allocation7 + %s2372_s26]] }
 0x2da   : > { %p2374_p10 = scmp.gt.s32.totalorder %s2373_s11, 0  ;;  %p4814_p11 = scmp.lt.s32.totalorder %s2373_s11, 49 }
 0x2dc   : > { %s6320_s11 = smov (!%p2374_p10, %s2373_s11), 0 }
 0x2dd   : > { %s6322_s11 = smov (!%p4814_p11, %s6320_s11), 49 }
 0x2de   : > { %s2378_s10 = scalar_lea.vmem %s6107_s5, %s6322_s11 }
 0x2df   : > { %v2394_v53 = vld [vmem:[%s2378_s10] sm:$0x1] }
 0x2e0   : > { %2395 = vst [vmem:[#allocation3 + $0x2d] sm:$0x1] %v2394_v53 }
 0x2e1   : > { %2413 = vsyncadd [#allocation4 + $0x1], 16  ;;  %s5236_s1 = sadd.s32 640, %s5691_s24 }
 0x2e2   : > { %s2416_s12 = sadd.s32 %s5236_s1, %s5689_s13 }
 0x2e3   : > { %s2417_s9 = sld [smem:[#allocation7 + %s2416_s12]] }
 0x2e9   : > { %p2418_p12 = scmp.gt.s32.totalorder %s2417_s9, 0  ;;  %p4820_p13 = scmp.lt.s32.totalorder %s2417_s9, 49 }
 0x2eb   : > { %s6324_s9 = smov (!%p2418_p12, %s2417_s9), 0 }
 0x2ec   : > { %s6326_s9 = smov (!%p4820_p13, %s6324_s9), 49 }
 0x2ed   : > { %s2422_s26 = scalar_lea.vmem %s6107_s5, %s6326_s9 }
 0x2ee   : > { %v2438_v54 = vld [vmem:[%s2422_s26] sm:$0x1] }
 0x2ef   : > { %2439 = vst [vmem:[#allocation3 + $0x2e] sm:$0x1] %v2438_v54 }
 0x2f0   : > { %2457 = vsyncadd [#allocation4 + $0x1], 16  ;;  %s5240_s11 = sadd.s32 640, %s5702_s30 }
 0x2f1   : > { %s2460_s4 = sadd.s32 %s5240_s11, %s5700_s28 }
 0x2f2   : > { %s2461_s15 = sld [smem:[#allocation7 + %s2460_s4]] }
 0x2f8   : > { %p2462_p0 = scmp.gt.s32.totalorder %s2461_s15, 0  ;;  %p4826_p1 = scmp.lt.s32.totalorder %s2461_s15, 49 }
 0x2fa   : > { %s6328_s15 = smov (!%p2462_p0, %s2461_s15), 0 }
 0x2fb   : > { %s6330_s15 = smov (!%p4826_p1, %s6328_s15), 49 }
 0x2fc   : > { %s2466_s12 = scalar_lea.vmem %s6107_s5, %s6330_s15 }
 0x2fd   : > { %v2482_v55 = vld [vmem:[%s2466_s12] sm:$0x1] }
 0x2fe   : > { %2483 = vst [vmem:[#allocation3 + $0x2f] sm:$0x1] %v2482_v55 }
 0x2ff   : > { %2501 = vsyncadd [#allocation4 + $0x1], 16  ;;  %s5244_s9 = sadd.s32 768, %s5625_s25 }
 0x300   : > { %s2504_s21 = sadd.s32 %s5244_s9, %s5623_s0 }
 0x301   : > { %s2505_s2 = sld [smem:[#allocation7 + %s2504_s21]] }
 0x307   : > { %p2506_p2 = scmp.gt.s32.totalorder %s2505_s2, 0  ;;  %p4832_p3 = scmp.lt.s32.totalorder %s2505_s2, 49 }
 0x309   : > { %s6332_s2 = smov (!%p2506_p2, %s2505_s2), 0 }
 0x30a   : > { %s6334_s2 = smov (!%p4832_p3, %s6332_s2), 49 }
 0x30b   : > { %s2510_s4 = scalar_lea.vmem %s6107_s5, %s6334_s2 }
 0x30c   : > { %v2526_v56 = vld [vmem:[%s2510_s4] sm:$0x1] }
 0x30d   : > { %2527 = vst [vmem:[#allocation3 + $0x30] sm:$0x1] %v2526_v56 }
 0x30e   : > { %2545 = vsyncadd [#allocation4 + $0x1], 16  ;;  %s5248_s15 = sadd.s32 768, %s5636_s22 }
 0x30f   : > { %s2548_s10 = sadd.s32 %s5248_s15, %s5634_s20 }
 0x310   : > { %s2549_s1 = sld [smem:[#allocation7 + %s2548_s10]] }
 0x316   : > { %p2550_p4 = scmp.gt.s32.totalorder %s2549_s1, 0  ;;  %p4838_p5 = scmp.lt.s32.totalorder %s2549_s1, 49 }
 0x318   : > { %s6336_s1 = smov (!%p2550_p4, %s2549_s1), 0 }
 0x319   : > { %s6338_s1 = smov (!%p4838_p5, %s6336_s1), 49 }
 0x31a   : > { %s2554_s21 = scalar_lea.vmem %s6107_s5, %s6338_s1 }
 0x31b   : > { %v2570_v57 = vld [vmem:[%s2554_s21] sm:$0x1] }
 0x31c   : > { %2571 = vst [vmem:[#allocation3 + $0x31] sm:$0x1] %v2570_v57 }
 0x31d   : > { %2589 = vsyncadd [#allocation4 + $0x1], 16  ;;  %s5252_s2 = sadd.s32 768, %s5647_s18 }
 0x31e   : > { %s2592_s26 = sadd.s32 %s5252_s2, %s5645_s19 }
 0x31f   : > { %s2593_s11 = sld [smem:[#allocation7 + %s2592_s26]] }
 0x325   : > { %p2594_p6 = scmp.gt.s32.totalorder %s2593_s11, 0  ;;  %p4844_p7 = scmp.lt.s32.totalorder %s2593_s11, 49 }
 0x327   : > { %s6340_s11 = smov (!%p2594_p6, %s2593_s11), 0 }
 0x328   : > { %s6342_s11 = smov (!%p4844_p7, %s6340_s11), 49 }
 0x329   : > { %s2598_s10 = scalar_lea.vmem %s6107_s5, %s6342_s11 }
 0x32a   : > { %v2614_v58 = vld [vmem:[%s2598_s10] sm:$0x1] }
 0x32b   : > { %2615 = vst [vmem:[#allocation3 + $0x32] sm:$0x1] %v2614_v58 }
 0x32c   : > { %2633 = vsyncadd [#allocation4 + $0x1], 16  ;;  %s5256_s1 = sadd.s32 768, %s5658_s23 }
 0x32d   : > { %s2636_s12 = sadd.s32 %s5256_s1, %s5656_s16 }
 0x32e   : > { %s2637_s9 = sld [smem:[#allocation7 + %s2636_s12]] }
 0x334   : > { %p2638_p8 = scmp.gt.s32.totalorder %s2637_s9, 0  ;;  %p4850_p9 = scmp.lt.s32.totalorder %s2637_s9, 49 }
 0x336   : > { %s6344_s9 = smov (!%p2638_p8, %s2637_s9), 0 }
 0x337   : > { %s6346_s9 = smov (!%p4850_p9, %s6344_s9), 49 }
 0x338   : > { %s2642_s26 = scalar_lea.vmem %s6107_s5, %s6346_s9 }
 0x339   : > { %v2658_v59 = vld [vmem:[%s2642_s26] sm:$0x1] }
 0x33a   : > { %2659 = vst [vmem:[#allocation3 + $0x33] sm:$0x1] %v2658_v59 }
 0x33b   : > { %2677 = vsyncadd [#allocation4 + $0x1], 16  ;;  %s5260_s11 = sadd.s32 768, %s5669_s27 }
 0x33c   : > { %s2680_s4 = sadd.s32 %s5260_s11, %s5667_s14 }
 0x33d   : > { %s2681_s15 = sld [smem:[#allocation7 + %s2680_s4]] }
 0x343   : > { %p2682_p10 = scmp.gt.s32.totalorder %s2681_s15, 0  ;;  %p4856_p11 = scmp.lt.s32.totalorder %s2681_s15, 49 }
 0x345   : > { %s6348_s15 = smov (!%p2682_p10, %s2681_s15), 0 }
 0x346   : > { %s6350_s15 = smov (!%p4856_p11, %s6348_s15), 49 }
 0x347   : > { %s2686_s12 = scalar_lea.vmem %s6107_s5, %s6350_s15 }
 0x348   : > { %v2702_v60 = vld [vmem:[%s2686_s12] sm:$0x1] }
 0x349   : > { %2703 = vst [vmem:[#allocation3 + $0x34] sm:$0x1] %v2702_v60 }
 0x34a   : > { %2721 = vsyncadd [#allocation4 + $0x1], 16  ;;  %s5264_s9 = sadd.s32 768, %s5680_s17 }
 0x34b   : > { %s2724_s21 = sadd.s32 %s5264_s9, %s5678_s3 }
 0x34c   : > { %s2725_s2 = sld [smem:[#allocation7 + %s2724_s21]] }
 0x352   : > { %p2726_p12 = scmp.gt.s32.totalorder %s2725_s2, 0  ;;  %p4862_p13 = scmp.lt.s32.totalorder %s2725_s2, 49 }
 0x354   : > { %s6352_s2 = smov (!%p2726_p12, %s2725_s2), 0 }
 0x355   : > { %s6354_s2 = smov (!%p4862_p13, %s6352_s2), 49 }
 0x356   : > { %s2730_s4 = scalar_lea.vmem %s6107_s5, %s6354_s2 }
 0x357   : > { %v2746_v61 = vld [vmem:[%s2730_s4] sm:$0x1] }
 0x358   : > { %2747 = vst [vmem:[#allocation3 + $0x35] sm:$0x1] %v2746_v61 }
 0x359   : > { %2765 = vsyncadd [#allocation4 + $0x1], 16  ;;  %s5268_s15 = sadd.s32 768, %s5691_s24 }
 0x35a   : > { %s2768_s10 = sadd.s32 %s5268_s15, %s5689_s13 }
 0x35b   : > { %s2769_s1 = sld [smem:[#allocation7 + %s2768_s10]] }
 0x361   : > { %p2770_p0 = scmp.gt.s32.totalorder %s2769_s1, 0  ;;  %p4868_p1 = scmp.lt.s32.totalorder %s2769_s1, 49 }
 0x363   : > { %s6356_s1 = smov (!%p2770_p0, %s2769_s1), 0 }
 0x364   : > { %s6358_s1 = smov (!%p4868_p1, %s6356_s1), 49 }
 0x365   : > { %s2774_s21 = scalar_lea.vmem %s6107_s5, %s6358_s1 }
 0x366   : > { %v2790_v62 = vld [vmem:[%s2774_s21] sm:$0x1] }
 0x367   : > { %2791 = vst [vmem:[#allocation3 + $0x36] sm:$0x1] %v2790_v62 }
 0x368   : > { %2809 = vsyncadd [#allocation4 + $0x1], 16  ;;  %s5272_s2 = sadd.s32 768, %s5702_s30 }
 0x369   : > { %s2812_s26 = sadd.s32 %s5272_s2, %s5700_s28 }
 0x36a   : > { %s2813_s11 = sld [smem:[#allocation7 + %s2812_s26]] }
 0x370   : > { %p2814_p2 = scmp.gt.s32.totalorder %s2813_s11, 0  ;;  %p4874_p3 = scmp.lt.s32.totalorder %s2813_s11, 49 }
 0x372   : > { %s6360_s11 = smov (!%p2814_p2, %s2813_s11), 0 }
 0x373   : > { %s6362_s11 = smov (!%p4874_p3, %s6360_s11), 49 }
 0x374   : > { %s2818_s10 = scalar_lea.vmem %s6107_s5, %s6362_s11 }
 0x375   : > { %v2834_v63 = vld [vmem:[%s2818_s10] sm:$0x1] }
 0x376   : > { %2835 = vst [vmem:[#allocation3 + $0x37] sm:$0x1] %v2834_v63 }
 0x377   : > { %2853 = vsyncadd [#allocation4 + $0x1], 16  ;;  %s5276_s1 = sadd.s32 896, %s5625_s25 }
 0x378   : > { %s2856_s12 = sadd.s32 %s5276_s1, %s5623_s0 }
 0x379   : > { %s2857_s9 = sld [smem:[#allocation7 + %s2856_s12]] }
 0x37f   : > { %p2858_p4 = scmp.gt.s32.totalorder %s2857_s9, 0  ;;  %p4880_p5 = scmp.lt.s32.totalorder %s2857_s9, 49 }
 0x381   : > { %s6364_s9 = smov (!%p2858_p4, %s2857_s9), 0 }
 0x382   : > { %s6366_s9 = smov (!%p4880_p5, %s6364_s9), 49 }
 0x383   : > { %s2862_s26 = scalar_lea.vmem %s6107_s5, %s6366_s9 }
 0x384   : > { %v2878_v0 = vld [vmem:[%s2862_s26] sm:$0x1] }
 0x385   : > { %2879 = vst [vmem:[#allocation3 + $0x38] sm:$0x1] %v2878_v0 }
 0x386   : > { %2897 = vsyncadd [#allocation4 + $0x1], 16  ;;  %s5280_s11 = sadd.s32 896, %s5636_s22 }
 0x387   : > { %s2900_s4 = sadd.s32 %s5280_s11, %s5634_s20 }
 0x388   : > { %s2901_s15 = sld [smem:[#allocation7 + %s2900_s4]] }
 0x38e   : > { %p2902_p6 = scmp.gt.s32.totalorder %s2901_s15, 0  ;;  %p4886_p7 = scmp.lt.s32.totalorder %s2901_s15, 49 }
 0x390   : > { %s6368_s15 = smov (!%p2902_p6, %s2901_s15), 0 }
 0x391   : > { %s6370_s15 = smov (!%p4886_p7, %s6368_s15), 49 }
 0x392   : > { %s2906_s10 = scalar_lea.vmem %s6107_s5, %s6370_s15 }
 0x393   : > { %v2922_v1 = vld [vmem:[%s2906_s10] sm:$0x1] }
 0x394   : > { %2923 = vst [vmem:[#allocation3 + $0x39] sm:$0x1] %v2922_v1 }
 0x395   : > { %2941 = vsyncadd [#allocation4 + $0x1], 16  ;;  %s5284_s1 = sadd.s32 896, %s5647_s18 }
 0x396   : > { %s2944_s12 = sadd.s32 %s5284_s1, %s5645_s19 }
 0x397   : > { %s2945_s9 = sld [smem:[#allocation7 + %s2944_s12]] }
 0x39d   : > { %p2946_p8 = scmp.gt.s32.totalorder %s2945_s9, 0  ;;  %p4892_p9 = scmp.lt.s32.totalorder %s2945_s9, 49 }
 0x39f   : > { %s6372_s9 = smov (!%p2946_p8, %s2945_s9), 0 }
 0x3a0   : > { %s6374_s9 = smov (!%p4892_p9, %s6372_s9), 49 }
 0x3a1   : > { %s2950_s21 = scalar_lea.vmem %s6107_s5, %s6374_s9 }
 0x3a2   : > { %v2966_v2 = vld [vmem:[%s2950_s21] sm:$0x1] }
 0x3a3   : > { %2967 = vst [vmem:[#allocation3 + $0x3a] sm:$0x1] %v2966_v2 }
 0x3a4   : > { %2985 = vsyncadd [#allocation4 + $0x1], 16  ;;  %s5288_s2 = sadd.s32 896, %s5658_s23 }
 0x3a5   : > { %s2988_s26 = sadd.s32 %s5288_s2, %s5656_s16 }
 0x3a6   : > { %s2989_s11 = sld [smem:[#allocation7 + %s2988_s26]] }
 0x3ac   : > { %p2990_p10 = scmp.gt.s32.totalorder %s2989_s11, 0  ;;  %p4898_p11 = scmp.lt.s32.totalorder %s2989_s11, 49 }
 0x3ae   : > { %s6376_s11 = smov (!%p2990_p10, %s2989_s11), 0 }
 0x3af   : > { %s6378_s11 = smov (!%p4898_p11, %s6376_s11), 49 }
 0x3b0   : > { %s2994_s4 = scalar_lea.vmem %s6107_s5, %s6378_s11 }
 0x3b1   : > { %v3010_v3 = vld [vmem:[%s2994_s4] sm:$0x1] }
 0x3b2   : > { %3011 = vst [vmem:[#allocation3 + $0x3b] sm:$0x1] %v3010_v3 }
 0x3b3   : > { %3029 = vsyncadd [#allocation4 + $0x1], 16  ;;  %s5292_s15 = sadd.s32 896, %s5669_s27 }
 0x3b4   : > { %s3032_s0 = sadd.s32 %s5292_s15, %s5667_s14 }
 0x3b5   : > { %s3033_s25 = sld [smem:[#allocation7 + %s3032_s0]] }
 0x3bb   : > { %p3034_p12 = scmp.gt.s32.totalorder %s3033_s25, 0  ;;  %p4904_p13 = scmp.lt.s32.totalorder %s3033_s25, 49 }
 0x3bd   : > { %s6380_s25 = smov (!%p3034_p12, %s3033_s25), 0 }
 0x3be   : > { %s6382_s25 = smov (!%p4904_p13, %s6380_s25), 49 }
 0x3bf   : > { %s3038_s10 = scalar_lea.vmem %s6107_s5, %s6382_s25 }
 0x3c0   : > { %v3054_v4 = vld [vmem:[%s3038_s10] sm:$0x1] }
 0x3c1   : > { %3055 = vst [vmem:[#allocation3 + $0x3c] sm:$0x1] %v3054_v4 }
 0x3c2   : > { %3073 = vsyncadd [#allocation4 + $0x1], 16  ;;  %s5296_s1 = sadd.s32 896, %s5680_s17 }
 0x3c3   : > { %s3076_s12 = sadd.s32 %s5296_s1, %s5678_s3 }
 0x3c4   : > { %s3077_s9 = sld [smem:[#allocation7 + %s3076_s12]] }
 0x3ca   : > { %p3078_p0 = scmp.gt.s32.totalorder %s3077_s9, 0  ;;  %p4910_p1 = scmp.lt.s32.totalorder %s3077_s9, 49 }
 0x3cc   : > { %s6384_s9 = smov (!%p3078_p0, %s3077_s9), 0 }
 0x3cd   : > { %s6386_s9 = smov (!%p4910_p1, %s6384_s9), 49 }
 0x3ce   : > { %s3082_s20 = scalar_lea.vmem %s6107_s5, %s6386_s9 }
 0x3cf   : > { %v3098_v5 = vld [vmem:[%s3082_s20] sm:$0x1] }
 0x3d0   : > { %3099 = vst [vmem:[#allocation3 + $0x3d] sm:$0x1] %v3098_v5 }
 0x3d1   : > { %3117 = vsyncadd [#allocation4 + $0x1], 16  ;;  %s5300_s22 = sadd.s32 896, %s5691_s24 }
 0x3d2   : > { %s3120_s21 = sadd.s32 %s5300_s22, %s5689_s13 }
 0x3d3   : > { %s3121_s2 = sld [smem:[#allocation7 + %s3120_s21]] }
 0x3d9   : > { %p3122_p2 = scmp.gt.s32.totalorder %s3121_s2, 0  ;;  %p4916_p3 = scmp.lt.s32.totalorder %s3121_s2, 49 }
 0x3db   : > { %s6388_s2 = smov (!%p3122_p2, %s3121_s2), 0 }
 0x3dc   : > { %s6390_s2 = smov (!%p4916_p3, %s6388_s2), 49 }
 0x3dd   : > { %s3126_s26 = scalar_lea.vmem %s6107_s5, %s6390_s2 }
 0x3de   : > { %v3142_v6 = vld [vmem:[%s3126_s26] sm:$0x1] }
 0x3df   : > { %3143 = vst [vmem:[#allocation3 + $0x3e] sm:$0x1] %v3142_v6 }
 0x3e0   : > { %3161 = vsyncadd [#allocation4 + $0x1], 16  ;;  %s5304_s11 = sadd.s32 896, %s5702_s30 }
 0x3e1   : > { %s3164_s19 = sadd.s32 %s5304_s11, %s5700_s28 }
 0x3e2   : > { %s3165_s18 = sld [smem:[#allocation7 + %s3164_s19]] }
 0x3e8   : > { %p3166_p4 = scmp.gt.s32.totalorder %s3165_s18, 0  ;;  %p4922_p5 = scmp.lt.s32.totalorder %s3165_s18, 49 }
 0x3ea   : > { %s6392_s18 = smov (!%p3166_p4, %s3165_s18), 0 }
 0x3eb   : > { %s6394_s18 = smov (!%p4922_p5, %s6392_s18), 49 }
 0x3ec   : > { %s3170_s4 = scalar_lea.vmem %s6107_s5, %s6394_s18 }
 0x3ed   : > { %v3186_v7 = vld [vmem:[%s3170_s4] sm:$0x1] }
 0x3ee   : > { %3187 = vst [vmem:[#allocation3 + $0x3f] sm:$0x1] %v3186_v7 }
 0x3ef   : > { %3205 = vsyncadd [#allocation4 + $0x1], 16 }
 0x3f0   : > { %5439 = dma.done.wait [#allocation4 + $0x1], 1024 }
 0x3f1   : > { %5440 = vsyncadd [#allocation4 + $0x1], 4294966272  ;;  %v5314_v8 = vld [vmem:[%s6108_s6 + $0x38] sm:$0xff]  ;;  %v5955_v9 = vld [vmem:[%s6109_s7 + $0x8] sm:$0xff]  ;;  %v5448_v14 = vmov 0   ;;  %s5449_s18 = smov 64  }
 0x3f2   : > { %3415 = vmatpush.bf16.msra.mxu0 %v5314_v8  ;;  %v5313_v10 = vld [vmem:[%s6108_s6 + $0x30] sm:$0xff]  ;;  %3470 = vmatpush.bf16.msra.mxu1 %v5955_v9  ;;  %v5964_v11 = vld [vmem:[%s6109_s7] sm:$0xff]  ;;  %v5312_v12 = vld [vmem:[%s6108_s6 + $0x28] sm:$0xff]  ;;  %s5450_s13 = smov 32   ;;  %vm3460_vm4 = vcmask 261120  }
 0x3f3   : > { %3528 = vmatpush.bf16.msra.mxu2 %v5955_v9  ;;  %3586 = vmatpush.bf16.msra.mxu3 %v5955_v9  ;;  %v5311_v13 = vld [vmem:[%s6108_s6 + $0x20] sm:$0xff]  ;;  %v5310_v15 = vld [vmem:[%s6108_s6 + $0x18] sm:$0xff]  ;;  %v5309_v16 = vld [vmem:[%s6108_s6 + $0x10] sm:$0xff] }
 0x3f4   : > { %v5308_v17 = vld [vmem:[%s6108_s6 + $0x8] sm:$0xff]  ;;  %v5307_v18 = vld [vmem:[%s6108_s6] sm:$0xff] }
 0x3f5   : > { %v3335_v19 = vld [vmem:[#allocation3] sm:$0xff]  ;;  %v3336_v20 = vld [vmem:[#allocation3 + $0x8] sm:$0xff] }
 0x3f6   : > { %3416 = vmatpush.bf16.msra.mxu0 %v5313_v10  ;;  %3471 = vmatpush.bf16.msra.mxu1 %v5964_v11  ;;  %v3343_v21 = vpack.c.bf16 %v3336_v20, %v3335_v19  ;;  %v6000_v24 = vld [vmem:[%s6110_s8] ss:$0 sm:$0xff] }
 0x3f7   : > { %3529 = vmatpush.bf16.msra.mxu2 %v5964_v11  ;;  %3587 = vmatpush.bf16.msra.mxu3 %v5964_v11 }
 0x3f9   : > { %3472 = vmatmul.bf16.vlgmr.msra.gmra.mxu1 %v5448_v14  ;;  %v3338_v14 = vld [vmem:[#allocation3 + $0x18] sm:$0xff] }
 0x3fa   : > { %3644 = vmatpush.bf16.msrb.mxu1 %v5955_v9  ;;  %3417 = vmatpush.bf16.msra.mxu0 %v5312_v12 }
 0x3fb   : > { %3702 = vmatpush.bf16.msrb.mxu2 %v5955_v9  ;;  %3760 = vmatpush.bf16.msrb.mxu3 %v5955_v9 }
 0x3fe   : > { %3645 = vmatpush.bf16.msrb.mxu1 %v5964_v11  ;;  %3418 = vmatpush.bf16.msra.mxu0 %v5311_v13  ;;  %v3337_v13 = vld [vmem:[#allocation3 + $0x10] sm:$0xff] }
 0x3ff   : > { %3703 = vmatpush.bf16.msrb.mxu2 %v5964_v11  ;;  %3761 = vmatpush.bf16.msrb.mxu3 %v5964_v11 }
 0x402   : > { %3818 = vmatpush.bf16.msra.mxu1 %v5955_v9  ;;  %3419 = vmatpush.bf16.msra.mxu0 %v5310_v15  ;;  %v3344_v15 = vpack.c.bf16 %v3338_v14, %v3337_v13 }
 0x406   : > { %3819 = vmatpush.bf16.msra.mxu1 %v5964_v11  ;;  %3420 = vmatpush.bf16.msra.mxu0 %v5309_v16 }
 0x40a   : > { %3421 = vmatpush.bf16.msra.mxu0 %v5308_v17 }
 0x40e   : > { %3422 = vmatpush.bf16.msra.mxu0 %v5307_v18 }
 0x411   : > { %3423 = vmatmul.bf16.vlgmr.msra.gmra.mxu0 %v3343_v21 }
 0x421   : > { %3428 = vmatmul.bf16.gmra.mxu0 %v3344_v15 }
 0x476   : > { %v3473_v22 = vpop.f32.mrf.mxu1 }
 0x47e   : > { %v3475_v23 = vpop.f32.mrf.mxu1 }
 0x48e   : > { %v3424_v25 = vpop.f32.mrf.mxu0 }
 0x48f   : > { %v3425_v26 = vadd.f32 %v6000_v24, %v3424_v25 }
 0x491   : > { %v3477_v27 = vadd.f32 %v3473_v22, %v3425_v26 }
 0x493   : > { %5350 = vtanh.f32 %v3477_v27  ;;  %v4967_v29 = vmul.f32 -1.442695, %v3477_v27 }
 0x495   : > { %5352 = vpow2.f32 %v4967_v29 }
 0x496   : > { %v3426_v52 = vpop.f32.mrf.mxu0 }
 0x497   : > { %v3427_v53 = vadd.f32 %v6000_v24, %v3426_v52 }
 0x499   : > { %v5351_v28 = vpop.eup %5350 }
 0x49a   : > { %3500 = vrot.lane.b32.xlu0 %v5351_v28, %s5449_s18 }
 0x49b   : > { %v5353_v30 = vpop.eup %5352 }
 0x49c   : > { %v3481_v31 = vadd.f32 1.0, %v5353_v30 }
 0x49e   : > { %5354 = vrcp.f32 %v3481_v31  ;;  %v3493_v37 = vand.u32 2147483648, %v3481_v31  ;;  %vm3487_vm1 = vweird.f32 %v3481_v31  ;;  %v3491_v38 = vand.u32 2147483647, %v3481_v31  ;;  %v3429_v20 = vpop.f32.mrf.mxu0 }
 0x49f   : > { %v3430_v21 = vadd.f32 %v6000_v24, %v3429_v20 }
 0x4a0   : > { %v3494_v40 = vor.u32 1.1754944e-38, %v3493_v37  ;;  %vm3492_vm3 = vcmp.eq.f32.partialorder %v3491_v38, 8.507059e+37 }
 0x4a4   : > { %v5355_v32 = vpop.eup %5354 }
 0x4a5   : > { %v3483_v33 = vmul.f32 %v5355_v32, %v3481_v31  ;;  %vm3488_vm0 = vweird.f32 %v5355_v32 }
 0x4a6   : > { %vm3489_vm2 = vmor %vm3487_vm1, %vm3488_vm0 }
 0x4a7   : > { %v3484_v34 = vsub.f32 1.0, %v3483_v33 }
 0x4a9   : > { %v3485_v35 = vmul.f32 %v5355_v32, %v3484_v34 }
 0x4ab   : > { %v3486_v36 = vadd.f32 %v5355_v32, %v3485_v35 }
 0x4ad   : > { %v3490_v39 = vsel %vm3489_vm2, %v5355_v32, %v3486_v36 }
 0x4ae   : > { %v3495_v42 = vsel %vm3492_vm3, %v3494_v40, %v3490_v39 }
 0x4af   : > { %v3498_v44 = vmul.f32 0.0, %v3495_v42 }
 0x50c   : > { %v3501_v41 = vpop.permute.xlu0 %3500 }
 0x50d   : > { %v3503_v43 = vmul.f32 %v3501_v41, %v3495_v42 }
 0x50f   : > { %3505 = vrot.lane.b32.xlu0 %v3503_v43, %s5450_s13 }
 0x581   : > { %v3506_v45 = vpop.permute.xlu0 %3505 }
 0x582   : > { %v3508_v46 = vadd.f32 %v3506_v45, %v3498_v44 }
 0x584   : > { %5356 = vtanh.f32 %v3508_v46 }
 0x58a   : > { %v5357_v47 = vpop.eup %5356 }
 0x58b   : > { %3511 = vrot.lane.b32.xlu1 %v5357_v47, %s5449_s18 }
 0x5fd   : > { %v3512_v48 = vpop.permute.xlu1 %3511 }
 0x5fe   : > { %v3514_v49 = vmul.f32 %v3512_v48, %v3495_v42 }
 0x600   : > { %v3515_v50 = vpack.c.bf16 %v3514_v49, %v3514_v49 }
 0x602   : > { %3517 = vrot.lane.b32.xlu1 %v3515_v50, %s5450_s13  ;;  %v3431_v50 = vpop.f32.mrf.mxu0 }
 0x674   : > { %v3518_v51 = vpop.permute.xlu1 %3517 }
 0x675   : > { %4968 = vmatmul.msk.bf16.vlgmr.msra.gmra.mxu2 %vm3460_vm4, %v3518_v51  ;;  %v3432_v51 = vadd.f32 %v6000_v24, %v3431_v50 }
 0x676   : > { %3876 = vmatpush.bf16.msra.mxu2 %v5955_v9 }
 0x67a   : > { %3877 = vmatpush.bf16.msra.mxu2 %v5964_v11 }
 0x6f8   : > { %v3531_v54 = vpop.f32.mrf.mxu2 }
 0x6f9   : > { %v3535_v55 = vadd.f32 %v3531_v54, %v3427_v53 }
 0x6fb   : > { %5358 = vtanh.f32 %v3535_v55  ;;  %v4969_v58 = vmul.f32 -1.442695, %v3535_v55 }
 0x6fd   : > { %5360 = vpow2.f32 %v4969_v58 }
 0x700   : > { %v3533_v56 = vpop.f32.mrf.mxu2 }
 0x701   : > { %v5359_v57 = vpop.eup %5358 }
 0x702   : > { %3558 = vrot.lane.b32.xlu2 %v5359_v57, %s5449_s18 }
 0x703   : > { %v5361_v59 = vpop.eup %5360 }
 0x704   : > { %v3539_v60 = vadd.f32 1.0, %v5361_v59 }
 0x706   : > { %5362 = vrcp.f32 %v3539_v60  ;;  %v3551_v2 = vand.u32 2147483648, %v3539_v60  ;;  %vm3545_vm6 = vweird.f32 %v3539_v60  ;;  %v3549_v3 = vand.u32 2147483647, %v3539_v60 }
 0x708   : > { %v3552_v5 = vor.u32 1.1754944e-38, %v3551_v2  ;;  %vm3550_vm8 = vcmp.eq.f32.partialorder %v3549_v3, 8.507059e+37 }
 0x70c   : > { %v5363_v61 = vpop.eup %5362 }
 0x70d   : > { %v3541_v62 = vmul.f32 %v5363_v61, %v3539_v60  ;;  %vm3546_vm5 = vweird.f32 %v5363_v61 }
 0x70e   : > { %vm3547_vm7 = vmor %vm3545_vm6, %vm3546_vm5 }
 0x70f   : > { %v3542_v63 = vsub.f32 1.0, %v3541_v62 }
 0x711   : > { %v3543_v0 = vmul.f32 %v5363_v61, %v3542_v63 }
 0x713   : > { %v3544_v1 = vadd.f32 %v5363_v61, %v3543_v0 }
 0x715   : > { %v3548_v4 = vsel %vm3547_vm7, %v5363_v61, %v3544_v1 }
 0x716   : > { %v3553_v7 = vsel %vm3550_vm8, %v3552_v5, %v3548_v4 }
 0x717   : > { %v3556_v9 = vmul.f32 %v3553_v7, %v3508_v46 }
 0x75c   : > { %v3559_v6 = vpop.permute.xlu2 %3558 }
 0x75d   : > { %v3561_v8 = vmul.f32 %v3559_v6, %v3553_v7 }
 0x75f   : > { %3563 = vrot.lane.b32.xlu2 %v3561_v8, %s5450_s13 }
 0x7b9   : > { %v3564_v10 = vpop.permute.xlu2 %3563 }
 0x7ba   : > { %v3566_v11 = vadd.f32 %v3564_v10, %v3556_v9 }
 0x7bc   : > { %5364 = vtanh.f32 %v3566_v11 }
 0x7c2   : > { %v5365_v12 = vpop.eup %5364 }
 0x7c3   : > { %3569 = vrot.lane.b32.xlu0 %v5365_v12, %s5449_s18  ;;  %v3340_v12 = vld [vmem:[#allocation3 + $0x28] sm:$0xff] }
 0x835   : > { %v3570_v16 = vpop.permute.xlu0 %3569 }
 0x836   : > { %v3572_v17 = vmul.f32 %v3570_v16, %v3553_v7 }
 0x838   : > { %v3573_v18 = vpack.c.bf16 %v3572_v17, %v3572_v17 }
 0x83a   : > { %3575 = vrot.lane.b32.xlu1 %v3573_v18, %s5450_s13 }
 0x8ac   : > { %v3576_v19 = vpop.permute.xlu1 %3575 }
 0x8ad   : > { %4970 = vmatmul.msk.bf16.vlgmr.msra.gmra.mxu3 %vm3460_vm4, %v3576_v19 }
 0x930   : > { %v3589_v22 = vpop.f32.mrf.mxu3 }
 0x931   : > { %v3593_v23 = vadd.f32 %v3589_v22, %v3430_v21 }
 0x933   : > { %5366 = vtanh.f32 %v3593_v23  ;;  %v4971_v27 = vmul.f32 -1.442695, %v3593_v23 }
 0x935   : > { %5368 = vpow2.f32 %v4971_v27 }
 0x938   : > { %v3591_v25 = vpop.f32.mrf.mxu3 }
 0x939   : > { %v5367_v26 = vpop.eup %5366 }
 0x93a   : > { %3616 = vrot.lane.b32.xlu2 %v5367_v26, %s5449_s18 }
 0x93b   : > { %v5369_v28 = vpop.eup %5368 }
 0x93c   : > { %v3597_v29 = vadd.f32 1.0, %v5369_v28 }
 0x93e   : > { %5370 = vrcp.f32 %v3597_v29  ;;  %v3609_v35 = vand.u32 2147483648, %v3597_v29  ;;  %vm3603_vm10 = vweird.f32 %v3597_v29  ;;  %v3607_v36 = vand.u32 2147483647, %v3597_v29 }
 0x940   : > { %v3610_v38 = vor.u32 1.1754944e-38, %v3609_v35  ;;  %vm3608_vm12 = vcmp.eq.f32.partialorder %v3607_v36, 8.507059e+37 }
 0x944   : > { %v5371_v30 = vpop.eup %5370 }
 0x945   : > { %v3599_v31 = vmul.f32 %v5371_v30, %v3597_v29  ;;  %vm3604_vm9 = vweird.f32 %v5371_v30 }
 0x946   : > { %vm3605_vm11 = vmor %vm3603_vm10, %vm3604_vm9 }
 0x947   : > { %v3600_v32 = vsub.f32 1.0, %v3599_v31 }
 0x949   : > { %v3601_v33 = vmul.f32 %v5371_v30, %v3600_v32 }
 0x94b   : > { %v3602_v34 = vadd.f32 %v5371_v30, %v3601_v33 }
 0x94d   : > { %v3606_v37 = vsel %vm3605_vm11, %v5371_v30, %v3602_v34 }
 0x94e   : > { %v3611_v40 = vsel %vm3608_vm12, %v3610_v38, %v3606_v37 }
 0x94f   : > { %v3614_v42 = vmul.f32 %v3611_v40, %v3566_v11  ;;  %v3339_v11 = vld [vmem:[#allocation3 + $0x20] sm:$0xff] }
 0x950   : > { %v3345_v13 = vpack.c.bf16 %v3340_v12, %v3339_v11 }
 0x952   : > { %3433 = vmatmul.bf16.gmra.mxu0 %v3345_v13 }
 0x994   : > { %v3617_v39 = vpop.permute.xlu2 %3616 }
 0x995   : > { %v3619_v41 = vmul.f32 %v3617_v39, %v3611_v40 }
 0x997   : > { %3621 = vrot.lane.b32.xlu0 %v3619_v41, %s5450_s13 }
 0x9cf   : > { %v3434_v18 = vpop.f32.mrf.mxu0 }
 0x9d0   : > { %v3435_v19 = vadd.f32 %v6000_v24, %v3434_v18 }
 0xa09   : > { %v3622_v43 = vpop.permute.xlu0 %3621 }
 0xa0a   : > { %v3624_v44 = vadd.f32 %v3622_v43, %v3614_v42 }
 0xa0c   : > { %5372 = vtanh.f32 %v3624_v44 }
 0xa12   : > { %v5373_v45 = vpop.eup %5372 }
 0xa13   : > { %3627 = vrot.lane.b32.xlu1 %v5373_v45, %s5449_s18 }
 0xa85   : > { %v3628_v46 = vpop.permute.xlu1 %3627 }
 0xa86   : > { %v3630_v47 = vmul.f32 %v3628_v46, %v3611_v40 }
 0xa88   : > { %v3631_v48 = vpack.c.bf16 %v3630_v47, %v3630_v47 }
 0xa8a   : > { %3633 = vrot.lane.b32.xlu2 %v3631_v48, %s5450_s13  ;;  %v3436_v48 = vpop.f32.mrf.mxu0 }
 0xae4   : > { %v3634_v49 = vpop.permute.xlu2 %3633 }
 0xae5   : > { %4972 = vmatmul.msk.bf16.vlgmr.msrb.gmra.mxu1 %vm3460_vm4, %v3634_v49  ;;  %v3437_v49 = vadd.f32 %v6000_v24, %v3436_v48 }
 0xb62   : > { %v3647_v52 = vpop.f32.mrf.mxu1 }
 0xb63   : > { %v3651_v53 = vadd.f32 %v3647_v52, %v3432_v51 }
 0xb65   : > { %5374 = vtanh.f32 %v3651_v53  ;;  %v4973_v56 = vmul.f32 -1.442695, %v3651_v53 }
 0xb67   : > { %5376 = vpow2.f32 %v4973_v56 }
 0xb6a   : > { %v3649_v54 = vpop.f32.mrf.mxu1 }
 0xb6b   : > { %v5375_v55 = vpop.eup %5374 }
 0xb6c   : > { %3674 = vrot.lane.b32.xlu0 %v5375_v55, %s5449_s18 }
 0xb6d   : > { %v5377_v57 = vpop.eup %5376 }
 0xb6e   : > { %v3655_v58 = vadd.f32 1.0, %v5377_v57 }
 0xb70   : > { %5378 = vrcp.f32 %v3655_v58  ;;  %v3667_v0 = vand.u32 2147483648, %v3655_v58  ;;  %vm3661_vm14 = vweird.f32 %v3655_v58  ;;  %v3665_v1 = vand.u32 2147483647, %v3655_v58 }
 0xb72   : > { %v3668_v3 = vor.u32 1.1754944e-38, %v3667_v0  ;;  %vm3666_vm0 = vcmp.eq.f32.partialorder %v3665_v1, 8.507059e+37 }
 0xb76   : > { %v5379_v59 = vpop.eup %5378 }
 0xb77   : > { %v3657_v60 = vmul.f32 %v5379_v59, %v3655_v58  ;;  %vm3662_vm13 = vweird.f32 %v5379_v59 }
 0xb78   : > { %vm3663_vm15 = vmor %vm3661_vm14, %vm3662_vm13 }
 0xb79   : > { %v3658_v61 = vsub.f32 1.0, %v3657_v60 }
 0xb7b   : > { %v3659_v62 = vmul.f32 %v5379_v59, %v3658_v61 }
 0xb7d   : > { %v3660_v63 = vadd.f32 %v5379_v59, %v3659_v62 }
 0xb7f   : > { %v3664_v2 = vsel %vm3663_vm15, %v5379_v59, %v3660_v63 }
 0xb80   : > { %v3669_v5 = vsel %vm3666_vm0, %v3668_v3, %v3664_v2 }
 0xb81   : > { %v3672_v7 = vmul.f32 %v3669_v5, %v3624_v44 }
 0xbde   : > { %v3675_v4 = vpop.permute.xlu0 %3674 }
 0xbdf   : > { %v3677_v6 = vmul.f32 %v3675_v4, %v3669_v5 }
 0xbe1   : > { %3679 = vrot.lane.b32.xlu1 %v3677_v6, %s5450_s13 }
 0xc53   : > { %v3680_v8 = vpop.permute.xlu1 %3679 }
 0xc54   : > { %v3682_v9 = vadd.f32 %v3680_v8, %v3672_v7 }
 0xc56   : > { %5380 = vtanh.f32 %v3682_v9 }
 0xc5c   : > { %v5381_v10 = vpop.eup %5380 }
 0xc5d   : > { %3685 = vrot.lane.b32.xlu2 %v5381_v10, %s5449_s18  ;;  %v3342_v10 = vld [vmem:[#allocation3 + $0x38] sm:$0xff] }
 0xcb7   : > { %v3686_v14 = vpop.permute.xlu2 %3685 }
 0xcb8   : > { %v3688_v15 = vmul.f32 %v3686_v14, %v3669_v5 }
 0xcba   : > { %v3689_v16 = vpack.c.bf16 %v3688_v15, %v3688_v15 }
 0xcbc   : > { %3691 = vrot.lane.b32.xlu0 %v3689_v16, %s5450_s13 }
 0xd2e   : > { %v3692_v17 = vpop.permute.xlu0 %3691 }
 0xd2f   : > { %4974 = vmatmul.msk.bf16.vlgmr.msrb.gmra.mxu2 %vm3460_vm4, %v3692_v17 }
 0xdb2   : > { %v3705_v20 = vpop.f32.mrf.mxu2 }
 0xdb3   : > { %v3709_v21 = vadd.f32 %v3705_v20, %v3435_v19 }
 0xdb5   : > { %5382 = vtanh.f32 %v3709_v21  ;;  %v4975_v25 = vmul.f32 -1.442695, %v3709_v21 }
 0xdb7   : > { %5384 = vpow2.f32 %v4975_v25 }
 0xdba   : > { %v3707_v22 = vpop.f32.mrf.mxu2 }
 0xdbb   : > { %v5383_v23 = vpop.eup %5382 }
 0xdbc   : > { %3732 = vrot.lane.b32.xlu1 %v5383_v23, %s5449_s18 }
 0xdbd   : > { %v5385_v26 = vpop.eup %5384 }
 0xdbe   : > { %v3713_v27 = vadd.f32 1.0, %v5385_v26 }
 0xdc0   : > { %5386 = vrcp.f32 %v3713_v27  ;;  %v3725_v33 = vand.u32 2147483648, %v3713_v27  ;;  %vm3719_vm2 = vweird.f32 %v3713_v27  ;;  %v3723_v34 = vand.u32 2147483647, %v3713_v27 }
 0xdc2   : > { %v3726_v36 = vor.u32 1.1754944e-38, %v3725_v33  ;;  %vm3724_vm5 = vcmp.eq.f32.partialorder %v3723_v34, 8.507059e+37 }
 0xdc6   : > { %v5387_v28 = vpop.eup %5386 }
 0xdc7   : > { %v3715_v29 = vmul.f32 %v5387_v28, %v3713_v27  ;;  %vm3720_vm1 = vweird.f32 %v5387_v28 }
 0xdc8   : > { %vm3721_vm3 = vmor %vm3719_vm2, %vm3720_vm1 }
 0xdc9   : > { %v3716_v30 = vsub.f32 1.0, %v3715_v29 }
 0xdcb   : > { %v3717_v31 = vmul.f32 %v5387_v28, %v3716_v30 }
 0xdcd   : > { %v3718_v32 = vadd.f32 %v5387_v28, %v3717_v31 }
 0xdcf   : > { %v3722_v35 = vsel %vm3721_vm3, %v5387_v28, %v3718_v32 }
 0xdd0   : > { %v3727_v38 = vsel %vm3724_vm5, %v3726_v36, %v3722_v35 }
 0xdd1   : > { %v3730_v40 = vmul.f32 %v3727_v38, %v3682_v9  ;;  %v3341_v9 = vld [vmem:[#allocation3 + $0x30] sm:$0xff] }
 0xdd2   : > { %v3346_v11 = vpack.c.bf16 %v3342_v10, %v3341_v9 }
 0xdd4   : > { %3438 = vmatmul.bf16.gmra.mxu0 %v3346_v11 }
 0xe2e   : > { %v3733_v37 = vpop.permute.xlu1 %3732 }
 0xe2f   : > { %v3735_v39 = vmul.f32 %v3733_v37, %v3727_v38 }
 0xe31   : > { %3737 = vrot.lane.b32.xlu2 %v3735_v39, %s5450_s13 }
 0xe51   : > { %v3439_v16 = vpop.f32.mrf.mxu0 }
 0xe52   : > { %v3440_v17 = vadd.f32 %v6000_v24, %v3439_v16 }
 0xe8b   : > { %v3738_v41 = vpop.permute.xlu2 %3737 }
 0xe8c   : > { %v3740_v42 = vadd.f32 %v3738_v41, %v3730_v40 }
 0xe8e   : > { %5388 = vtanh.f32 %v3740_v42 }
 0xe94   : > { %v5389_v43 = vpop.eup %5388 }
 0xe95   : > { %3743 = vrot.lane.b32.xlu0 %v5389_v43, %s5449_s18 }
 0xf07   : > { %v3744_v44 = vpop.permute.xlu0 %3743 }
 0xf08   : > { %v3746_v45 = vmul.f32 %v3744_v44, %v3727_v38 }
 0xf0a   : > { %v3747_v46 = vpack.c.bf16 %v3746_v45, %v3746_v45 }
 0xf0c   : > { %3749 = vrot.lane.b32.xlu1 %v3747_v46, %s5450_s13  ;;  %v3441_v46 = vpop.f32.mrf.mxu0 }
 0xf7e   : > { %v3750_v47 = vpop.permute.xlu1 %3749 }
 0xf7f   : > { %4976 = vmatmul.msk.bf16.vlgmr.msrb.gmra.mxu3 %vm3460_vm4, %v3750_v47  ;;  %v3442_v47 = vadd.f32 %v6000_v24, %v3441_v46 }
0x1002   : > { %v3763_v50 = vpop.f32.mrf.mxu3 }
0x1003   : > { %v3767_v51 = vadd.f32 %v3763_v50, %v3437_v49 }
0x1005   : > { %5390 = vtanh.f32 %v3767_v51  ;;  %v4977_v54 = vmul.f32 -1.442695, %v3767_v51 }
0x1007   : > { %5392 = vpow2.f32 %v4977_v54 }
0x100a   : > { %v3765_v52 = vpop.f32.mrf.mxu3 }
0x100b   : > { %v5391_v53 = vpop.eup %5390 }
0x100c   : > { %3790 = vrot.lane.b32.xlu2 %v5391_v53, %s5449_s18 }
0x100d   : > { %v5393_v55 = vpop.eup %5392 }
0x100e   : > { %v3771_v56 = vadd.f32 1.0, %v5393_v55 }
0x1010   : > { %5394 = vrcp.f32 %v3771_v56  ;;  %v3783_v62 = vand.u32 2147483648, %v3771_v56  ;;  %vm3777_vm7 = vweird.f32 %v3771_v56  ;;  %v3781_v63 = vand.u32 2147483647, %v3771_v56 }
0x1012   : > { %v3784_v1 = vor.u32 1.1754944e-38, %v3783_v62  ;;  %vm3782_vm9 = vcmp.eq.f32.partialorder %v3781_v63, 8.507059e+37 }
0x1016   : > { %v5395_v57 = vpop.eup %5394 }
0x1017   : > { %v3773_v58 = vmul.f32 %v5395_v57, %v3771_v56  ;;  %vm3778_vm6 = vweird.f32 %v5395_v57 }
0x1018   : > { %vm3779_vm8 = vmor %vm3777_vm7, %vm3778_vm6 }
0x1019   : > { %v3774_v59 = vsub.f32 1.0, %v3773_v58 }
0x101b   : > { %v3775_v60 = vmul.f32 %v5395_v57, %v3774_v59 }
0x101d   : > { %v3776_v61 = vadd.f32 %v5395_v57, %v3775_v60 }
0x101f   : > { %v3780_v0 = vsel %vm3779_vm8, %v5395_v57, %v3776_v61 }
0x1020   : > { %v3785_v3 = vsel %vm3782_vm9, %v3784_v1, %v3780_v0 }
0x1021   : > { %v3788_v5 = vmul.f32 %v3785_v3, %v3740_v42 }
0x1066   : > { %v3791_v2 = vpop.permute.xlu2 %3790 }
0x1067   : > { %v3793_v4 = vmul.f32 %v3791_v2, %v3785_v3 }
0x1069   : > { %3795 = vrot.lane.b32.xlu0 %v3793_v4, %s5450_s13 }
0x10db   : > { %v3796_v6 = vpop.permute.xlu0 %3795 }
0x10dc   : > { %v3798_v7 = vadd.f32 %v3796_v6, %v3788_v5 }
0x10de   : > { %5396 = vtanh.f32 %v3798_v7 }
0x10e4   : > { %v5397_v8 = vpop.eup %5396 }
0x10e5   : > { %3801 = vrot.lane.b32.xlu1 %v5397_v8, %s5449_s18 }
0x1157   : > { %v3802_v12 = vpop.permute.xlu1 %3801 }
0x1158   : > { %v3804_v13 = vmul.f32 %v3802_v12, %v3785_v3 }
0x115a   : > { %v3805_v14 = vpack.c.bf16 %v3804_v13, %v3804_v13 }
0x115c   : > { %3807 = vrot.lane.b32.xlu2 %v3805_v14, %s5450_s13 }
0x11b6   : > { %v3808_v15 = vpop.permute.xlu2 %3807 }
0x11b7   : > { %4978 = vmatmul.msk.bf16.vlgmr.msra.gmra.mxu1 %vm3460_vm4, %v3808_v15 }
0x1234   : > { %v3821_v18 = vpop.f32.mrf.mxu1 }
0x1235   : > { %v3825_v19 = vadd.f32 %v3821_v18, %v3440_v17 }
0x1237   : > { %5398 = vtanh.f32 %v3825_v19  ;;  %v4979_v22 = vmul.f32 -1.442695, %v3825_v19 }
0x1239   : > { %5400 = vpow2.f32 %v4979_v22 }
0x123c   : > { %v3823_v20 = vpop.f32.mrf.mxu1 }
0x123d   : > { %v5399_v21 = vpop.eup %5398 }
0x123e   : > { %3848 = vrot.lane.b32.xlu0 %v5399_v21, %s5449_s18 }
0x123f   : > { %v5401_v23 = vpop.eup %5400 }
0x1240   : > { %v3829_v25 = vadd.f32 1.0, %v5401_v23 }
0x1242   : > { %5402 = vrcp.f32 %v3829_v25  ;;  %v3841_v31 = vand.u32 2147483648, %v3829_v25  ;;  %vm3835_vm11 = vweird.f32 %v3829_v25  ;;  %v3839_v32 = vand.u32 2147483647, %v3829_v25 }
0x1244   : > { %v3842_v34 = vor.u32 1.1754944e-38, %v3841_v31  ;;  %vm3840_vm13 = vcmp.eq.f32.partialorder %v3839_v32, 8.507059e+37 }
0x1248   : > { %v5403_v26 = vpop.eup %5402 }
0x1249   : > { %v3831_v27 = vmul.f32 %v5403_v26, %v3829_v25  ;;  %vm3836_vm10 = vweird.f32 %v5403_v26 }
0x124a   : > { %vm3837_vm12 = vmor %vm3835_vm11, %vm3836_vm10 }
0x124b   : > { %v3832_v28 = vsub.f32 1.0, %v3831_v27 }
0x124d   : > { %v3833_v29 = vmul.f32 %v5403_v26, %v3832_v28 }
0x124f   : > { %v3834_v30 = vadd.f32 %v5403_v26, %v3833_v29 }
0x1251   : > { %v3838_v33 = vsel %vm3837_vm12, %v5403_v26, %v3834_v30 }
0x1252   : > { %v3843_v36 = vsel %vm3840_vm13, %v3842_v34, %v3838_v33 }
0x1253   : > { %v3846_v38 = vmul.f32 %v3843_v36, %v3798_v7 }
0x12b0   : > { %v3849_v35 = vpop.permute.xlu0 %3848 }
0x12b1   : > { %v3851_v37 = vmul.f32 %v3849_v35, %v3843_v36 }
0x12b3   : > { %3853 = vrot.lane.b32.xlu1 %v3851_v37, %s5450_s13 }
0x1325   : > { %v3854_v39 = vpop.permute.xlu1 %3853 }
0x1326   : > { %v3856_v40 = vadd.f32 %v3854_v39, %v3846_v38 }
0x1328   : > { %5404 = vtanh.f32 %v3856_v40 }
0x132e   : > { %v5405_v41 = vpop.eup %5404 }
0x132f   : > { %3859 = vrot.lane.b32.xlu2 %v5405_v41, %s5449_s18 }
0x1389   : > { %v3860_v42 = vpop.permute.xlu2 %3859 }
0x138a   : > { %v3862_v43 = vmul.f32 %v3860_v42, %v3843_v36 }
0x138c   : > { %v3863_v44 = vpack.c.bf16 %v3862_v43, %v3862_v43 }
0x138e   : > { %3865 = vrot.lane.b32.xlu0 %v3863_v44, %s5450_s13 }
0x1400   : > { %v3866_v45 = vpop.permute.xlu0 %3865 }
0x1401   : > { %4980 = vmatmul.msk.bf16.vlgmr.msra.gmra.mxu2 %vm3460_vm4, %v3866_v45 }
0x1484   : > { %v3879_v48 = vpop.f32.mrf.mxu2 }
0x1485   : > { %v3883_v49 = vadd.f32 %v3879_v48, %v3442_v47 }
0x1487   : > { %5406 = vtanh.f32 %v3883_v49  ;;  %v4981_v52 = vmul.f32 -1.442695, %v3883_v49 }
0x1489   : > { %5408 = vpow2.f32 %v4981_v52 }
0x148c   : > { %v3881_v50 = vpop.f32.mrf.mxu2 }
0x148d   : > { %v5407_v51 = vpop.eup %5406 }
0x148e   : > { %3906 = vrot.lane.b32.xlu1 %v5407_v51, %s5449_s18 }
0x148f   : > { %v5409_v53 = vpop.eup %5408 }
0x1490   : > { %v3887_v54 = vadd.f32 1.0, %v5409_v53 }
0x1492   : > { %5410 = vrcp.f32 %v3887_v54  ;;  %v3899_v60 = vand.u32 2147483648, %v3887_v54  ;;  %vm3893_vm15 = vweird.f32 %v3887_v54  ;;  %v3897_v24 = vand.u32 2147483647, %v3887_v54 }
0x1494   : > { %v3900_v62 = vor.u32 1.1754944e-38, %v3899_v60  ;;  %vm3898_vm1 = vcmp.eq.f32.partialorder %v3897_v24, 8.507059e+37 }
0x1498   : > { %v5411_v55 = vpop.eup %5410 }
0x1499   : > { %v3889_v56 = vmul.f32 %v5411_v55, %v3887_v54  ;;  %vm3894_vm14 = vweird.f32 %v5411_v55 }
0x149a   : > { %vm3895_vm0 = vmor %vm3893_vm15, %vm3894_vm14 }
0x149b   : > { %v3890_v57 = vsub.f32 1.0, %v3889_v56 }
0x149d   : > { %v3891_v58 = vmul.f32 %v5411_v55, %v3890_v57 }
0x149f   : > { %v3892_v59 = vadd.f32 %v5411_v55, %v3891_v58 }
0x14a1   : > { %v3896_v61 = vsel %vm3895_vm0, %v5411_v55, %v3892_v59 }
0x14a2   : > { %v3901_v0 = vsel %vm3898_vm1, %v3900_v62, %v3896_v61 }
0x14a3   : > { %v3904_v2 = vmul.f32 %v3901_v0, %v3856_v40 }
0x1500   : > { %v3907_v63 = vpop.permute.xlu1 %3906 }
0x1501   : > { %v3909_v1 = vmul.f32 %v3907_v63, %v3901_v0 }
0x1503   : > { %3911 = vrot.lane.b32.xlu2 %v3909_v1, %s5450_s13 }
0x155d   : > { %v3912_v3 = vpop.permute.xlu2 %3911 }
0x155e   : > { %v3914_v4 = vadd.f32 %v3912_v3, %v3904_v2 }
0x1560   : > { %5412 = vtanh.f32 %v3914_v4 }
0x1566   : > { %v5413_v5 = vpop.eup %5412 }
0x1567   : > { %3917 = vrot.lane.b32.xlu0 %v5413_v5, %s5449_s18 }
0x15d9   : > { %v3918_v6 = vpop.permute.xlu0 %3917 }
0x15da   : > { %v3920_v7 = vmul.f32 %v3918_v6, %v3901_v0 }
0x15dc   : > { %3922 = vrot.lane.b32.xlu1 %v3920_v7, %s5450_s13 }
0x164e   : > { %v3923_v8 = vpop.permute.xlu1 %3922 }
0x164f   : > { %v3925_v9 = vsel %vm3460_vm4, %v3923_v8, %v3914_v4 }
0x1650   : > { %5441 = dma.done.wait [#allocation4], 1024 }
0x1651   : > { %5442 = vsyncadd [#allocation4], 4294966272  ;;  %v5324_v10 = vld [vmem:[#allocation2 + $0x38] sm:$0xff]  ;;  %v5323_v11 = vld [vmem:[#allocation2 + $0x28] sm:$0xff]  ;;  %s6132_s15 = sld [smem:[#allocation81_spill]]  ;;  %vm4052_vm4 = vcmask 523264  }
0x1652   : > { %4000 = vmatpush.bf16.msra.mxu3 %v5324_v10  ;;  %v5322_v13 = vld [vmem:[#allocation2 + $0x20] sm:$0xff]  ;;  %v5321_v14 = vld [vmem:[#allocation2 + $0x8] sm:$0xff]  ;;  %v5320_v15 = vld [vmem:[#allocation2 + $0x10] sm:$0xff]  ;;  %s6133_s1 = sld [smem:[#allocation83_spill]] }
0x1653   : > { %v5319_v16 = vld [vmem:[#allocation2 + $0x18] sm:$0xff]  ;;  %v5318_v17 = vld [vmem:[#allocation2] sm:$0xff]  ;;  %v5317_v18 = vld [vmem:[#allocation2 + $0x30] sm:$0xff]  ;;  %s6134_s26 = sld [smem:[#allocation80_spill]] }
0x1654   : > { %v3930_v19 = vld [vmem:[%s5556_s29] sm:$0xff]  ;;  %s6135_s24 = sld [smem:[#allocation77_spill]] }
0x1655   : > { %v3931_v20 = vpack.c.bf16 %v3930_v19, %v3930_v19  ;;  %s6136_s25 = sld [smem:[#allocation82_spill]] }
0x1656   : > { %4001 = vmatpush.bf16.msra.mxu3 %v5323_v11  ;;  %s6137_s10 = sld [smem:[#allocation84_spill]] }
0x1657   : > { %v5328_v12 = vld [vmem:[%s6132_s15 + $0x18] sm:$0xff]  ;;  %v5327_v21 = vld [vmem:[%s6132_s15 + $0x10] sm:$0xff]  ;;  %v5326_v22 = vld [vmem:[%s6132_s15 + $0x8] sm:$0xff] }
0x1658   : > { %4060 = vmatpush.bf16.msrb.mxu1 %v5328_v12  ;;  %v5325_v23 = vld [vmem:[%s6132_s15] sm:$0xff]  ;;  %v5336_v25 = vld [vmem:[%s6133_s1 + $0x38] sm:$0xff]  ;;  %v5335_v26 = vld [vmem:[%s6133_s1 + $0x30] sm:$0xff] }
0x1659   : > { %4139 = vmatpush.bf16.msrb.mxu2 %v5336_v25  ;;  %v5334_v27 = vld [vmem:[%s6133_s1 + $0x28] sm:$0xff]  ;;  %v5333_v28 = vld [vmem:[%s6133_s1 + $0x20] sm:$0xff]  ;;  %v5332_v29 = vld [vmem:[%s6133_s1 + $0x18] sm:$0xff] }
0x165a   : > { %4002 = vmatpush.bf16.msra.mxu3 %v5322_v13  ;;  %v5414_v30 = vld [vmem:[%s6134_s26] ss:$0 sm:$0xff]  ;;  %v5331_v37 = vld [vmem:[%s6133_s1 + $0x10] sm:$0xff]  ;;  %v5330_v38 = vld [vmem:[%s6133_s1 + $0x8] sm:$0xff] }
0x165b   : > { %v5329_v39 = vld [vmem:[%s6133_s1] sm:$0xff] }
0x165c   : > { %4061 = vmatpush.bf16.msrb.mxu1 %v5327_v21  ;;  %v5415_v40 = vld [vmem:[%s6136_s25] ss:$0 sm:$0xff] }
0x165d   : > { %4140 = vmatpush.bf16.msrb.mxu2 %v5335_v26  ;;  %v5416_v46 = vld [vmem:[%s6137_s10] ss:$0 sm:$0xff] }
0x165e   : > { %4003 = vmatpush.bf16.msra.mxu3 %v5321_v14 }
0x1660   : > { %4062 = vmatpush.bf16.msrb.mxu1 %v5326_v22 }
0x1661   : > { %4141 = vmatpush.bf16.msrb.mxu2 %v5334_v27 }
0x1662   : > { %4004 = vmatpush.bf16.msra.mxu3 %v5320_v15 }
0x1664   : > { %4063 = vmatpush.bf16.msrb.mxu1 %v5325_v23 }
0x1665   : > { %4142 = vmatpush.bf16.msrb.mxu2 %v5333_v28 }
0x1666   : > { %4005 = vmatpush.bf16.msra.mxu3 %v5319_v16 }
0x1669   : > { %4143 = vmatpush.bf16.msrb.mxu2 %v5332_v29 }
0x166a   : > { %4006 = vmatpush.bf16.msra.mxu3 %v5318_v17 }
0x166d   : > { %4144 = vmatpush.bf16.msrb.mxu2 %v5331_v37 }
0x166e   : > { %4007 = vmatpush.bf16.msra.mxu3 %v5317_v18 }
0x1671   : > { %4008 = vmatmul.bf16.vlgmr.msra.gmra.mxu3 %v3931_v20  ;;  %4145 = vmatpush.bf16.msrb.mxu2 %v5330_v38 }
0x1675   : > { %4146 = vmatpush.bf16.msrb.mxu2 %v5329_v39 }
0x16f4   : > { %v4009_v31 = vpop.f32.mrf.mxu3 }
0x16f5   : > { %v4010_v32 = vadd.f32 %v5414_v30, %v4009_v31 }
0x16f7   : > { %5417 = vtanh.f32 %v4010_v32 }
0x16fc   : > { %v4011_v33 = vpop.f32.mrf.mxu3 }
0x16fd   : > { %v5418_v34 = vpop.eup %5417 }
0x16fe   : > { %v4014_v35 = vmul.f32 %v5418_v34, %v3925_v9 }
0x1700   : > { %v4015_v36 = vpack.c.bf16 %v4014_v35, %v4014_v35 }
0x1702   : > { %5030 = vmatmul.msk.bf16.vlgmr.msrb.gmra.mxu1 %vm4052_vm4, %v4015_v36 }
0x177f   : > { %v4065_v41 = vpop.f32.mrf.mxu1 }
0x1780   : > { %v4066_v42 = vadd.f32 %v5415_v40, %v4065_v41 }
0x1782   : > { %5419 = vtanh.f32 %v4066_v42 }
0x1787   : > { %v4067_v43 = vpop.f32.mrf.mxu1 }
0x1788   : > { %v5420_v44 = vpop.eup %5419 }
0x1789   : > { %v4070_v45 = vpack.c.bf16 %v5420_v44, %v5420_v44 }
0x178b   : > { %4147 = vmatmul.bf16.vlgmr.msrb.gmra.mxu2 %v4070_v45 }
0x180e   : > { %v4148_v47 = vpop.f32.mrf.mxu2 }
0x180f   : > { %v4149_v48 = vadd.f32 %v5416_v46, %v4148_v47 }
0x1811   : > { %4152 = vst [vmem:[%s6135_s24] sm:$0xff] %v4149_v48 }
0x1816   : > { %v4150_v49 = vpop.f32.mrf.mxu2 }
0x1817 PF: > { %s6138_s29 = sld [smem:[#allocation76_spill]] }
0x181d   : > { %s32_s28 = sadd.s32 1, %s6138_s29  }
0x181e   : > { %p29_p6 = scmp.ge.s32.totalorder %s32_s28, 4  }
0x1820   :  { %31 = sbr.rel (!%p29_p6) target bundleno = 14 (0xe), region = 2414 }
0x1825   :  { %4172 = vsyncmov [#allocation4] }
0x1828   :  { %s4173_s12 = vpop.sfrf %4172 }
0x1829   :  { %p5065_p7 = scmp.ne.s32.totalorder %s4173_s12, 0 }
0x182b   :  { %4177 = shalt.err (%p5065_p7)  }
0x182c   :  { %4179 = vsyncmov [#allocation4 + $0x1] }
0x182f   :  { %s4180_s9 = vpop.sfrf %4179 }
0x1830   :  { %p5066_p8 = scmp.ne.s32.totalorder %s4180_s9, 0 }
0x1832   :  { %4184 = shalt.err (%p5066_p8)  }

</bundles_post_ra>
